<compile_context>
chip_gen: v7x
topology: tpu7x:2x2x1
jax: 0.10.0
libtpu: 0.0.40
codegen_flags: <defaults>
</compile_context>

<pallas_src>
import jax
import jax.numpy as jnp
import numpy as np
from jax.experimental import pallas as pl
from jax.experimental.pallas import tpu as pltpu


# ----------------------------- glue: interpolation matrices -----------------------------

def bilinear_matrix_align_corners(out_size: int, in_size: int) -> jnp.ndarray:
    """Row-stochastic (out_size, in_size) matrix M s.t. M @ v == bilinear upsample of v
    with PyTorch nn.Upsample(mode='bilinear', align_corners=True) semantics."""
    if in_size == 1:
        return jnp.ones((out_size, 1), jnp.float32)
    i = np.arange(out_size, dtype=np.float64)
    s = i * (in_size - 1) / (out_size - 1)
    i0 = np.clip(np.floor(s).astype(np.int64), 0, in_size - 1)
    i1 = np.clip(i0 + 1, 0, in_size - 1)
    frac = s - i0
    M = np.zeros((out_size, in_size), dtype=np.float64)
    M[np.arange(out_size), i0] += 1.0 - frac
    M[np.arange(out_size), i1] += frac
    return jnp.asarray(M, jnp.float32)


# ------------------------- one-time constant preparation (model init) -------------------

def interact_prepare(fc_weight, fc_bias, alpha, *, Hz, Wz, Cx,
                     compute_dtype=jnp.float32):
    """Precompute every per-call constant once (hoisted out of the per-frame hot path).

    fc_weight: (hidden, Cx+Cz) PyTorch Linear layout; fc_bias: (hidden,); alpha: scalar.
    compute_dtype: matmul-operand dtype for the fc weights (f32 on v5e; bf16 on v6e/v7x).
    """
    hidden, in_channels = fc_weight.shape
    assert in_channels > Cx
    H, W = 2 * Hz, 2 * Wz
    Wh = bilinear_matrix_align_corners(H, Hz)                  # (H, Hz)
    Ww = bilinear_matrix_align_corners(W, Wz)                  # (W, Wz)
    S = jnp.kron(Wh, Ww).astype(jnp.float32)                   # (H*W, Hz*Wz), kept f32
    Wt = fc_weight.astype(jnp.float32).T                       # (Cx+Cz, hidden)
    Wx_t = Wt[:Cx].astype(compute_dtype)                       # (Cx, hidden), cat order: x first
    Wz_t = Wt[Cx:].astype(compute_dtype)                       # (Cz, hidden)
    b2d = fc_bias.astype(jnp.float32)[None, :]                 # (1, hidden)
    gate = jax.nn.sigmoid(jnp.asarray(alpha, jnp.float32)).reshape(1, 1)   # SMEM scalar
    return dict(S=S, Wx_t=Wx_t, Wz_t=Wz_t, b2d=b2d, gate=gate)


# ----------------------------------- the Pallas kernel ----------------------------------

def interact_kernel(x_ref, z_ref, s_ref, wz_ref, wx_ref, b_ref, gate_ref, out_ref):
    # x_ref:   (Bblk, HW,   Cx)     io dtype    search features (also the residual)
    # z_ref:   (Bblk, HzWz, Cz)     cdt         template features
    # s_ref:   (HW, HzWz)           f32         S = kron(Wh, Ww): fused 2-D bilinear x2 upsample
    # wz_ref:  (Cz, hidden)         cdt         raw fc weight slice for the z channels
    # wx_ref:  (Cx, hidden)         cdt         raw fc weight slice for the x channels
    # b_ref:   (1, hidden)          f32         fc bias
    # gate_ref:(1, 1)               f32 (SMEM)  sigmoid(alpha)
    # out_ref: (Bblk, HW, hidden)   io dtype    aliases x in HBM
    Bblk, HW, Cx = x_ref.shape
    _, HzWz, Cz = z_ref.shape
    hidden = wx_ref.shape[1]

    x = x_ref[...]                                                     # (Bblk, HW, Cx)

    # z path: fc first (it commutes with the linear upsample) as one flat matmul, then the
    # whole 2-D x2 align_corners upsample as a small batched matmul kept entirely in f32.
    z2d = z_ref[...].reshape(Bblk * HzWz, Cz)
    zt = jnp.dot(z2d, wz_ref[...],
                 preferred_element_type=jnp.float32)                   # (Bblk*HzWz, hidden) f32
    zt3 = zt.reshape(Bblk, HzWz, hidden)
    s_b = jnp.broadcast_to(s_ref[...], (Bblk, HW, HzWz))               # f32
    zc = jnp.einsum('bpz,bzh->bph', s_b, zt3,
                    preferred_element_type=jnp.float32)                # (Bblk, HW, hidden) f32

    # x path: single flat pixel-major matmul over every pixel of every batch in the block.
    x2d = x.reshape(Bblk * HW, Cx).astype(wx_ref.dtype)
    xc = jnp.dot(x2d, wx_ref[...],
                 preferred_element_type=jnp.float32).reshape(Bblk, HW, hidden)

    xz = xc + zc + b_ref[...]                                          # f32
    gate = gate_ref[0, 0]                                              # scalar from SMEM
    out = x.astype(jnp.float32) + gate * jnp.maximum(xz, 0.0)          # hidden == Cx
    out_ref[...] = out.astype(out_ref.dtype)


# ------------------------------- per-frame hot path (jit me) -----------------------------

def _pick_block_batch(B: int, target: int) -> int:
    """Largest divisor of B that is <= target and keeps >= 2 grid steps when B >= 2
    (so v7x's two TensorCores both get work under dimension_semantics=('parallel',))."""
    cap = max(1, min(target, B // 2 if B >= 2 else 1))
    for bb in range(cap, 0, -1):
        if B % bb == 0:
            return bb
    return 1


def interact_apply(params, x_feat, z_feat, *, block_batch=8):
    """x_feat: (B,H,W,Cx), z_feat: (B,Hz,Wz,Cz) with H=2*Hz, W=2*Wz.
    Output: (B,H,W,hidden) in x_feat.dtype (hidden == Cx).  Pass bf16 x/z on v6e/v7x to
    halve the dominant HBM traffic; accumulation and the epilogue stay f32 in-kernel."""
    B, H, W, Cx = x_feat.shape
    _, Hz, Wz, Cz = z_feat.shape
    hidden = params['Wx_t'].shape[1]
    assert H == 2 * Hz and W == 2 * Wz and hidden == Cx
    HW, HzWz = H * W, Hz * Wz
    Bblk = _pick_block_batch(B, block_batch)
    io_dtype = x_feat.dtype

    # Free row-major reshapes to pixel-major slabs (no transpose, no dtype change for x).
    x_px = x_feat.reshape(B, HW, Cx)
    z_px = z_feat.reshape(B, HzWz, Cz).astype(params['Wz_t'].dtype)

    out_px = pl.pallas_call(
        interact_kernel,
        out_shape=jax.ShapeDtypeStruct((B, HW, hidden), io_dtype),
        grid_spec=pltpu.PrefetchScalarGridSpec(
            num_scalar_prefetch=0,
            grid=(B // Bblk,),
            in_specs=[
                pl.BlockSpec((Bblk, HW, Cx), lambda b: (b, 0, 0)),
                pl.BlockSpec((Bblk, HzWz, Cz), lambda b: (b, 0, 0)),
                pl.BlockSpec((HW, HzWz), lambda b: (0, 0)),
                pl.BlockSpec((Cz, hidden), lambda b: (0, 0)),
                pl.BlockSpec((Cx, hidden), lambda b: (0, 0)),
                pl.BlockSpec((1, hidden), lambda b: (0, 0)),
                pl.BlockSpec(memory_space=pltpu.MemorySpace.SMEM),   # gate scalar
            ],
            out_specs=pl.BlockSpec((Bblk, HW, hidden), lambda b: (b, 0, 0)),
        ),
        compiler_params=pltpu.CompilerParams(dimension_semantics=("parallel",)),
        # out aliases x (same shape & dtype; each block is read before it is written).
        # Donate x_feat into the surrounding jit to realize the in-place update.
        input_output_aliases={0: 0},
    )(x_px, z_px, params['S'], params['Wz_t'], params['Wx_t'], params['b2d'], params['gate'])

    return out_px.reshape(B, H, W, hidden)


# -------------------------------- pure-JAX reference -------------------------------------

def interact_reference(x_feat, z_feat, fc_weight, fc_bias, alpha):
    B, Hz, Wz, Cz = z_feat.shape
    H, W = 2 * Hz, 2 * Wz
    Wh = bilinear_matrix_align_corners(H, Hz)
    Ww = bilinear_matrix_align_corners(W, Wz)
    z_up = jnp.einsum('Hh,bhwc->bHwc', Wh, z_feat)
    z_up = jnp.einsum('Ww,bHwc->bHWc', Ww, z_up)
    xz = jnp.concatenate([x_feat, z_up], axis=-1) @ fc_weight.T + fc_bias
    return x_feat + jax.nn.sigmoid(alpha) * jnp.maximum(xz, 0.0)


# -------------------------------------- main ---------------------------------------------

if __name__ == "__main__":
    B = 8               # exercises the batched grid (Bblk=4, 2 grid steps)
    H = W = 16          # search-feature spatial size
    Hz = Wz = 8         # template-feature spatial size (upsampled x2)
    Cx = 32             # x_feat channels == hidden_dim (required by the residual add)
    Cz = 32             # z_feat channels
    in_channels = Cx + Cz
    hidden_dim = Cx

    key = jax.random.PRNGKey(0)
    kx, kz, kw = jax.random.split(key, 3)
    x_feat = jax.random.normal(kx, (B, H, W, Cx), jnp.float32)
    z_feat = jax.random.normal(kz, (B, Hz, Wz, Cz), jnp.float32)

    # deterministic parameter init (trunc_normal(std=0.02) ~ normal*0.02 for a synthetic test)
    fc_weight = 0.02 * jax.random.normal(kw, (hidden_dim, in_channels), jnp.float32)
    fc_bias = jnp.zeros((hidden_dim,), jnp.float32)
    alpha = jnp.float32(0.5)

    ref = jax.block_until_ready(interact_reference(x_feat, z_feat, fc_weight, fc_bias, alpha))

    apply_jit = jax.jit(interact_apply, static_argnames=("block_batch",))

    # f32 path (v5e-style: f32 io + f32 matmul operands): near-exact parity.
    params_f32 = interact_prepare(fc_weight, fc_bias, alpha, Hz=Hz, Wz=Wz, Cx=Cx,
                                  compute_dtype=jnp.float32)
    out_f32 = jax.block_until_ready(apply_jit(params_f32, x_feat, z_feat))
    np.testing.assert_allclose(np.asarray(out_f32), np.asarray(ref), rtol=1e-4, atol=1e-4)

    # bf16 io + bf16 matmul operands (recommended on v6e/v7x); f32 accumulate + f32 epilogue,
    # upsample matmul kept in f32.
    params_bf16 = interact_prepare(fc_weight, fc_bias, alpha, Hz=Hz, Wz=Wz, Cx=Cx,
                                   compute_dtype=jnp.bfloat16)
    x_bf16 = x_feat.astype(jnp.bfloat16)
    z_bf16 = z_feat.astype(jnp.bfloat16)
    out_bf16 = jax.block_until_ready(apply_jit(params_bf16, x_bf16, z_bf16))
    np.testing.assert_allclose(np.asarray(out_bf16, dtype=np.float32), np.asarray(ref),
                               rtol=3e-2, atol=3e-2)

    print("KERNEL_OK")
</pallas_src>

<mosaic_0001>
module attributes {stable_mosaic.version = 11 : i64} {
  func.func @interact_kernel(%arg0: i32, %arg1: memref<4x256x32xf32, #tpu.memory_space<vmem>>, %arg2: memref<4x64x32xf32, #tpu.memory_space<vmem>>, %arg3: memref<256x64xf32, #tpu.memory_space<vmem>>, %arg4: memref<32x32xf32, #tpu.memory_space<vmem>>, %arg5: memref<32x32xf32, #tpu.memory_space<vmem>>, %arg6: memref<1x32xf32, #tpu.memory_space<vmem>>, %arg7: memref<1x1xf32, #tpu.memory_space<smem>>, %arg8: memref<4x256x32xf32, #tpu.memory_space<vmem>>) attributes {dimension_semantics = [#tpu.dimension_semantics<parallel>], iteration_bounds = array<i64: 2>, scalar_prefetch = 0 : i64, scratch_operands = 0 : i64, tpu.core_type = #tpu.core_type<tc>, window_params = [{transform_indices = @transform_0, window_bounds = array<i64: 4, 256, 32>}, {transform_indices = @transform_1, window_bounds = array<i64: 4, 64, 32>}, {pipeline_mode = #tpu.pipeline_mode<synchronous>, transform_indices = @transform_2, window_bounds = array<i64: 256, 64>}, {pipeline_mode = #tpu.pipeline_mode<synchronous>, transform_indices = @transform_3, window_bounds = array<i64: 32, 32>}, {pipeline_mode = #tpu.pipeline_mode<synchronous>, transform_indices = @transform_4, window_bounds = array<i64: 32, 32>}, {pipeline_mode = #tpu.pipeline_mode<synchronous>, transform_indices = @transform_5, window_bounds = array<i64: 1, 32>}, {transform_indices = @transform_6, window_bounds = array<i64: 1, 1>}, {transform_indices = @transform_7, window_bounds = array<i64: 4, 256, 32>}]} {
    %c0 = arith.constant 0 : index
    %c0_0 = arith.constant 0 : index
    %c0_1 = arith.constant 0 : index
    %0 = vector.load %arg1[%c0, %c0_0, %c0_1] : memref<4x256x32xf32, #tpu.memory_space<vmem>>, vector<4x256x32xf32>
    %c0_2 = arith.constant 0 : index
    %c0_3 = arith.constant 0 : index
    %c0_4 = arith.constant 0 : index
    %1 = vector.load %arg2[%c0_2, %c0_3, %c0_4] : memref<4x64x32xf32, #tpu.memory_space<vmem>>, vector<4x64x32xf32>
    %2 = vector.shape_cast %1 : vector<4x64x32xf32> to vector<256x32xf32>
    %c0_5 = arith.constant 0 : index
    %c0_6 = arith.constant 0 : index
    %3 = vector.load %arg4[%c0_5, %c0_6] : memref<32x32xf32, #tpu.memory_space<vmem>>, vector<32x32xf32>
    %cst = arith.constant dense<0.000000e+00> : vector<256x32xf32>
    %4 = tpu.matmul %2, %3, %cst {dimension_numbers = #tpu.dot_dimension_numbers<[1], [0], [0], [1], [0, 0, 1, 1], [], []>} : vector<256x32xf32>, vector<32x32xf32>, vector<256x32xf32> -> vector<256x32xf32>
    %5 = vector.shape_cast %4 : vector<256x32xf32> to vector<4x64x32xf32>
    %c0_7 = arith.constant 0 : index
    %c0_8 = arith.constant 0 : index
    %6 = vector.load %arg3[%c0_7, %c0_8] : memref<256x64xf32, #tpu.memory_space<vmem>>, vector<256x64xf32>
    %7 = vector.shape_cast %6 : vector<256x64xf32> to vector<1x256x64xf32>
    %8 = vector.broadcast %7 : vector<1x256x64xf32> to vector<4x256x64xf32>
    "tpu.trace_start"() <{level = 10 : i32, message = "bpz,bzh->bph"}> : () -> ()
    %cst_9 = arith.constant dense<0.000000e+00> : vector<4x256x32xf32>
    %9 = tpu.matmul %8, %5, %cst_9 {dimension_numbers = #tpu.dot_dimension_numbers<[2], [1], [1], [2], [0, 0, 0, 1, 1, 2], [0], [0]>} : vector<4x256x64xf32>, vector<4x64x32xf32>, vector<4x256x32xf32> -> vector<4x256x32xf32>
    "tpu.trace_stop"() : () -> ()
    %10 = vector.shape_cast %0 : vector<4x256x32xf32> to vector<1024x32xf32>
    %c0_10 = arith.constant 0 : index
    %c0_11 = arith.constant 0 : index
    %11 = vector.load %arg5[%c0_10, %c0_11] : memref<32x32xf32, #tpu.memory_space<vmem>>, vector<32x32xf32>
    %cst_12 = arith.constant dense<0.000000e+00> : vector<1024x32xf32>
    %12 = tpu.matmul %10, %11, %cst_12 {dimension_numbers = #tpu.dot_dimension_numbers<[1], [0], [0], [1], [0, 0, 1, 1], [], []>} : vector<1024x32xf32>, vector<32x32xf32>, vector<1024x32xf32> -> vector<1024x32xf32>
    %13 = vector.shape_cast %12 : vector<1024x32xf32> to vector<4x256x32xf32>
    %14 = arith.addf %13, %9 : vector<4x256x32xf32>
    %c0_13 = arith.constant 0 : index
    %c0_14 = arith.constant 0 : index
    %15 = vector.load %arg6[%c0_13, %c0_14] : memref<1x32xf32, #tpu.memory_space<vmem>>, vector<1x32xf32>
    %16 = vector.shape_cast %15 : vector<1x32xf32> to vector<1x1x32xf32>
    %17 = vector.broadcast %16 : vector<1x1x32xf32> to vector<4x256x32xf32>
    %18 = arith.addf %14, %17 : vector<4x256x32xf32>
    %c0_15 = arith.constant 0 : index
    %c0_16 = arith.constant 0 : index
    %19 = memref.load %arg7[%c0_15, %c0_16] : memref<1x1xf32, #tpu.memory_space<smem>>
    %cst_17 = arith.constant 0.000000e+00 : f32
    %20 = vector.broadcast %cst_17 : f32 to vector<4x256x32xf32>
    %21 = arith.maximumf %18, %20 : vector<4x256x32xf32>
    %22 = vector.broadcast %19 : f32 to vector<4x256x32xf32>
    %23 = arith.mulf %22, %21 : vector<4x256x32xf32>
    %24 = arith.addf %0, %23 : vector<4x256x32xf32>
    %c0_18 = arith.constant 0 : index
    %c0_19 = arith.constant 0 : index
    %c0_20 = arith.constant 0 : index
    %25 = vector.load %arg8[%c0_18, %c0_19, %c0_20] : memref<4x256x32xf32, #tpu.memory_space<vmem>>, vector<4x256x32xf32>
    tpu.vector_store %arg8[%c0_18, %c0_19, %c0_20], %24 {strides = array<i32>} : memref<4x256x32xf32, #tpu.memory_space<vmem>>, vector<4x256x32xf32>,
    return
  }
  func.func @transform_0(%arg0: i32) -> (i32, i32, i32) {
    %c0_i32 = arith.constant 0 : i32
    %c0_i32_0 = arith.constant 0 : i32
    %c0_i32_1 = arith.constant 0 : i32
    return %arg0, %c0_i32, %c0_i32_0 : i32, i32, i32
  }
  func.func @transform_1(%arg0: i32) -> (i32, i32, i32) {
    %c0_i32 = arith.constant 0 : i32
    %c0_i32_0 = arith.constant 0 : i32
    %c0_i32_1 = arith.constant 0 : i32
    return %arg0, %c0_i32, %c0_i32_0 : i32, i32, i32
  }
  func.func @transform_2(%arg0: i32) -> (i32, i32) {
    %c0_i32 = arith.constant 0 : i32
    %c0_i32_0 = arith.constant 0 : i32
    %c0_i32_1 = arith.constant 0 : i32
    return %c0_i32, %c0_i32_0 : i32, i32
  }
  func.func @transform_3(%arg0: i32) -> (i32, i32) {
    %c0_i32 = arith.constant 0 : i32
    %c0_i32_0 = arith.constant 0 : i32
    %c0_i32_1 = arith.constant 0 : i32
    return %c0_i32, %c0_i32_0 : i32, i32
  }
  func.func @transform_4(%arg0: i32) -> (i32, i32) {
    %c0_i32 = arith.constant 0 : i32
    %c0_i32_0 = arith.constant 0 : i32
    %c0_i32_1 = arith.constant 0 : i32
    return %c0_i32, %c0_i32_0 : i32, i32
  }
  func.func @transform_5(%arg0: i32) -> (i32, i32) {
    %c0_i32 = arith.constant 0 : i32
    %c0_i32_0 = arith.constant 0 : i32
    %c0_i32_1 = arith.constant 0 : i32
    return %c0_i32, %c0_i32_0 : i32, i32
  }
  func.func @transform_6(%arg0: i32) -> (i32, i32) {
    %c0_i32 = arith.constant 0 : i32
    %c0_i32_0 = arith.constant 0 : i32
    %c0_i32_1 = arith.constant 0 : i32
    return %c0_i32, %c0_i32_0 : i32, i32
  }
  func.func @transform_7(%arg0: i32) -> (i32, i32, i32) {
    %c0_i32 = arith.constant 0 : i32
    %c0_i32_0 = arith.constant 0 : i32
    %c0_i32_1 = arith.constant 0 : i32
    return %arg0, %c0_i32, %c0_i32_0 : i32, i32, i32
  }
}

</mosaic_0001>

<bundles_post_ra>
// kernel: interact_apply.1
= control target key start
LH: loop header
LB: loop body
LE: loop exit
PB: predicated region body
PF: predicated region fallthrough
CT: control target
= control target key end

     0   :  { %s5207_s26 = smov 0   ;;  %s7451_s0 = inlined_call_operand.vmem [shape: f32[8,256,32], index: 0, kind: input, shape index: {}, may-alias: {0,7}]   ;;  %s7452_s1 = inlined_call_operand.vmem [shape: f32[8,64,32], index: 1, kind: input, shape index: {}]   ;;  %s7453_s2 = inlined_call_operand.vmem [shape: f32[256,64], index: 2, kind: input, shape index: {}]   ;;  %s7454_s3 = inlined_call_operand.vmem [shape: f32[32,32], index: 3, kind: input, shape index: {}]   ;;  %s7455_s4 = inlined_call_operand.vmem [shape: f32[32,32], index: 4, kind: input, shape index: {}]   ;;  %s7456_s5 = inlined_call_operand.vmem [shape: f32[1,32], index: 5, kind: input, shape index: {}]   ;;  %s7457_s6 = inlined_call_operand.<no memory space> [shape: f32[1,1], index: 6, kind: input, shape index: {}]   ;;  %s7458_s7 = inlined_call_operand.vmem [shape: f32[8,256,32], index: 7, kind: output, shape index: {}, may-alias: {0,7}]  }
   0x1   :  { %12 = sst [smem:[#allocation2]] %s7457_s6 }
   0x2 LB: > { %s3768_s27 = sadd.s32 4294967295, %s5162_s26   ;;  %p3772_p0 = scmp.ge.s32.totalorder %s5162_s26, 1  ;;  %s5162_s26 = sphi %s5207_s26, %s18_s26  }
   0x3   : > { %p252_p1 = scmp.lt.s32.totalorder %s5162_s26, 3 }
   0x5   : > { %p253_p2 = pnand %p3772_p0, %p252_p1 }
   0x7   : > { %256 = sbr.rel (%p253_p2) target bundleno = 902 (0x386), region = 48 }
   0xe   : > { %v473_v0 = vld [vmem:[%s7454_s3] sm:$0xff]  ;;  %v474_v1 = vld [vmem:[%s7454_s3 + $0x8] sm:$0xff]  ;;  %v475_v2 = vld [vmem:[%s7454_s3 + $0x10] sm:$0xff]  ;;  %s3773_s10 = sshll.u32 %s3768_s27, 2  ;;  %vm477_vm0 = vcmask 261120   ;;  %vm831_vm1 = vcmask 523264  }
   0xf   : > { %v4916_v3 = vpack.c.bf16 %v474_v1, %v473_v0  ;;  %v476_v4 = vld [vmem:[%s7454_s3 + $0x18] sm:$0xff]  ;;  %p293_p3 = scmp.lt.s32.totalorder %s3773_s10, 7  ;;  %v5302_v38 = vld [vmem:[%s7453_s2] sm:$0xff]  ;;  %v5311_v53 = vld [vmem:[%s7453_s2 + $0x8] sm:$0xff]  ;;  %s3184_s6 = sld [smem:[#allocation2]] }
  0x10   : > { %v4920_v5 = vpack.c.bf16 %v476_v4, %v475_v2  ;;  %4476 = vmatprep.mubr.msk.f32.mxu1 %vm831_vm1, %v5302_v38  ;;  %v5316_v55 = vld [vmem:[%s7453_s2 + $0x10] sm:$0xff]  ;;  %v5325_v58 = vld [vmem:[%s7453_s2 + $0x18] sm:$0xff]  ;;  %v5330_v60 = vld [vmem:[%s7453_s2 + $0x20] sm:$0xff] }
  0x11   : > { %4917 = vmatprep.subr.bf16.mxu0 %v4916_v3  ;;  %s7819_s10 = smov (!%p293_p3, %s3773_s10), 7  ;;  %v5339_v63 = vld [vmem:[%s7453_s2 + $0x28] sm:$0xff]  ;;  %v5344_v1 = vld [vmem:[%s7453_s2 + $0x30] sm:$0xff]  ;;  %v5353_v4 = vld [vmem:[%s7453_s2 + $0x38] sm:$0xff] }
  0x12   : > { %4919 = vmatpush3.bf16.msra.mxu0 %v4916_v3  ;;  %s4074_s13 = sshll.u32 %s7819_s10, 6  ;;  %s4073_s23 = sshll.u32 %s7819_s10, 8 }
  0x13   : > { %4921 = vmatprep.subr.bf16.mxu0 %v4920_v5  ;;  %s5233_s16 = scalar_lea.vmem %s7452_s1, %s4074_s13  ;;  %s5711_s27 = scalar_lea.vmem %s7451_s0, %s4073_s23 }
  0x14   : > { %v441_v6 = vld [vmem:[%s5233_s16] sm:$0xff]  ;;  %v442_v7 = vld [vmem:[%s5233_s16 + $0x8] sm:$0xff]  ;;  %v443_v8 = vld [vmem:[%s5233_s16 + $0x10] sm:$0xff]  ;;  %s6551_s9 = scalar_lea.vmem %s7458_s7, %s4073_s23 }
  0x15   : > { %4412 = vmatprep.mubr.msk.f32.mxu0 %vm477_vm0, %v441_v6  ;;  %v444_v9 = vld [vmem:[%s5233_s16 + $0x18] sm:$0xff]  ;;  %v445_v10 = vld [vmem:[%s5233_s16 + $0x20] sm:$0xff]  ;;  %v446_v11 = vld [vmem:[%s5233_s16 + $0x28] sm:$0xff] }
  0x16   : > { %4923 = vmatpush3.bf16.msra.mxu0 %v4920_v5  ;;  %v447_v12 = vld [vmem:[%s5233_s16 + $0x30] sm:$0xff]  ;;  %v448_v13 = vld [vmem:[%s5233_s16 + $0x38] sm:$0xff]  ;;  %v449_v14 = vld [vmem:[%s5233_s16 + $0x40] sm:$0xff] }
  0x17   : > { %v450_v15 = vld [vmem:[%s5233_s16 + $0x48] sm:$0xff]  ;;  %v451_v16 = vld [vmem:[%s5233_s16 + $0x50] sm:$0xff]  ;;  %v452_v17 = vld [vmem:[%s5233_s16 + $0x58] sm:$0xff] }
  0x18   : > { %v453_v18 = vld [vmem:[%s5233_s16 + $0x60] sm:$0xff]  ;;  %v454_v19 = vld [vmem:[%s5233_s16 + $0x68] sm:$0xff]  ;;  %v455_v20 = vld [vmem:[%s5233_s16 + $0x70] sm:$0xff] }
  0x19   : > { %4413 = vmatmul.mubr.msk.f32.vlgmr.msra.gmra.mrb[0].mxu0 %vm477_vm0, %v442_v7  ;;  %v456_v21 = vld [vmem:[%s5233_s16 + $0x78] sm:$0xff]  ;;  %v457_v22 = vld [vmem:[%s5233_s16 + $0x80] sm:$0xff]  ;;  %v458_v23 = vld [vmem:[%s5233_s16 + $0x88] sm:$0xff] }
  0x1a   : > { %4415 = vmatprep.mubr.msk.f32.mxu0 %vm477_vm0, %v443_v8  ;;  %v459_v24 = vld [vmem:[%s5233_s16 + $0x90] sm:$0xff]  ;;  %v460_v25 = vld [vmem:[%s5233_s16 + $0x98] sm:$0xff]  ;;  %v461_v26 = vld [vmem:[%s5233_s16 + $0xa0] sm:$0xff] }
  0x1b   : > { %v462_v27 = vld [vmem:[%s5233_s16 + $0xa8] sm:$0xff]  ;;  %v463_v28 = vld [vmem:[%s5233_s16 + $0xb0] sm:$0xff]  ;;  %v464_v29 = vld [vmem:[%s5233_s16 + $0xb8] sm:$0xff] }
  0x1c   : > { %v465_v30 = vld [vmem:[%s5233_s16 + $0xc0] sm:$0xff]  ;;  %v466_v31 = vld [vmem:[%s5233_s16 + $0xc8] sm:$0xff]  ;;  %v467_v32 = vld [vmem:[%s5233_s16 + $0xd0] sm:$0xff] }
  0x1d   : > { %4416 = vmatmul.mubr.msk.f32.gmra.mrb[2].mxu0 %vm477_vm0, %v444_v9  ;;  %v468_v33 = vld [vmem:[%s5233_s16 + $0xd8] sm:$0xff]  ;;  %v469_v34 = vld [vmem:[%s5233_s16 + $0xe0] sm:$0xff]  ;;  %v470_v35 = vld [vmem:[%s5233_s16 + $0xe8] sm:$0xff] }
  0x1e   : > { %4418 = vmatprep.mubr.msk.f32.mxu0 %vm477_vm0, %v445_v10  ;;  %v471_v36 = vld [vmem:[%s5233_s16 + $0xf0] sm:$0xff]  ;;  %v472_v37 = vld [vmem:[%s5233_s16 + $0xf8] sm:$0xff]  ;;  %v5358_v6 = vld [vmem:[%s7453_s2 + $0x40] sm:$0xff] }
  0x1f   : > { %v5367_v9 = vld [vmem:[%s7453_s2 + $0x48] sm:$0xff] }
  0x21   : > { %4419 = vmatmul.mubr.msk.f32.gmra.mrb[4].mxu0 %vm477_vm0, %v446_v11  ;;  %v5372_v11 = vld [vmem:[%s7453_s2 + $0x50] sm:$0xff] }
  0x22   : > { %4421 = vmatprep.mubr.msk.f32.mxu0 %vm477_vm0, %v447_v12 }
  0x25   : > { %4422 = vmatmul.mubr.msk.f32.gmra.mrb[6].mxu0 %vm477_vm0, %v448_v13  ;;  %v5383_v13 = vld [vmem:[%s7453_s2 + $0x58] sm:$0xff] }
  0x26   : > { %4424 = vmatprep.mubr.msk.f32.mxu0 %vm477_vm0, %v449_v14 }
  0x29   : > { %4425 = vmatmul.mubr.msk.f32.gmra.mrb[8].mxu0 %vm477_vm0, %v450_v15  ;;  %v5390_v15 = vld [vmem:[%s7453_s2 + $0x60] sm:$0xff] }
  0x2a   : > { %4427 = vmatprep.mubr.msk.f32.mxu0 %vm477_vm0, %v451_v16 }
  0x2d   : > { %4428 = vmatmul.mubr.msk.f32.gmra.mrb[10].mxu0 %vm477_vm0, %v452_v17 }
  0x2e   : > { %4430 = vmatprep.mubr.msk.f32.mxu0 %vm477_vm0, %v453_v18  ;;  %v5403_v18 = vld [vmem:[%s7453_s2 + $0x68] sm:$0xff] }
  0x31   : > { %4431 = vmatmul.mubr.msk.f32.gmra.mrb[12].mxu0 %vm477_vm0, %v454_v19 }
  0x32   : > { %4433 = vmatprep.mubr.msk.f32.mxu0 %vm477_vm0, %v455_v20  ;;  %v5408_v20 = vld [vmem:[%s7453_s2 + $0x70] sm:$0xff] }
  0x35   : > { %4434 = vmatmul.mubr.msk.f32.gmra.mrb[14].mxu0 %vm477_vm0, %v456_v21 }
  0x36   : > { %4436 = vmatprep.mubr.msk.f32.mxu0 %vm477_vm0, %v457_v22 }
  0x39   : > { %4437 = vmatmul.mubr.msk.f32.gmra.mrb[16].mxu0 %vm477_vm0, %v458_v23  ;;  %v5421_v23 = vld [vmem:[%s7453_s2 + $0x78] sm:$0xff] }
  0x3a   : > { %4439 = vmatprep.mubr.msk.f32.mxu0 %vm477_vm0, %v459_v24 }
  0x3d   : > { %4440 = vmatmul.mubr.msk.f32.gmra.mrb[18].mxu0 %vm477_vm0, %v460_v25  ;;  %v5426_v25 = vld [vmem:[%s7453_s2 + $0x80] sm:$0xff] }
  0x3e   : > { %4442 = vmatprep.mubr.msk.f32.mxu0 %vm477_vm0, %v461_v26 }
  0x41   : > { %4443 = vmatmul.mubr.msk.f32.gmra.mrb[20].mxu0 %vm477_vm0, %v462_v27  ;;  %v1828_v27 = vld [vmem:[%s7455_s4] sm:$0xff] }
  0x42   : > { %4445 = vmatprep.mubr.msk.f32.mxu0 %vm477_vm0, %v463_v28  ;;  %v1829_v28 = vld [vmem:[%s7455_s4 + $0x8] sm:$0xff] }
  0x45   : > { %4446 = vmatmul.mubr.msk.f32.gmra.mrb[22].mxu0 %vm477_vm0, %v464_v29 }
  0x46   : > { %4448 = vmatprep.mubr.msk.f32.mxu0 %vm477_vm0, %v465_v30  ;;  %v5445_v30 = vld [vmem:[%s7453_s2 + $0x88] sm:$0xff] }
  0x49   : > { %4449 = vmatmul.mubr.msk.f32.gmra.mrb[24].mxu0 %vm477_vm0, %v466_v31 }
  0x4a   : > { %4451 = vmatprep.mubr.msk.f32.mxu0 %vm477_vm0, %v467_v32  ;;  %v5450_v32 = vld [vmem:[%s7453_s2 + $0x90] sm:$0xff] }
  0x4d   : > { %4452 = vmatmul.mubr.msk.f32.gmra.mrb[26].mxu0 %vm477_vm0, %v468_v33 }
  0x4e   : > { %4454 = vmatprep.mubr.msk.f32.mxu0 %vm477_vm0, %v469_v34  ;;  %v5452_v34 = vpack.c.bf16 %v1829_v28, %v1828_v27  ;;  %v5895_v27 = vld [vmem:[%s5711_s27 + $0x228] sm:$0xff]  ;;  %v325_v28 = vld [vmem:[%s5711_s27 + $0x60] sm:$0xff] }
  0x4f   : > { %7551 = vst [vmem:[#allocation10_spill] sm:$0xff] %v5895_v27 }
  0x51   : > { %4455 = vmatmul.mubr.msk.f32.gmra.mrb[28].mxu0 %vm477_vm0, %v470_v35 }
  0x52   : > { %4457 = vmatprep.mubr.msk.f32.mxu0 %vm477_vm0, %v471_v36  ;;  %v5465_v36 = vld [vmem:[%s7453_s2 + $0x98] sm:$0xff] }
  0x55   : > { %4458 = vmatmul.mubr.msk.f32.gmra.mrb[30].mxu0 %vm477_vm0, %v472_v37 }
  0x56   : > { %4540 = vmatprep.mubr.msk.f32.mxu0 %vm831_vm1, %v5302_v38 }
  0xec   : > { %v4414_v39 = vpop.f32.mrb[0].mxu0 }
  0xed   : > { %v640_v40 = vpop.f32.mrb[1].mxu0 }
  0xee   : > { %v4924_v41 = vpack.c.bf16 %v4414_v39, %v640_v40  ;;  %v5470_v39 = vld [vmem:[%s7453_s2 + $0xa0] sm:$0xff] }
  0xf0   : > { %v4417_v42 = vpop.f32.mrb[2].mxu0  ;;  %4925 = vmatprep.subr.bf16.mxu1 %v4924_v41 }
  0xf1   : > { %v650_v43 = vpop.f32.mrb[3].mxu0  ;;  %4927 = vmatpush3.bf16.msra.mxu1 %v4924_v41 }
  0xf2   : > { %v4928_v44 = vpack.c.bf16 %v4417_v42, %v650_v43  ;;  %v5484_v42 = vld [vmem:[%s7453_s2 + $0xa8] sm:$0xff] }
  0xf4   : > { %v4420_v45 = vpop.f32.mrb[4].mxu0  ;;  %4929 = vmatprep.subr.bf16.mxu1 %v4928_v44 }
  0xf5   : > { %v660_v46 = vpop.f32.mrb[5].mxu0  ;;  %4931 = vmatpush3.bf16.msra.mxu1 %v4928_v44  ;;  %v5489_v44 = vld [vmem:[%s7453_s2 + $0xb0] sm:$0xff] }
  0xf6   : > { %v4932_v47 = vpack.c.bf16 %v4420_v45, %v660_v46 }
  0xf8   : > { %v4423_v48 = vpop.f32.mrb[6].mxu0  ;;  %4933 = vmatprep.subr.bf16.mxu1 %v4932_v47 }
  0xf9   : > { %v670_v49 = vpop.f32.mrb[7].mxu0  ;;  %4935 = vmatpush3.bf16.msra.mxu1 %v4932_v47  ;;  %v5502_v47 = vld [vmem:[%s7453_s2 + $0xb8] sm:$0xff] }
  0xfa   : > { %v4936_v50 = vpack.c.bf16 %v4423_v48, %v670_v49  ;;  %v5507_v49 = vld [vmem:[%s7453_s2 + $0xc0] sm:$0xff] }
  0xfc   : > { %v4426_v51 = vpop.f32.mrb[8].mxu0  ;;  %4937 = vmatprep.subr.bf16.mxu1 %v4936_v50 }
  0xfd   : > { %v680_v52 = vpop.f32.mrb[9].mxu0  ;;  %4939 = vmatpush3.bf16.msra.mxu1 %v4936_v50 }
  0xfe   : > { %v4940_v54 = vpack.c.bf16 %v4426_v51, %v680_v52  ;;  %v5520_v51 = vld [vmem:[%s7453_s2 + $0xc8] sm:$0xff]  ;;  %v5525_v52 = vld [vmem:[%s7453_s2 + $0xd0] sm:$0xff] }
 0x100   : > { %v4429_v56 = vpop.f32.mrb[10].mxu0  ;;  %4477 = vmatmul.mubr.msk.f32.vlgmr.msra.gmra.mrb[0].mxu1 %vm831_vm1, %v5311_v53  ;;  %4941 = vmatprep.subr.bf16.mxu0 %v4940_v54 }
 0x101   : > { %v690_v57 = vpop.f32.mrb[11].mxu0  ;;  %4943 = vmatpush3.bf16.msra.mxu0 %v4940_v54  ;;  %4479 = vmatprep.mubr.msk.f32.mxu1 %vm831_vm1, %v5316_v55  ;;  %v5538_v54 = vld [vmem:[%s7453_s2 + $0xd8] sm:$0xff] }
 0x102   : > { %v4944_v59 = vpack.c.bf16 %v4429_v56, %v690_v57  ;;  %v5543_v56 = vld [vmem:[%s7453_s2 + $0xe0] sm:$0xff]  ;;  %v5557_v57 = vld [vmem:[%s7453_s2 + $0xe8] sm:$0xff] }
 0x104   : > { %v4432_v61 = vpop.f32.mrb[12].mxu0  ;;  %4480 = vmatmul.mubr.msk.f32.gmra.mrb[2].mxu1 %vm831_vm1, %v5325_v58  ;;  %4945 = vmatprep.subr.bf16.mxu0 %v4944_v59 }
 0x105   : > { %v700_v62 = vpop.f32.mrb[13].mxu0  ;;  %4947 = vmatpush3.bf16.msra.mxu0 %v4944_v59  ;;  %4482 = vmatprep.mubr.msk.f32.mxu1 %vm831_vm1, %v5330_v60  ;;  %v5562_v59 = vld [vmem:[%s7453_s2 + $0xf0] sm:$0xff] }
 0x106   : > { %v4948_v0 = vpack.c.bf16 %v4432_v61, %v700_v62  ;;  %v5575_v61 = vld [vmem:[%s7453_s2 + $0xf8] sm:$0xff]  ;;  %v1830_v62 = vld [vmem:[%s7455_s4 + $0x10] sm:$0xff] }
 0x108   : > { %v4435_v2 = vpop.f32.mrb[14].mxu0  ;;  %4483 = vmatmul.mubr.msk.f32.gmra.mrb[4].mxu1 %vm831_vm1, %v5339_v63  ;;  %4949 = vmatprep.subr.bf16.mxu0 %v4948_v0 }
 0x109   : > { %v710_v3 = vpop.f32.mrb[15].mxu0  ;;  %4951 = vmatpush3.bf16.msra.mxu0 %v4948_v0  ;;  %4485 = vmatprep.mubr.msk.f32.mxu1 %vm831_vm1, %v5344_v1  ;;  %v1831_v0 = vld [vmem:[%s7455_s4 + $0x18] sm:$0xff] }
 0x10a   : > { %v4952_v5 = vpack.c.bf16 %v4435_v2, %v710_v3  ;;  %v4992_v2 = vpack.c.bf16 %v1831_v0, %v1830_v62  ;;  %v5775_v3 = vld [vmem:[%s5711_s27 + $0x1c8] sm:$0xff]  ;;  %v6001_v62 = vld [vmem:[%s5711_s27 + $0x2a0] sm:$0xff]  ;;  %v340_v0 = vld [vmem:[%s5711_s27 + $0xd8] sm:$0xff] }
 0x10b   : > { %7567 = vst [vmem:[#allocation26_spill] sm:$0xff] %v6001_v62 }
 0x10c   : > { %v4438_v7 = vpop.f32.mrb[16].mxu0  ;;  %4486 = vmatmul.mubr.msk.f32.gmra.mrb[6].mxu1 %vm831_vm1, %v5353_v4  ;;  %4953 = vmatprep.subr.bf16.mxu0 %v4952_v5 }
 0x10d   : > { %v720_v8 = vpop.f32.mrb[17].mxu0  ;;  %4955 = vmatpush3.bf16.msra.mxu0 %v4952_v5  ;;  %4488 = vmatprep.mubr.msk.f32.mxu1 %vm831_vm1, %v5358_v6  ;;  %v5781_v5 = vld [vmem:[%s5711_s27 + $0x1d0] sm:$0xff] }
 0x10e   : > { %v4956_v10 = vpack.c.bf16 %v4438_v7, %v720_v8  ;;  %v5795_v7 = vld [vmem:[%s5711_s27 + $0x1d8] sm:$0xff]  ;;  %v5798_v8 = vld [vmem:[%s5711_s27 + $0x10] sm:$0xff] }
 0x110   : > { %4489 = vmatmul.mubr.msk.f32.gmra.mrb[8].mxu1 %vm831_vm1, %v5367_v9  ;;  %4541 = vmatmul.mubr.msk.f32.vlgmr.msra.gmra.mrb[32].mxu0 %vm831_vm1, %v5311_v53  ;;  %v4441_v12 = vpop.f32.mrb[18].mxu0 }
 0x111   : > { %4957 = vmatprep.subr.bf16.mxu1 %v4956_v10  ;;  %4491 = vmatprep.mubr.msk.f32.mxu1 %vm831_vm1, %v5372_v11  ;;  %v730_v14 = vpop.f32.mrb[19].mxu0 }
 0x112   : > { %4959 = vmatpush3.bf16.msra.mxu1 %v4956_v10  ;;  %4543 = vmatprep.mubr.msk.f32.mxu0 %vm831_vm1, %v5316_v55  ;;  %v4960_v16 = vpack.c.bf16 %v4441_v12, %v730_v14  ;;  %v5812_v10 = vld [vmem:[%s5711_s27 + $0x18] sm:$0xff]  ;;  %v5818_v12 = vld [vmem:[%s5711_s27 + $0x20] sm:$0xff]  ;;  %v5832_v14 = vld [vmem:[%s5711_s27 + $0x28] sm:$0xff] }
 0x114   : > { %4492 = vmatmul.mubr.msk.f32.gmra.mrb[10].mxu1 %vm831_vm1, %v5383_v13  ;;  %4544 = vmatmul.mubr.msk.f32.gmra.mrb[34].mxu0 %vm831_vm1, %v5325_v58  ;;  %v4444_v17 = vpop.f32.mrb[20].mxu0 }
 0x115   : > { %4494 = vmatprep.mubr.msk.f32.mxu1 %vm831_vm1, %v5390_v15  ;;  %4546 = vmatprep.mubr.msk.f32.mxu0 %vm831_vm1, %v5330_v60  ;;  %v740_v19 = vpop.f32.mrb[21].mxu0 }
 0x116   : > { %4961 = vmatprep.subr.bf16.mxu1 %v4960_v16  ;;  %v4964_v21 = vpack.c.bf16 %v4444_v17, %v740_v19  ;;  %v5841_v17 = vld [vmem:[%s5711_s27 + $0x200] sm:$0xff]  ;;  %v5855_v19 = vld [vmem:[%s5711_s27 + $0x208] sm:$0xff] }
 0x117   : > { %4963 = vmatpush3.bf16.msra.mxu1 %v4960_v16  ;;  %v5838_v16 = vld [vmem:[%s5711_s27 + $0x30] sm:$0xff] }
 0x118   : > { %4495 = vmatmul.mubr.msk.f32.gmra.mrb[12].mxu1 %vm831_vm1, %v5403_v18  ;;  %4547 = vmatmul.mubr.msk.f32.gmra.mrb[36].mxu0 %vm831_vm1, %v5339_v63  ;;  %v4447_v22 = vpop.f32.mrb[22].mxu0 }
 0x119   : > { %4497 = vmatprep.mubr.msk.f32.mxu1 %vm831_vm1, %v5408_v20  ;;  %4549 = vmatprep.mubr.msk.f32.mxu0 %vm831_vm1, %v5344_v1  ;;  %v750_v24 = vpop.f32.mrb[23].mxu0 }
 0x11a   : > { %4965 = vmatprep.subr.bf16.mxu1 %v4964_v21  ;;  %v4968_v26 = vpack.c.bf16 %v4447_v22, %v750_v24  ;;  %v5872_v22 = vld [vmem:[%s5711_s27 + $0x48] sm:$0xff]  ;;  %v5878_v24 = vld [vmem:[%s5711_s27 + $0x50] sm:$0xff] }
 0x11b   : > { %4967 = vmatpush3.bf16.msra.mxu1 %v4964_v21  ;;  %v5861_v21 = vld [vmem:[%s5711_s27 + $0x210] sm:$0xff]  ;;  %7546 = vst [vmem:[#allocation5_spill] sm:$0xff] %v5872_v22  ;;  %7548 = vst [vmem:[#allocation7_spill] sm:$0xff] %v5878_v24 }
 0x11c   : > { %4498 = vmatmul.mubr.msk.f32.gmra.mrb[14].mxu1 %vm831_vm1, %v5421_v23  ;;  %4550 = vmatmul.mubr.msk.f32.gmra.mrb[38].mxu0 %vm831_vm1, %v5353_v4  ;;  %v4450_v29 = vpop.f32.mrb[24].mxu0  ;;  %7545 = vst [vmem:[#allocation4_spill] sm:$0xff] %v5861_v21 }
 0x11d   : > { %4500 = vmatprep.mubr.msk.f32.mxu1 %vm831_vm1, %v5426_v25  ;;  %4552 = vmatprep.mubr.msk.f32.mxu0 %vm831_vm1, %v5358_v6  ;;  %v760_v31 = vpop.f32.mrb[25].mxu0 }
 0x11e   : > { %4969 = vmatprep.subr.bf16.mxu1 %v4968_v26  ;;  %v4972_v33 = vpack.c.bf16 %v4450_v29, %v760_v31  ;;  %v5899_v29 = vld [vmem:[%s5711_s27 + $0x230] sm:$0xff]  ;;  %v5912_v31 = vld [vmem:[%s5711_s27 + $0x238] sm:$0xff] }
 0x11f   : > { %4971 = vmatpush3.bf16.msra.mxu1 %v4968_v26  ;;  %v5892_v26 = vld [vmem:[%s5711_s27 + $0x58] sm:$0xff]  ;;  %7552 = vst [vmem:[#allocation11_spill] sm:$0xff] %v5899_v29  ;;  %7554 = vst [vmem:[#allocation13_spill] sm:$0xff] %v5912_v31 }
 0x120   : > { %4501 = vmatmul.mubr.msk.f32.gmra.mrb[16].mxu1 %vm831_vm1, %v5445_v30  ;;  %4553 = vmatmul.mubr.msk.f32.gmra.mrb[40].mxu0 %vm831_vm1, %v5367_v9  ;;  %v4453_v35 = vpop.f32.mrb[26].mxu0  ;;  %7550 = vst [vmem:[#allocation9_spill] sm:$0xff] %v5892_v26 }
 0x121   : > { %4503 = vmatprep.mubr.msk.f32.mxu1 %vm831_vm1, %v5450_v32  ;;  %4555 = vmatprep.mubr.msk.f32.mxu0 %vm831_vm1, %v5372_v11  ;;  %v770_v37 = vpop.f32.mrb[27].mxu0 }
 0x122   : > { %4973 = vmatprep.subr.bf16.mxu0 %v4972_v33  ;;  %v4976_v40 = vpack.c.bf16 %v4453_v35, %v770_v37  ;;  %4996 = vmatprep.subr.bf16.mxu1 %v5452_v34  ;;  %v5927_v35 = vld [vmem:[%s5711_s27 + $0x248] sm:$0xff]  ;;  %v5931_v37 = vld [vmem:[%s5711_s27 + $0x250] sm:$0xff] }
 0x123   : > { %4975 = vmatpush3.bf16.msra.mxu0 %v4972_v33  ;;  %v5916_v33 = vld [vmem:[%s5711_s27 + $0x240] sm:$0xff]  ;;  %7556 = vst [vmem:[#allocation15_spill] sm:$0xff] %v5927_v35  ;;  %7557 = vst [vmem:[#allocation16_spill] sm:$0xff] %v5931_v37 }
 0x124   : > { %4504 = vmatmul.mubr.msk.f32.gmra.mrb[18].mxu1 %vm831_vm1, %v5465_v36  ;;  %4556 = vmatmul.mubr.msk.f32.gmra.mrb[42].mxu0 %vm831_vm1, %v5383_v13  ;;  %v4456_v41 = vpop.f32.mrb[28].mxu0  ;;  %7555 = vst [vmem:[#allocation14_spill] sm:$0xff] %v5916_v33 }
 0x125   : > { %4506 = vmatprep.mubr.msk.f32.mxu1 %vm831_vm1, %v5470_v39  ;;  %4558 = vmatprep.mubr.msk.f32.mxu0 %vm831_vm1, %v5390_v15  ;;  %v780_v43 = vpop.f32.mrb[29].mxu0 }
 0x126   : > { %4977 = vmatprep.subr.bf16.mxu0 %v4976_v40  ;;  %v4980_v45 = vpack.c.bf16 %v4456_v41, %v780_v43  ;;  %v331_v41 = vld [vmem:[%s5711_s27 + $0x90] sm:$0xff]  ;;  %v332_v43 = vld [vmem:[%s5711_s27 + $0x98] sm:$0xff] }
 0x127   : > { %4979 = vmatpush3.bf16.msra.mxu0 %v4976_v40  ;;  %v5941_v40 = vld [vmem:[%s5711_s27 + $0x258] sm:$0xff] }
 0x128   : > { %4507 = vmatmul.mubr.msk.f32.gmra.mrb[20].mxu1 %vm831_vm1, %v5484_v42  ;;  %4559 = vmatmul.mubr.msk.f32.gmra.mrb[44].mxu0 %vm831_vm1, %v5403_v18  ;;  %v4459_v46 = vpop.f32.mrb[30].mxu0  ;;  %7558 = vst [vmem:[#allocation17_spill] sm:$0xff] %v5941_v40 }
 0x129   : > { %4509 = vmatprep.mubr.msk.f32.mxu1 %vm831_vm1, %v5489_v44  ;;  %4561 = vmatprep.mubr.msk.f32.mxu0 %vm831_vm1, %v5408_v20  ;;  %v790_v48 = vpop.f32.mrb[31].mxu0 }
 0x12a   : > { %4981 = vmatprep.subr.bf16.mxu0 %v4980_v45  ;;  %v4984_v50 = vpack.c.bf16 %v4459_v46, %v790_v48  ;;  %v5959_v46 = vld [vmem:[%s5711_s27 + $0x270] sm:$0xff]  ;;  %v5969_v48 = vld [vmem:[%s5711_s27 + $0x278] sm:$0xff] }
 0x12b   : > { %4983 = vmatpush3.bf16.msra.mxu0 %v4980_v45  ;;  %v333_v45 = vld [vmem:[%s5711_s27 + $0xa0] sm:$0xff]  ;;  %7561 = vst [vmem:[#allocation20_spill] sm:$0xff] %v5959_v46  ;;  %7562 = vst [vmem:[#allocation21_spill] sm:$0xff] %v5969_v48 }
 0x12c   : > { %4510 = vmatmul.mubr.msk.f32.gmra.mrb[22].mxu1 %vm831_vm1, %v5502_v47  ;;  %4562 = vmatmul.mubr.msk.f32.gmra.mrb[46].mxu0 %vm831_vm1, %v5421_v23 }
 0x12d   : > { %4512 = vmatprep.mubr.msk.f32.mxu1 %vm831_vm1, %v5507_v49  ;;  %4564 = vmatprep.mubr.msk.f32.mxu0 %vm831_vm1, %v5426_v25 }
 0x12e   : > { %4985 = vmatprep.subr.bf16.mxu0 %v4984_v50 }
 0x12f   : > { %4987 = vmatpush3.bf16.msra.mxu0 %v4984_v50  ;;  %v5973_v50 = vld [vmem:[%s5711_s27 + $0x280] sm:$0xff] }
 0x130   : > { %4513 = vmatmul.mubr.msk.f32.gmra.mrb[24].mxu1 %vm831_vm1, %v5520_v51  ;;  %4565 = vmatmul.mubr.msk.f32.gmra.mrb[48].mxu0 %vm831_vm1, %v5445_v30  ;;  %7563 = vst [vmem:[#allocation22_spill] sm:$0xff] %v5973_v50 }
 0x131   : > { %4515 = vmatprep.mubr.msk.f32.mxu1 %vm831_vm1, %v5525_v52  ;;  %4567 = vmatprep.mubr.msk.f32.mxu0 %vm831_vm1, %v5450_v32 }
 0x132   : > { %4989 = vmatprep.subr.bf16.mxu0 %v5452_v34 }
 0x134   : > { %4516 = vmatmul.mubr.msk.f32.gmra.mrb[26].mxu1 %vm831_vm1, %v5538_v54  ;;  %4568 = vmatmul.mubr.msk.f32.gmra.mrb[50].mxu0 %vm831_vm1, %v5465_v36 }
 0x135   : > { %4518 = vmatprep.mubr.msk.f32.mxu1 %vm831_vm1, %v5543_v56  ;;  %4570 = vmatprep.mubr.msk.f32.mxu0 %vm831_vm1, %v5470_v39 }
 0x138   : > { %4519 = vmatmul.mubr.msk.f32.gmra.mrb[28].mxu1 %vm831_vm1, %v5557_v57  ;;  %4571 = vmatmul.mubr.msk.f32.gmra.mrb[52].mxu0 %vm831_vm1, %v5484_v42 }
 0x139   : > { %4521 = vmatprep.mubr.msk.f32.mxu1 %vm831_vm1, %v5562_v59  ;;  %4573 = vmatprep.mubr.msk.f32.mxu0 %vm831_vm1, %v5489_v44 }
 0x13c   : > { %4522 = vmatmul.mubr.msk.f32.gmra.mrb[30].mxu1 %vm831_vm1, %v5575_v61  ;;  %4574 = vmatmul.mubr.msk.f32.gmra.mrb[54].mxu0 %vm831_vm1, %v5502_v47 }
 0x13d   : > { %4576 = vmatprep.mubr.msk.f32.mxu0 %vm831_vm1, %v5507_v49  ;;  %4604 = vmatprep.mubr.msk.f32.mxu1 %vm831_vm1, %v5302_v38 }
 0x140   : > { %4577 = vmatmul.mubr.msk.f32.gmra.mrb[56].mxu0 %vm831_vm1, %v5520_v51  ;;  %4605 = vmatmul.mubr.msk.f32.vlgmr.msra.gmra.mrb[32].mxu1 %vm831_vm1, %v5311_v53 }
 0x141   : > { %4579 = vmatprep.mubr.msk.f32.mxu0 %vm831_vm1, %v5525_v52  ;;  %4607 = vmatprep.mubr.msk.f32.mxu1 %vm831_vm1, %v5316_v55 }
 0x142   : > { %4998 = vmatpush3.bf16.msra.mxu1 %v5452_v34 }
 0x143   : > { %4997 = vmatprep.subr.bf16.mxu1 %v4992_v2 }
 0x144   : > { %4580 = vmatmul.mubr.msk.f32.gmra.mrb[58].mxu0 %vm831_vm1, %v5538_v54  ;;  %4608 = vmatmul.mubr.msk.f32.gmra.mrb[34].mxu1 %vm831_vm1, %v5325_v58 }
 0x145   : > { %4582 = vmatprep.mubr.msk.f32.mxu0 %vm831_vm1, %v5543_v56  ;;  %4610 = vmatprep.mubr.msk.f32.mxu1 %vm831_vm1, %v5330_v60 }
 0x146   : > { %4999 = vmatpush3.bf16.msra.mxu1 %v4992_v2 }
 0x148   : > { %4583 = vmatmul.mubr.msk.f32.gmra.mrb[60].mxu0 %vm831_vm1, %v5557_v57  ;;  %4611 = vmatmul.mubr.msk.f32.gmra.mrb[36].mxu1 %vm831_vm1, %v5339_v63 }
 0x149   : > { %4585 = vmatprep.mubr.msk.f32.mxu0 %vm831_vm1, %v5562_v59  ;;  %4613 = vmatprep.mubr.msk.f32.mxu1 %vm831_vm1, %v5344_v1 }
 0x14c   : > { %4586 = vmatmul.mubr.msk.f32.gmra.mrb[62].mxu0 %vm831_vm1, %v5575_v61  ;;  %4614 = vmatmul.mubr.msk.f32.gmra.mrb[38].mxu1 %vm831_vm1, %v5353_v4 }
 0x14d   : > { %4616 = vmatprep.mubr.msk.f32.mxu1 %vm831_vm1, %v5358_v6  ;;  %4668 = vmatprep.mubr.msk.f32.mxu0 %vm831_vm1, %v5302_v38  ;;  %v5722_v38 = vld [vmem:[%s5711_s27 + $0x190] sm:$0xff] }
 0x150   : > { %4617 = vmatmul.mubr.msk.f32.gmra.mrb[40].mxu1 %vm831_vm1, %v5367_v9  ;;  %4669 = vmatmul.mubr.msk.f32.vlgmr.msra.gmra.mrb[64].mxu0 %vm831_vm1, %v5311_v53  ;;  %v5733_v53 = vld [vmem:[%s5711_s27 + $0x198] sm:$0xff] }
 0x151   : > { %4619 = vmatprep.mubr.msk.f32.mxu1 %vm831_vm1, %v5372_v11  ;;  %4671 = vmatprep.mubr.msk.f32.mxu0 %vm831_vm1, %v5316_v55  ;;  %v5736_v55 = vld [vmem:[%s5711_s27 + $0x1a0] sm:$0xff] }
 0x152   : > { %4991 = vmatpush3.bf16.msra.mxu0 %v5452_v34  ;;  %v328_v34 = vld [vmem:[%s5711_s27 + $0x78] sm:$0xff] }
 0x153   : > { %4993 = vmatprep.subr.bf16.mxu0 %v4992_v2 }
 0x154   : > { %4620 = vmatmul.mubr.msk.f32.gmra.mrb[42].mxu1 %vm831_vm1, %v5383_v13  ;;  %4672 = vmatmul.mubr.msk.f32.gmra.mrb[66].mxu0 %vm831_vm1, %v5325_v58  ;;  %v5747_v58 = vld [vmem:[%s5711_s27 + $0x1a8] sm:$0xff] }
 0x155   : > { %4622 = vmatprep.mubr.msk.f32.mxu1 %vm831_vm1, %v5390_v15  ;;  %4674 = vmatprep.mubr.msk.f32.mxu0 %vm831_vm1, %v5330_v60  ;;  %v5750_v60 = vld [vmem:[%s5711_s27 + $0x1b0] sm:$0xff] }
 0x156   : > { %4995 = vmatpush3.bf16.msra.mxu0 %v4992_v2  ;;  %v6011_v2 = vld [vmem:[%s5711_s27 + $0x2a8] sm:$0xff] }
 0x157   : > { %7568 = vst [vmem:[#allocation27_spill] sm:$0xff] %v6011_v2 }
 0x158   : > { %4623 = vmatmul.mubr.msk.f32.gmra.mrb[44].mxu1 %vm831_vm1, %v5403_v18  ;;  %4675 = vmatmul.mubr.msk.f32.gmra.mrb[68].mxu0 %vm831_vm1, %v5339_v63  ;;  %v5761_v63 = vld [vmem:[%s5711_s27 + $0x1b8] sm:$0xff] }
 0x159   : > { %4625 = vmatprep.mubr.msk.f32.mxu1 %vm831_vm1, %v5408_v20  ;;  %4677 = vmatprep.mubr.msk.f32.mxu0 %vm831_vm1, %v5344_v1  ;;  %v5764_v1 = vld [vmem:[%s5711_s27 + $0x1c0] sm:$0xff] }
 0x15c   : > { %4626 = vmatmul.mubr.msk.f32.gmra.mrb[46].mxu1 %vm831_vm1, %v5421_v23  ;;  %4678 = vmatmul.mubr.msk.f32.gmra.mrb[70].mxu0 %vm831_vm1, %v5353_v4  ;;  %v5778_v4 = vld [vmem:[%s5711_s27] sm:$0xff] }
 0x15d   : > { %4628 = vmatprep.mubr.msk.f32.mxu1 %vm831_vm1, %v5426_v25  ;;  %4680 = vmatprep.mubr.msk.f32.mxu0 %vm831_vm1, %v5358_v6  ;;  %v5792_v6 = vld [vmem:[%s5711_s27 + $0x8] sm:$0xff] }
 0x160   : > { %4629 = vmatmul.mubr.msk.f32.gmra.mrb[48].mxu1 %vm831_vm1, %v5445_v30  ;;  %4681 = vmatmul.mubr.msk.f32.gmra.mrb[72].mxu0 %vm831_vm1, %v5367_v9  ;;  %v5801_v9 = vld [vmem:[%s5711_s27 + $0x1e0] sm:$0xff] }
 0x161   : > { %4631 = vmatprep.mubr.msk.f32.mxu1 %vm831_vm1, %v5450_v32  ;;  %4683 = vmatprep.mubr.msk.f32.mxu0 %vm831_vm1, %v5372_v11  ;;  %v5815_v11 = vld [vmem:[%s5711_s27 + $0x1e8] sm:$0xff] }
 0x164   : > { %4632 = vmatmul.mubr.msk.f32.gmra.mrb[50].mxu1 %vm831_vm1, %v5465_v36  ;;  %4684 = vmatmul.mubr.msk.f32.gmra.mrb[74].mxu0 %vm831_vm1, %v5383_v13  ;;  %v5821_v13 = vld [vmem:[%s5711_s27 + $0x1f0] sm:$0xff] }
 0x165   : > { %4634 = vmatprep.mubr.msk.f32.mxu1 %vm831_vm1, %v5470_v39  ;;  %4686 = vmatprep.mubr.msk.f32.mxu0 %vm831_vm1, %v5390_v15  ;;  %v5835_v15 = vld [vmem:[%s5711_s27 + $0x1f8] sm:$0xff] }
 0x168   : > { %4635 = vmatmul.mubr.msk.f32.gmra.mrb[52].mxu1 %vm831_vm1, %v5484_v42  ;;  %4687 = vmatmul.mubr.msk.f32.gmra.mrb[76].mxu0 %vm831_vm1, %v5403_v18  ;;  %v5852_v18 = vld [vmem:[%s5711_s27 + $0x38] sm:$0xff] }
 0x169   : > { %4637 = vmatprep.mubr.msk.f32.mxu1 %vm831_vm1, %v5489_v44  ;;  %4689 = vmatprep.mubr.msk.f32.mxu0 %vm831_vm1, %v5408_v20  ;;  %v5858_v20 = vld [vmem:[%s5711_s27 + $0x40] sm:$0xff] }
 0x16a   : > { %7544 = vst [vmem:[#allocation3_spill] sm:$0xff] %v5858_v20 }
 0x16c   : > { %4638 = vmatmul.mubr.msk.f32.gmra.mrb[54].mxu1 %vm831_vm1, %v5502_v47  ;;  %4690 = vmatmul.mubr.msk.f32.gmra.mrb[78].mxu0 %vm831_vm1, %v5421_v23  ;;  %v5875_v23 = vld [vmem:[%s5711_s27 + $0x218] sm:$0xff] }
 0x16d   : > { %4640 = vmatprep.mubr.msk.f32.mxu1 %vm831_vm1, %v5507_v49  ;;  %4692 = vmatprep.mubr.msk.f32.mxu0 %vm831_vm1, %v5426_v25  ;;  %7547 = vst [vmem:[#allocation6_spill] sm:$0xff] %v5875_v23  ;;  %v5881_v25 = vld [vmem:[%s5711_s27 + $0x220] sm:$0xff] }
 0x16e   : > { %7549 = vst [vmem:[#allocation8_spill] sm:$0xff] %v5881_v25 }
 0x170   : > { %4641 = vmatmul.mubr.msk.f32.gmra.mrb[56].mxu1 %vm831_vm1, %v5520_v51  ;;  %4693 = vmatmul.mubr.msk.f32.gmra.mrb[80].mxu0 %vm831_vm1, %v5445_v30  ;;  %v5909_v30 = vld [vmem:[%s5711_s27 + $0x68] sm:$0xff] }
 0x171   : > { %4643 = vmatprep.mubr.msk.f32.mxu1 %vm831_vm1, %v5525_v52  ;;  %4695 = vmatprep.mubr.msk.f32.mxu0 %vm831_vm1, %v5450_v32  ;;  %7553 = vst [vmem:[#allocation12_spill] sm:$0xff] %v5909_v30  ;;  %v327_v32 = vld [vmem:[%s5711_s27 + $0x70] sm:$0xff] }
 0x174   : > { %4644 = vmatmul.mubr.msk.f32.gmra.mrb[58].mxu1 %vm831_vm1, %v5538_v54  ;;  %4696 = vmatmul.mubr.msk.f32.gmra.mrb[82].mxu0 %vm831_vm1, %v5465_v36  ;;  %v329_v36 = vld [vmem:[%s5711_s27 + $0x80] sm:$0xff] }
 0x175   : > { %4646 = vmatprep.mubr.msk.f32.mxu1 %vm831_vm1, %v5543_v56  ;;  %4698 = vmatprep.mubr.msk.f32.mxu0 %vm831_vm1, %v5470_v39  ;;  %v330_v39 = vld [vmem:[%s5711_s27 + $0x88] sm:$0xff] }
 0x178   : > { %4647 = vmatmul.mubr.msk.f32.gmra.mrb[60].mxu1 %vm831_vm1, %v5557_v57  ;;  %4699 = vmatmul.mubr.msk.f32.gmra.mrb[84].mxu0 %vm831_vm1, %v5484_v42  ;;  %v5945_v42 = vld [vmem:[%s5711_s27 + $0x260] sm:$0xff] }
 0x179   : > { %4649 = vmatprep.mubr.msk.f32.mxu1 %vm831_vm1, %v5562_v59  ;;  %4701 = vmatprep.mubr.msk.f32.mxu0 %vm831_vm1, %v5489_v44  ;;  %7559 = vst [vmem:[#allocation18_spill] sm:$0xff] %v5945_v42  ;;  %v5955_v44 = vld [vmem:[%s5711_s27 + $0x268] sm:$0xff] }
 0x17a   : > { %7560 = vst [vmem:[#allocation19_spill] sm:$0xff] %v5955_v44 }
 0x17c   : > { %4650 = vmatmul.mubr.msk.f32.gmra.mrb[62].mxu1 %vm831_vm1, %v5575_v61  ;;  %4702 = vmatmul.mubr.msk.f32.gmra.mrb[86].mxu0 %vm831_vm1, %v5502_v47  ;;  %v334_v47 = vld [vmem:[%s5711_s27 + $0xa8] sm:$0xff] }
 0x17d   : > { %4704 = vmatprep.mubr.msk.f32.mxu0 %vm831_vm1, %v5507_v49  ;;  %4799 = vmatprep.mubr.msk.f32.mxu1 %vm477_vm0, %v5722_v38  ;;  %v335_v49 = vld [vmem:[%s5711_s27 + $0xb0] sm:$0xff] }
 0x180   : > { %4705 = vmatmul.mubr.msk.f32.gmra.mrb[88].mxu0 %vm831_vm1, %v5520_v51  ;;  %4800 = vmatmul.mubr.msk.f32.vlgmr.msra.gmra.mrb[64].mxu1 %vm477_vm0, %v5733_v53  ;;  %v336_v51 = vld [vmem:[%s5711_s27 + $0xb8] sm:$0xff] }
 0x181   : > { %4707 = vmatprep.mubr.msk.f32.mxu0 %vm831_vm1, %v5525_v52  ;;  %4802 = vmatprep.mubr.msk.f32.mxu1 %vm477_vm0, %v5736_v55  ;;  %v5983_v52 = vld [vmem:[%s5711_s27 + $0x288] sm:$0xff] }
 0x182   : > { %7564 = vst [vmem:[#allocation23_spill] sm:$0xff] %v5983_v52 }
 0x184   : > { %4708 = vmatmul.mubr.msk.f32.gmra.mrb[90].mxu0 %vm831_vm1, %v5538_v54  ;;  %4803 = vmatmul.mubr.msk.f32.gmra.mrb[66].mxu1 %vm477_vm0, %v5747_v58  ;;  %v337_v54 = vld [vmem:[%s5711_s27 + $0xc0] sm:$0xff] }
 0x185   : > { %4710 = vmatprep.mubr.msk.f32.mxu0 %vm831_vm1, %v5543_v56  ;;  %4805 = vmatprep.mubr.msk.f32.mxu1 %vm477_vm0, %v5750_v60  ;;  %v5987_v56 = vld [vmem:[%s5711_s27 + $0x290] sm:$0xff] }
 0x186   : > { %7565 = vst [vmem:[#allocation24_spill] sm:$0xff] %v5987_v56 }
 0x188   : > { %4711 = vmatmul.mubr.msk.f32.gmra.mrb[92].mxu0 %vm831_vm1, %v5557_v57  ;;  %4806 = vmatmul.mubr.msk.f32.gmra.mrb[68].mxu1 %vm477_vm0, %v5761_v63  ;;  %v338_v57 = vld [vmem:[%s5711_s27 + $0xc8] sm:$0xff] }
 0x189   : > { %4713 = vmatprep.mubr.msk.f32.mxu0 %vm831_vm1, %v5562_v59  ;;  %4808 = vmatprep.mubr.msk.f32.mxu1 %vm477_vm0, %v5764_v1  ;;  %v5997_v59 = vld [vmem:[%s5711_s27 + $0x298] sm:$0xff] }
 0x18a   : > { %7566 = vst [vmem:[#allocation25_spill] sm:$0xff] %v5997_v59 }
 0x18c   : > { %4714 = vmatmul.mubr.msk.f32.gmra.mrb[94].mxu0 %vm831_vm1, %v5575_v61  ;;  %4809 = vmatmul.mubr.msk.f32.gmra.mrb[70].mxu1 %vm477_vm0, %v5775_v3  ;;  %v339_v61 = vld [vmem:[%s5711_s27 + $0xd0] sm:$0xff] }
 0x18d   : > { %4724 = vmatprep.mubr.msk.f32.mxu0 %vm477_vm0, %v5778_v4  ;;  %4811 = vmatprep.mubr.msk.f32.mxu1 %vm477_vm0, %v5781_v5 }
 0x190   : > { %4725 = vmatmul.mubr.msk.f32.vlgmr.msra.gmra.mrb[96].mxu0 %vm477_vm0, %v5792_v6  ;;  %4812 = vmatmul.mubr.msk.f32.gmra.mrb[72].mxu1 %vm477_vm0, %v5795_v7 }
 0x191   : > { %4727 = vmatprep.mubr.msk.f32.mxu0 %vm477_vm0, %v5798_v8  ;;  %4814 = vmatprep.mubr.msk.f32.mxu1 %vm477_vm0, %v5801_v9 }
 0x194   : > { %4728 = vmatmul.mubr.msk.f32.gmra.mrb[98].mxu0 %vm477_vm0, %v5812_v10  ;;  %4815 = vmatmul.mubr.msk.f32.gmra.mrb[74].mxu1 %vm477_vm0, %v5815_v11 }
 0x195   : > { %4730 = vmatprep.mubr.msk.f32.mxu0 %vm477_vm0, %v5818_v12  ;;  %4817 = vmatprep.mubr.msk.f32.mxu1 %vm477_vm0, %v5821_v13 }
 0x198   : > { %4731 = vmatmul.mubr.msk.f32.gmra.mrb[100].mxu0 %vm477_vm0, %v5832_v14  ;;  %4818 = vmatmul.mubr.msk.f32.gmra.mrb[76].mxu1 %vm477_vm0, %v5835_v15 }
 0x199   : > { %4733 = vmatprep.mubr.msk.f32.mxu0 %vm477_vm0, %v5838_v16  ;;  %4820 = vmatprep.mubr.msk.f32.mxu1 %vm477_vm0, %v5841_v17 }
 0x19c   : > { %4734 = vmatmul.mubr.msk.f32.gmra.mrb[102].mxu0 %vm477_vm0, %v5852_v18  ;;  %4821 = vmatmul.mubr.msk.f32.gmra.mrb[32].mxu1 %vm477_vm0, %v5855_v19 }
 0x19d   : > { %4736 = vmatprep.mubr.msk.f32.mxu0 %vm477_vm0, %v5858_v20  ;;  %4823 = vmatprep.mubr.msk.f32.mxu1 %vm477_vm0, %v5861_v21 }
 0x1a0   : > { %4737 = vmatmul.mubr.msk.f32.gmra.mrb[104].mxu0 %vm477_vm0, %v5872_v22  ;;  %4824 = vmatmul.mubr.msk.f32.gmra.mrb[34].mxu1 %vm477_vm0, %v5875_v23 }
 0x1a1   : > { %4739 = vmatprep.mubr.msk.f32.mxu0 %vm477_vm0, %v5878_v24  ;;  %4826 = vmatprep.mubr.msk.f32.mxu1 %vm477_vm0, %v5881_v25 }
 0x1a4   : > { %4740 = vmatmul.mubr.msk.f32.gmra.mrb[106].mxu0 %vm477_vm0, %v5892_v26  ;;  %4827 = vmatmul.mubr.msk.f32.gmra.mrb[36].mxu1 %vm477_vm0, %v5895_v27 }
 0x1a5   : > { %4742 = vmatprep.mubr.msk.f32.mxu0 %vm477_vm0, %v325_v28  ;;  %4829 = vmatprep.mubr.msk.f32.mxu1 %vm477_vm0, %v5899_v29  ;;  %v341_v28 = vld [vmem:[%s5711_s27 + $0xe0] sm:$0xff] }
 0x1a8   : > { %4743 = vmatmul.mubr.msk.f32.gmra.mrb[108].mxu0 %vm477_vm0, %v5909_v30  ;;  %4830 = vmatmul.mubr.msk.f32.gmra.mrb[38].mxu1 %vm477_vm0, %v5912_v31 }
 0x1a9   : > { %4745 = vmatprep.mubr.msk.f32.mxu0 %vm477_vm0, %v327_v32  ;;  %4832 = vmatprep.mubr.msk.f32.mxu1 %vm477_vm0, %v5916_v33  ;;  %v6015_v32 = vld [vmem:[%s5711_s27 + $0x2b0] sm:$0xff]  ;;  %v6369_v33 = vld [vmem:[%s5711_s27 + $0x3e0] sm:$0xff] }
 0x1aa   : > { %7569 = vst [vmem:[#allocation28_spill] sm:$0xff] %v6015_v32  ;;  %7644 = vst [vmem:[#allocation103_spill] sm:$0xff] %v6369_v33 }
 0x1ac   : > { %4746 = vmatmul.mubr.msk.f32.gmra.mrb[110].mxu0 %vm477_vm0, %v328_v34  ;;  %4833 = vmatmul.mubr.msk.f32.gmra.mrb[40].mxu1 %vm477_vm0, %v5927_v35  ;;  %v342_v34 = vld [vmem:[%s5711_s27 + $0xe8] sm:$0xff] }
 0x1ad   : > { %4748 = vmatprep.mubr.msk.f32.mxu0 %vm477_vm0, %v329_v36  ;;  %4835 = vmatprep.mubr.msk.f32.mxu1 %vm477_vm0, %v5931_v37  ;;  %v6025_v36 = vld [vmem:[%s5711_s27 + $0x2b8] sm:$0xff]  ;;  %v6384_v35 = vld [vmem:[%s5711_s27 + $0x3e8] sm:$0xff] }
 0x1ae   : > { %7570 = vst [vmem:[#allocation29_spill] sm:$0xff] %v6025_v36  ;;  %7647 = vst [vmem:[#allocation106_spill] sm:$0xff] %v6384_v35 }
 0x1b0   : > { %4749 = vmatmul.mubr.msk.f32.gmra.mrb[112].mxu0 %vm477_vm0, %v330_v39  ;;  %4836 = vmatmul.mubr.msk.f32.gmra.mrb[42].mxu1 %vm477_vm0, %v5941_v40  ;;  %v343_v39 = vld [vmem:[%s5711_s27 + $0xf0] sm:$0xff]  ;;  %v6307_v40 = vld [vmem:[%s5711_s27 + $0x3a0] sm:$0xff] }
 0x1b1   : > { %4751 = vmatprep.mubr.msk.f32.mxu0 %vm477_vm0, %v331_v41  ;;  %4838 = vmatprep.mubr.msk.f32.mxu1 %vm477_vm0, %v5945_v42  ;;  %v6029_v41 = vld [vmem:[%s5711_s27 + $0x2c0] sm:$0xff]  ;;  %7628 = vst [vmem:[#allocation87_spill] sm:$0xff] %v6307_v40 }
 0x1b2   : > { %7571 = vst [vmem:[#allocation30_spill] sm:$0xff] %v6029_v41 }
 0x1b4   : > { %4752 = vmatmul.mubr.msk.f32.gmra.mrb[114].mxu0 %vm477_vm0, %v332_v43  ;;  %4839 = vmatmul.mubr.msk.f32.gmra.mrb[44].mxu1 %vm477_vm0, %v5955_v44  ;;  %v344_v43 = vld [vmem:[%s5711_s27 + $0xf8] sm:$0xff]  ;;  %v6293_v44 = vld [vmem:[%s5711_s27 + $0x390] sm:$0xff] }
 0x1b5   : > { %4754 = vmatprep.mubr.msk.f32.mxu0 %vm477_vm0, %v333_v45  ;;  %4841 = vmatprep.mubr.msk.f32.mxu1 %vm477_vm0, %v5959_v46  ;;  %v6039_v45 = vld [vmem:[%s5711_s27 + $0x2c8] sm:$0xff]  ;;  %7624 = vst [vmem:[#allocation83_spill] sm:$0xff] %v6293_v44 }
 0x1b6   : > { %7572 = vst [vmem:[#allocation31_spill] sm:$0xff] %v6039_v45 }
 0x1b8   : > { %4755 = vmatmul.mubr.msk.f32.gmra.mrb[116].mxu0 %vm477_vm0, %v334_v47  ;;  %4842 = vmatmul.mubr.msk.f32.gmra.mrb[46].mxu1 %vm477_vm0, %v5969_v48  ;;  %v6042_v47 = vld [vmem:[%s5711_s27 + $0x100] sm:$0xff] }
 0x1b9   : > { %4757 = vmatprep.mubr.msk.f32.mxu0 %vm477_vm0, %v335_v49  ;;  %4844 = vmatprep.mubr.msk.f32.mxu1 %vm477_vm0, %v5973_v50  ;;  %7573 = vst [vmem:[#allocation32_spill] sm:$0xff] %v6042_v47  ;;  %v6045_v49 = vld [vmem:[%s5711_s27 + $0x2d0] sm:$0xff]  ;;  %v6246_v50 = vld [vmem:[%s5711_s27 + $0x358] sm:$0xff]  ;;  %v6279_v48 = vld [vmem:[%s5711_s27 + $0x380] sm:$0xff] }
 0x1ba   : > { %7574 = vst [vmem:[#allocation33_spill] sm:$0xff] %v6045_v49  ;;  %7611 = vst [vmem:[#allocation70_spill] sm:$0xff] %v6246_v50 }
 0x1bb   : > { %7620 = vst [vmem:[#allocation79_spill] sm:$0xff] %v6279_v48 }
 0x1bc   : > { %4758 = vmatmul.mubr.msk.f32.gmra.mrb[118].mxu0 %vm477_vm0, %v336_v51  ;;  %4845 = vmatmul.mubr.msk.f32.gmra.mrb[48].mxu1 %vm477_vm0, %v5983_v52  ;;  %v6055_v51 = vld [vmem:[%s5711_s27 + $0x108] sm:$0xff]  ;;  %v6249_v52 = vld [vmem:[%s5711_s27 + $0x360] sm:$0xff] }
 0x1bd   : > { %4760 = vmatprep.mubr.msk.f32.mxu0 %vm477_vm0, %v337_v54  ;;  %4847 = vmatprep.mubr.msk.f32.mxu1 %vm477_vm0, %v5987_v56  ;;  %7575 = vst [vmem:[#allocation34_spill] sm:$0xff] %v6055_v51  ;;  %v6058_v54 = vld [vmem:[%s5711_s27 + $0x2d8] sm:$0xff]  ;;  %7612 = vst [vmem:[#allocation71_spill] sm:$0xff] %v6249_v52 }
 0x1be   : > { %7576 = vst [vmem:[#allocation35_spill] sm:$0xff] %v6058_v54 }
 0x1c0   : > { %4761 = vmatmul.mubr.msk.f32.gmra.mrb[120].mxu0 %vm477_vm0, %v338_v57  ;;  %4848 = vmatmul.mubr.msk.f32.gmra.mrb[50].mxu1 %vm477_vm0, %v5997_v59  ;;  %v6061_v57 = vld [vmem:[%s5711_s27 + $0x110] sm:$0xff]  ;;  %v6225_v59 = vld [vmem:[%s5711_s27 + $0x180] sm:$0xff] }
 0x1c1   : > { %4763 = vmatprep.mubr.msk.f32.mxu0 %vm477_vm0, %v339_v61  ;;  %4850 = vmatprep.mubr.msk.f32.mxu1 %vm477_vm0, %v6001_v62  ;;  %7577 = vst [vmem:[#allocation36_spill] sm:$0xff] %v6061_v57  ;;  %v6064_v61 = vld [vmem:[%s5711_s27 + $0x2e0] sm:$0xff]  ;;  %7606 = vst [vmem:[#allocation65_spill] sm:$0xff] %v6225_v59 }
 0x1c2   : > { %7578 = vst [vmem:[#allocation37_spill] sm:$0xff] %v6064_v61 }
 0x1c4   : > { %4764 = vmatmul.mubr.msk.f32.gmra.mrb[122].mxu0 %vm477_vm0, %v340_v0  ;;  %4851 = vmatmul.mubr.msk.f32.gmra.mrb[52].mxu1 %vm477_vm0, %v6011_v2  ;;  %v6075_v0 = vld [vmem:[%s5711_s27 + $0x118] sm:$0xff]  ;;  %v6201_v2 = vld [vmem:[%s5711_s27 + $0x170] sm:$0xff] }
 0x1c5   : > { %4766 = vmatprep.mubr.msk.f32.mxu0 %vm477_vm0, %v341_v28  ;;  %4853 = vmatprep.mubr.msk.f32.mxu1 %vm477_vm0, %v6015_v32  ;;  %7579 = vst [vmem:[#allocation38_spill] sm:$0xff] %v6075_v0  ;;  %v6078_v28 = vld [vmem:[%s5711_s27 + $0x2e8] sm:$0xff]  ;;  %7601 = vst [vmem:[#allocation60_spill] sm:$0xff] %v6201_v2 }
 0x1c6   : > { %7580 = vst [vmem:[#allocation39_spill] sm:$0xff] %v6078_v28 }
 0x1c8   : > { %4767 = vmatmul.mubr.msk.f32.gmra.mrb[124].mxu0 %vm477_vm0, %v342_v34  ;;  %4854 = vmatmul.mubr.msk.f32.gmra.mrb[54].mxu1 %vm477_vm0, %v6025_v36  ;;  %v6081_v34 = vld [vmem:[%s5711_s27 + $0x120] sm:$0xff] }
 0x1c9   : > { %4769 = vmatprep.mubr.msk.f32.mxu0 %vm477_vm0, %v343_v39  ;;  %4856 = vmatprep.mubr.msk.f32.mxu1 %vm477_vm0, %v6029_v41  ;;  %7581 = vst [vmem:[#allocation40_spill] sm:$0xff] %v6081_v34  ;;  %v6084_v39 = vld [vmem:[%s5711_s27 + $0x2f0] sm:$0xff]  ;;  %v6177_v36 = vld [vmem:[%s5711_s27 + $0x160] sm:$0xff] }
 0x1ca   : > { %7582 = vst [vmem:[#allocation41_spill] sm:$0xff] %v6084_v39  ;;  %7597 = vst [vmem:[#allocation56_spill] sm:$0xff] %v6177_v36 }
 0x1cc   : > { %4770 = vmatmul.mubr.msk.f32.gmra.mrb[126].mxu0 %vm477_vm0, %v344_v43  ;;  %4857 = vmatmul.mubr.msk.f32.gmra.mrb[56].mxu1 %vm477_vm0, %v6039_v45  ;;  %v6153_v45 = vld [vmem:[%s5711_s27 + $0x150] sm:$0xff] }
 0x1cd   : > { %4772 = vmatprep.mubr.msk.f32.mxu0 %vm477_vm0, %v6042_v47  ;;  %4859 = vmatprep.mubr.msk.f32.mxu1 %vm477_vm0, %v6045_v49  ;;  %v6102_v49 = vld [vmem:[%s5711_s27 + $0x2f8] sm:$0xff]  ;;  %v6105_v47 = vld [vmem:[%s5711_s27 + $0x130] sm:$0xff]  ;;  %7593 = vst [vmem:[#allocation52_spill] sm:$0xff] %v6153_v45 }
 0x1ce   : > { %7584 = vst [vmem:[#allocation43_spill] sm:$0xff] %v6102_v49  ;;  %7585 = vst [vmem:[#allocation44_spill] sm:$0xff] %v6105_v47 }
 0x1d0   : > { %4773 = vmatmul.mubr.msk.f32.gmra.mrb[32].mxu0 %vm477_vm0, %v6055_v51  ;;  %4860 = vmatmul.mubr.msk.f32.gmra.mrb[58].mxu1 %vm477_vm0, %v6058_v54  ;;  %v6129_v51 = vld [vmem:[%s5711_s27 + $0x140] sm:$0xff] }
 0x1d1   : > { %4775 = vmatprep.mubr.msk.f32.mxu0 %vm477_vm0, %v6061_v57  ;;  %4862 = vmatprep.mubr.msk.f32.mxu1 %vm477_vm0, %v6064_v61  ;;  %v6099_v57 = vld [vmem:[%s5711_s27 + $0x128] sm:$0xff]  ;;  %7589 = vst [vmem:[#allocation48_spill] sm:$0xff] %v6129_v51 }
 0x1d2   : > { %7583 = vst [vmem:[#allocation42_spill] sm:$0xff] %v6099_v57 }
 0x1d3   : > { %v6086_v43 = vpop.f32.mrb[0].mxu1 }
 0x1d4   : > { %4776 = vmatmul.mubr.msk.f32.gmra.mrb[34].mxu0 %vm477_vm0, %v6075_v0  ;;  %4863 = vmatmul.mubr.msk.f32.gmra.mrb[60].mxu1 %vm477_vm0, %v6078_v28  ;;  %v6092_v61 = vpop.f32.mrb[1].mxu1  ;;  %v6108_v0 = vld [vmem:[%s5711_s27 + $0x300] sm:$0xff]  ;;  %v6126_v28 = vld [vmem:[%s5711_s27 + $0x308] sm:$0xff] }
 0x1d5   : > { %4778 = vmatprep.mubr.msk.f32.mxu0 %vm477_vm0, %v6081_v34  ;;  %4865 = vmatprep.mubr.msk.f32.mxu1 %vm477_vm0, %v6084_v39  ;;  %7586 = vst [vmem:[#allocation45_spill] sm:$0xff] %v6108_v0  ;;  %v6123_v34 = vld [vmem:[%s5711_s27 + $0x138] sm:$0xff]  ;;  %7588 = vst [vmem:[#allocation47_spill] sm:$0xff] %v6126_v28 }
 0x1d6   : > { %7587 = vst [vmem:[#allocation46_spill] sm:$0xff] %v6123_v34 }
 0x1d7   : > { %v6110_v54 = vpop.f32.mrb[2].mxu1 }
 0x1d8   : > { %4779 = vmatmul.mubr.msk.f32.gmra.mrb[36].mxu0 %vm477_vm0, %v6099_v57  ;;  %4866 = vmatmul.mubr.msk.f32.gmra.mrb[62].mxu1 %vm477_vm0, %v6102_v49  ;;  %v6116_v39 = vpop.f32.mrb[3].mxu1  ;;  %v6132_v57 = vld [vmem:[%s5711_s27 + $0x310] sm:$0xff]  ;;  %v6150_v49 = vld [vmem:[%s5711_s27 + $0x318] sm:$0xff] }
 0x1d9   : > { %4781 = vmatprep.mubr.msk.f32.mxu0 %vm477_vm0, %v6105_v47  ;;  %4868 = vmatprep.mubr.msk.f32.mxu1 %vm477_vm0, %v6108_v0  ;;  %7590 = vst [vmem:[#allocation49_spill] sm:$0xff] %v6132_v57  ;;  %v6147_v47 = vld [vmem:[%s5711_s27 + $0x148] sm:$0xff]  ;;  %7592 = vst [vmem:[#allocation51_spill] sm:$0xff] %v6150_v49 }
 0x1da   : > { %7591 = vst [vmem:[#allocation50_spill] sm:$0xff] %v6147_v47 }
 0x1db   : > { %v6134_v41 = vpop.f32.mrb[4].mxu1 }
 0x1dc   : > { %4782 = vmatmul.mubr.msk.f32.gmra.mrb[38].mxu0 %vm477_vm0, %v6123_v34  ;;  %4869 = vmatmul.mubr.msk.f32.gmra.mrb[78].mxu1 %vm477_vm0, %v6126_v28  ;;  %v6140_v0 = vpop.f32.mrb[5].mxu1  ;;  %v6156_v34 = vld [vmem:[%s5711_s27 + $0x320] sm:$0xff]  ;;  %v6174_v28 = vld [vmem:[%s5711_s27 + $0x328] sm:$0xff] }
 0x1dd   : > { %4784 = vmatprep.mubr.msk.f32.mxu0 %vm477_vm0, %v6129_v51  ;;  %4871 = vmatprep.mubr.msk.f32.mxu1 %vm477_vm0, %v6132_v57  ;;  %7594 = vst [vmem:[#allocation53_spill] sm:$0xff] %v6156_v34  ;;  %v6171_v51 = vld [vmem:[%s5711_s27 + $0x158] sm:$0xff]  ;;  %7596 = vst [vmem:[#allocation55_spill] sm:$0xff] %v6174_v28 }
 0x1de   : > { %7595 = vst [vmem:[#allocation54_spill] sm:$0xff] %v6171_v51 }
 0x1df   : > { %v6158_v32 = vpop.f32.mrb[6].mxu1 }
 0x1e0   : > { %4785 = vmatmul.mubr.msk.f32.gmra.mrb[40].mxu0 %vm477_vm0, %v6147_v47  ;;  %4872 = vmatmul.mubr.msk.f32.gmra.mrb[80].mxu1 %vm477_vm0, %v6150_v49  ;;  %v6164_v57 = vpop.f32.mrb[7].mxu1  ;;  %v6180_v47 = vld [vmem:[%s5711_s27 + $0x330] sm:$0xff]  ;;  %v6198_v49 = vld [vmem:[%s5711_s27 + $0x338] sm:$0xff] }
 0x1e1   : > { %4787 = vmatprep.mubr.msk.f32.mxu0 %vm477_vm0, %v6153_v45  ;;  %4874 = vmatprep.mubr.msk.f32.mxu1 %vm477_vm0, %v6156_v34  ;;  %7598 = vst [vmem:[#allocation57_spill] sm:$0xff] %v6180_v47  ;;  %v6195_v45 = vld [vmem:[%s5711_s27 + $0x168] sm:$0xff]  ;;  %7600 = vst [vmem:[#allocation59_spill] sm:$0xff] %v6198_v49 }
 0x1e2   : > { %7599 = vst [vmem:[#allocation58_spill] sm:$0xff] %v6195_v45 }
 0x1e3   : > { %v6182_v62 = vpop.f32.mrb[8].mxu1 }
 0x1e4   : > { %4788 = vmatmul.mubr.msk.f32.gmra.mrb[42].mxu0 %vm477_vm0, %v6171_v51  ;;  %4875 = vmatmul.mubr.msk.f32.gmra.mrb[82].mxu1 %vm477_vm0, %v6174_v28  ;;  %v6188_v34 = vpop.f32.mrb[9].mxu1  ;;  %v6204_v51 = vld [vmem:[%s5711_s27 + $0x340] sm:$0xff]  ;;  %v6222_v28 = vld [vmem:[%s5711_s27 + $0x348] sm:$0xff] }
 0x1e5   : > { %4790 = vmatprep.mubr.msk.f32.mxu0 %vm477_vm0, %v6177_v36  ;;  %4877 = vmatprep.mubr.msk.f32.mxu1 %vm477_vm0, %v6180_v47  ;;  %7602 = vst [vmem:[#allocation61_spill] sm:$0xff] %v6204_v51  ;;  %v6219_v36 = vld [vmem:[%s5711_s27 + $0x178] sm:$0xff]  ;;  %7605 = vst [vmem:[#allocation64_spill] sm:$0xff] %v6222_v28 }
 0x1e6   : > { %7604 = vst [vmem:[#allocation63_spill] sm:$0xff] %v6219_v36 }
 0x1e7   : > { %v6206_v56 = vpop.f32.mrb[10].mxu1 }
 0x1e8   : > { %4791 = vmatmul.mubr.msk.f32.gmra.mrb[44].mxu0 %vm477_vm0, %v6195_v45  ;;  %4878 = vmatmul.mubr.msk.f32.gmra.mrb[84].mxu1 %vm477_vm0, %v6198_v49  ;;  %v6212_v47 = vpop.f32.mrb[11].mxu1  ;;  %v6228_v45 = vld [vmem:[%s5711_s27 + $0x350] sm:$0xff] }
 0x1e9   : > { %7603 = vst [vmem:[#allocation62_spill] sm:$0xff] %v6212_v47  ;;  %4793 = vmatprep.mubr.msk.f32.mxu0 %vm477_vm0, %v6201_v2  ;;  %4880 = vmatprep.mubr.msk.f32.mxu1 %vm477_vm0, %v6204_v51  ;;  %7607 = vst [vmem:[#allocation66_spill] sm:$0xff] %v6228_v45  ;;  %v6243_v51 = vld [vmem:[%s5711_s27 + $0x188] sm:$0xff] }
 0x1ea   : > { %7610 = vst [vmem:[#allocation69_spill] sm:$0xff] %v6243_v51 }
 0x1eb   : > { %v6230_v49 = vpop.f32.mrb[12].mxu1 }
 0x1ec   : > { %7608 = vst [vmem:[#allocation67_spill] sm:$0xff] %v6230_v49  ;;  %4794 = vmatmul.mubr.msk.f32.gmra.mrb[46].mxu0 %vm477_vm0, %v6219_v36  ;;  %4881 = vmatmul.mubr.msk.f32.gmra.mrb[86].mxu1 %vm477_vm0, %v6222_v28  ;;  %v6236_v2 = vpop.f32.mrb[13].mxu1  ;;  %v6265_v28 = vld [vmem:[%s5711_s27 + $0x370] sm:$0xff] }
 0x1ed   : > { %7609 = vst [vmem:[#allocation68_spill] sm:$0xff] %v6236_v2  ;;  %4796 = vmatprep.mubr.msk.f32.mxu0 %vm477_vm0, %v6225_v59  ;;  %4883 = vmatprep.mubr.msk.f32.mxu1 %vm477_vm0, %v6228_v45  ;;  %v6262_v45 = vld [vmem:[%s5711_s27 + $0x368] sm:$0xff]  ;;  %7616 = vst [vmem:[#allocation75_spill] sm:$0xff] %v6265_v28 }
 0x1ee   : > { %7615 = vst [vmem:[#allocation74_spill] sm:$0xff] %v6262_v45 }
 0x1ef   : > { %v6251_v36 = vpop.f32.mrb[14].mxu1 }
 0x1f0   : > { %7613 = vst [vmem:[#allocation72_spill] sm:$0xff] %v6251_v36  ;;  %4797 = vmatmul.mubr.msk.f32.gmra.mrb[48].mxu0 %vm477_vm0, %v6243_v51  ;;  %4884 = vmatmul.mubr.msk.f32.gmra.mrb[88].mxu1 %vm477_vm0, %v6246_v50  ;;  %v6257_v59 = vpop.f32.mrb[15].mxu1  ;;  %v6276_v50 = vld [vmem:[%s5711_s27 + $0x378] sm:$0xff] }
 0x1f1   : > { %7614 = vst [vmem:[#allocation73_spill] sm:$0xff] %v6257_v59  ;;  %4886 = vmatprep.mubr.msk.f32.mxu1 %vm477_vm0, %v6249_v52  ;;  %7619 = vst [vmem:[#allocation78_spill] sm:$0xff] %v6276_v50 }
 0x1f3   : > { %v6267_v46 = vpop.f32.mrb[16].mxu1 }
 0x1f4   : > { %7617 = vst [vmem:[#allocation76_spill] sm:$0xff] %v6267_v46  ;;  %4887 = vmatmul.mubr.msk.f32.gmra.mrb[90].mxu1 %vm477_vm0, %v6262_v45  ;;  %v6271_v51 = vpop.f32.mrb[17].mxu1  ;;  %v6290_v45 = vld [vmem:[%s5711_s27 + $0x388] sm:$0xff] }
 0x1f5   : > { %7618 = vst [vmem:[#allocation77_spill] sm:$0xff] %v6271_v51  ;;  %4889 = vmatprep.mubr.msk.f32.mxu1 %vm477_vm0, %v6265_v28  ;;  %7623 = vst [vmem:[#allocation82_spill] sm:$0xff] %v6290_v45 }
 0x1f7   : > { %v6281_v52 = vpop.f32.mrb[18].mxu1 }
 0x1f8   : > { %7621 = vst [vmem:[#allocation80_spill] sm:$0xff] %v6281_v52  ;;  %4890 = vmatmul.mubr.msk.f32.gmra.mrb[92].mxu1 %vm477_vm0, %v6276_v50  ;;  %v6285_v42 = vpop.f32.mrb[19].mxu1  ;;  %v6304_v50 = vld [vmem:[%s5711_s27 + $0x398] sm:$0xff] }
 0x1f9   : > { %7622 = vst [vmem:[#allocation81_spill] sm:$0xff] %v6285_v42  ;;  %4892 = vmatprep.mubr.msk.f32.mxu1 %vm477_vm0, %v6279_v48  ;;  %7627 = vst [vmem:[#allocation86_spill] sm:$0xff] %v6304_v50 }
 0x1fb   : > { %v6295_v28 = vpop.f32.mrb[20].mxu1 }
 0x1fc   : > { %7625 = vst [vmem:[#allocation84_spill] sm:$0xff] %v6295_v28  ;;  %4893 = vmatmul.mubr.msk.f32.gmra.mrb[94].mxu1 %vm477_vm0, %v6290_v45  ;;  %v6299_v37 = vpop.f32.mrb[21].mxu1  ;;  %v6318_v45 = vld [vmem:[%s5711_s27 + $0x3a8] sm:$0xff] }
 0x1fd   : > { %7626 = vst [vmem:[#allocation85_spill] sm:$0xff] %v6299_v37  ;;  %4895 = vmatprep.mubr.msk.f32.mxu1 %vm477_vm0, %v6293_v44  ;;  %7631 = vst [vmem:[#allocation90_spill] sm:$0xff] %v6318_v45  ;;  %v6321_v37 = vld [vmem:[%s5711_s27 + $0x3b0] sm:$0xff] }
 0x1fe   : > { %7632 = vst [vmem:[#allocation91_spill] sm:$0xff] %v6321_v37 }
 0x1ff   : > { %v6309_v48 = vpop.f32.mrb[22].mxu1 }
 0x200   : > { %7629 = vst [vmem:[#allocation88_spill] sm:$0xff] %v6309_v48  ;;  %4896 = vmatmul.mubr.msk.f32.gmra.mrb[96].mxu1 %vm477_vm0, %v6304_v50  ;;  %v6313_v28 = vpop.f32.mrb[23].mxu1  ;;  %v6332_v50 = vld [vmem:[%s5711_s27 + $0x3b8] sm:$0xff] }
 0x201   : > { %7630 = vst [vmem:[#allocation89_spill] sm:$0xff] %v6313_v28  ;;  %4898 = vmatprep.mubr.msk.f32.mxu1 %vm477_vm0, %v6307_v40  ;;  %7635 = vst [vmem:[#allocation94_spill] sm:$0xff] %v6332_v50  ;;  %v6335_v28 = vld [vmem:[%s5711_s27 + $0x3c0] sm:$0xff] }
 0x202   : > { %7636 = vst [vmem:[#allocation95_spill] sm:$0xff] %v6335_v28 }
 0x203   : > { %v6323_v44 = vpop.f32.mrb[24].mxu1 }
 0x204   : > { %7633 = vst [vmem:[#allocation92_spill] sm:$0xff] %v6323_v44  ;;  %4899 = vmatmul.mubr.msk.f32.gmra.mrb[98].mxu1 %vm477_vm0, %v6318_v45  ;;  %v6327_v48 = vpop.f32.mrb[25].mxu1 }
 0x205   : > { %7634 = vst [vmem:[#allocation93_spill] sm:$0xff] %v6327_v48  ;;  %4901 = vmatprep.mubr.msk.f32.mxu1 %vm477_vm0, %v6321_v37  ;;  %v6348_v37 = vld [vmem:[%s5711_s27 + $0x3c8] sm:$0xff]  ;;  %v6351_v48 = vld [vmem:[%s5711_s27 + $0x3d0] sm:$0xff] }
 0x206   : > { %7639 = vst [vmem:[#allocation98_spill] sm:$0xff] %v6348_v37  ;;  %7640 = vst [vmem:[#allocation99_spill] sm:$0xff] %v6351_v48 }
 0x207   : > { %v6337_v40 = vpop.f32.mrb[26].mxu1  ;;  %v4569_v42 = vpop.f32.mrb[50].mxu0 }
 0x208   : > { %7637 = vst [vmem:[#allocation96_spill] sm:$0xff] %v6337_v40  ;;  %4902 = vmatmul.mubr.msk.f32.gmra.mrb[100].mxu1 %vm477_vm0, %v6332_v50  ;;  %v6341_v44 = vpop.f32.mrb[27].mxu1  ;;  %v6343_v45 = vpop.f32.mrb[51].mxu0 }
 0x209   : > { %7638 = vst [vmem:[#allocation97_spill] sm:$0xff] %v6341_v44  ;;  %4904 = vmatprep.mubr.msk.f32.mxu1 %vm477_vm0, %v6335_v28  ;;  %v6366_v28 = vld [vmem:[%s5711_s27 + $0x3d8] sm:$0xff] }
 0x20a   : > { %7643 = vst [vmem:[#allocation102_spill] sm:$0xff] %v6366_v28 }
 0x20b   : > { %v6353_v52 = vpop.f32.mrb[28].mxu1  ;;  %v6355_v40 = vpop.f32.mrb[52].mxu0 }
 0x20c   : > { %7641 = vst [vmem:[#allocation100_spill] sm:$0xff] %v6353_v52  ;;  %4905 = vmatmul.mubr.msk.f32.gmra.mrb[102].mxu1 %vm477_vm0, %v6348_v37  ;;  %v6359_v50 = vpop.f32.mrb[29].mxu1  ;;  %v6361_v44 = vpop.f32.mrb[53].mxu0 }
 0x20d   : > { %7642 = vst [vmem:[#allocation101_spill] sm:$0xff] %v6359_v50  ;;  %4907 = vmatprep.mubr.msk.f32.mxu1 %vm477_vm0, %v6351_v48  ;;  %v6387_v48 = vld [vmem:[%s5711_s27 + $0x3f0] sm:$0xff] }
 0x20e   : > { %7648 = vst [vmem:[#allocation107_spill] sm:$0xff] %v6387_v48 }
 0x20f   : > { %v6371_v51 = vpop.f32.mrb[30].mxu1  ;;  %v6373_v52 = vpop.f32.mrb[54].mxu0 }
 0x210   : > { %7645 = vst [vmem:[#allocation104_spill] sm:$0xff] %v6371_v51  ;;  %4908 = vmatmul.mubr.msk.f32.gmra.mrb[104].mxu1 %vm477_vm0, %v6366_v28  ;;  %v6377_v37 = vpop.f32.mrb[31].mxu1  ;;  %v6379_v50 = vpop.f32.mrb[55].mxu0  ;;  %v6398_v28 = vld [vmem:[%s5711_s27 + $0x3f8] sm:$0xff] }
 0x211   : > { %7646 = vst [vmem:[#allocation105_spill] sm:$0xff] %v6377_v37  ;;  %4910 = vmatprep.mubr.msk.f32.mxu1 %vm477_vm0, %v6369_v33  ;;  %7649 = vst [vmem:[#allocation108_spill] sm:$0xff] %v6398_v28 }
 0x213   : > { %v6389_v46 = vpop.f32.mrb[56].mxu0 }
 0x214   : > { %4911 = vmatmul.mubr.msk.f32.gmra.mrb[106].mxu1 %vm477_vm0, %v6384_v35  ;;  %v6393_v51 = vpop.f32.mrb[57].mxu0 }
 0x215   : > { %4913 = vmatprep.mubr.msk.f32.mxu1 %vm477_vm0, %v6387_v48 }
 0x217   : > { %v6400_v37 = vpop.f32.mrb[58].mxu0 }
 0x218   : > { %4914 = vmatmul.mubr.msk.f32.gmra.mrb[108].mxu1 %vm477_vm0, %v6398_v28  ;;  %v6404_v33 = vpop.f32.mrb[59].mxu0 }
 0x21b   : > { %v6406_v29 = vpop.f32.mrb[60].mxu0 }
 0x21c   : > { %v6408_v30 = vpop.f32.mrb[61].mxu0 }
 0x21f   : > { %v6410_v31 = vpop.f32.mrb[62].mxu0 }
 0x220   : > { %v6412_v35 = vpop.f32.mrb[63].mxu0 }
 0x223   : > { %v6414_v59 = vpop.f32.mrb[64].mxu0 }
 0x224   : > { %7650 = vst [vmem:[#allocation109_spill] sm:$0xff] %v6414_v59  ;;  %v6416_v48 = vpop.f32.mrb[65].mxu0 }
 0x225   : > { %7651 = vst [vmem:[#allocation110_spill] sm:$0xff] %v6416_v48 }
 0x227   : > { %v6418_v24 = vpop.f32.mrb[66].mxu0 }
 0x228   : > { %7652 = vst [vmem:[#allocation111_spill] sm:$0xff] %v6418_v24  ;;  %v6420_v36 = vpop.f32.mrb[67].mxu0 }
 0x229   : > { %7653 = vst [vmem:[#allocation112_spill] sm:$0xff] %v6420_v36 }
 0x22b   : > { %v6422_v25 = vpop.f32.mrb[68].mxu0 }
 0x22c   : > { %7654 = vst [vmem:[#allocation113_spill] sm:$0xff] %v6422_v25  ;;  %v6424_v28 = vpop.f32.mrb[69].mxu0 }
 0x22d   : > { %7655 = vst [vmem:[#allocation114_spill] sm:$0xff] %v6424_v28 }
 0x22f   : > { %v6426_v26 = vpop.f32.mrb[70].mxu0 }
 0x230   : > { %7656 = vst [vmem:[#allocation115_spill] sm:$0xff] %v6426_v26  ;;  %v6428_v2 = vpop.f32.mrb[71].mxu0 }
 0x231   : > { %7657 = vst [vmem:[#allocation116_spill] sm:$0xff] %v6428_v2 }
 0x233   : > { %v6430_v27 = vpop.f32.mrb[72].mxu0 }
 0x234   : > { %7658 = vst [vmem:[#allocation117_spill] sm:$0xff] %v6430_v27  ;;  %v6432_v20 = vpop.f32.mrb[73].mxu0 }
 0x235   : > { %7659 = vst [vmem:[#allocation118_spill] sm:$0xff] %v6432_v20 }
 0x237   : > { %v6434_v49 = vpop.f32.mrb[74].mxu0 }
 0x238   : > { %7660 = vst [vmem:[#allocation119_spill] sm:$0xff] %v6434_v49  ;;  %v6436_v59 = vpop.f32.mrb[75].mxu0 }
 0x239   : > { %7661 = vst [vmem:[#allocation120_spill] sm:$0xff] %v6436_v59 }
 0x23b   : > { %v6438_v48 = vpop.f32.mrb[76].mxu0 }
 0x23c   : > { %7662 = vst [vmem:[#allocation121_spill] sm:$0xff] %v6438_v48  ;;  %v6440_v24 = vpop.f32.mrb[77].mxu0 }
 0x23d   : > { %7663 = vst [vmem:[#allocation122_spill] sm:$0xff] %v6440_v24 }
 0x23f   : > { %v6442_v36 = vpop.f32.mrb[78].mxu0 }
 0x240   : > { %7664 = vst [vmem:[#allocation123_spill] sm:$0xff] %v6442_v36  ;;  %v6444_v25 = vpop.f32.mrb[79].mxu0 }
 0x241   : > { %7665 = vst [vmem:[#allocation124_spill] sm:$0xff] %v6444_v25 }
 0x243   : > { %v6446_v28 = vpop.f32.mrb[80].mxu0 }
 0x244   : > { %7666 = vst [vmem:[#allocation125_spill] sm:$0xff] %v6446_v28  ;;  %v6448_v26 = vpop.f32.mrb[81].mxu0 }
 0x245   : > { %7667 = vst [vmem:[#allocation126_spill] sm:$0xff] %v6448_v26  ;;  %v6467_v26 = vld [vmem:[%s7456_s5] ss:$0 sm:$0xff] }
 0x247   : > { %v6450_v2 = vpop.f32.mrb[82].mxu0 }
 0x248   : > { %7668 = vst [vmem:[#allocation127_spill] sm:$0xff] %v6450_v2  ;;  %v6452_v27 = vpop.f32.mrb[83].mxu0 }
 0x249   : > { %7669 = vst [vmem:[#allocation128_spill] sm:$0xff] %v6452_v27 }
 0x24b   : > { %v6454_v20 = vpop.f32.mrb[84].mxu0 }
 0x24c   : > { %7670 = vst [vmem:[#allocation129_spill] sm:$0xff] %v6454_v20  ;;  %v6456_v49 = vpop.f32.mrb[85].mxu0 }
 0x24d   : > { %7671 = vst [vmem:[#allocation130_spill] sm:$0xff] %v6456_v49 }
 0x24f   : > { %v6458_v59 = vpop.f32.mrb[86].mxu0 }
 0x250   : > { %7672 = vst [vmem:[#allocation131_spill] sm:$0xff] %v6458_v59  ;;  %v6460_v48 = vpop.f32.mrb[87].mxu0 }
 0x251   : > { %7673 = vst [vmem:[#allocation132_spill] sm:$0xff] %v6460_v48 }
 0x253   : > { %v4801_v24 = vpop.f32.mrb[64].mxu1  ;;  %v6462_v36 = vpop.f32.mrb[88].mxu0 }
 0x254   : > { %7674 = vst [vmem:[#allocation133_spill] sm:$0xff] %v6462_v36  ;;  %v2972_v25 = vadd.f32 %v4801_v24, %v4569_v42  ;;  %v2532_v2 = vpop.f32.mrb[65].mxu1  ;;  %v6469_v27 = vpop.f32.mrb[89].mxu0 }
 0x255   : > { %7675 = vst [vmem:[#allocation134_spill] sm:$0xff] %v6469_v27  ;;  %v2971_v20 = vadd.f32 %v2532_v2, %v6343_v45 }
 0x256   : > { %v3107_v49 = vadd.f32 %v6467_v26, %v2972_v25 }
 0x257   : > { %v3106_v59 = vadd.f32 %v6467_v26, %v2971_v20  ;;  %v4804_v48 = vpop.f32.mrb[66].mxu1  ;;  %v6474_v28 = vpop.f32.mrb[90].mxu0  ;;  %v6484_v20 = vstv %s3184_s6 }
 0x258   : > { %7676 = vst [vmem:[#allocation135_spill] sm:$0xff] %v6474_v28  ;;  %v2974_v24 = vadd.f32 %v4804_v48, %v6355_v40  ;;  %v2542_v42 = vpop.f32.mrb[67].mxu1  ;;  %v6477_v36 = vpop.f32.mrb[91].mxu0  ;;  %v3236_v23 = vmax.f32 %v3107_v49, 0.0 }
 0x259   : > { %7677 = vst [vmem:[#allocation136_spill] sm:$0xff] %v6477_v36  ;;  %v2973_v22 = vadd.f32 %v2542_v42, %v6361_v44  ;;  %v3235_v27 = vmax.f32 %v3106_v59, 0.0 }
 0x25a   : > { %v3109_v21 = vadd.f32 %v6467_v26, %v2974_v24  ;;  %v3365_v59 = vmul.f32 %v6484_v20, %v3236_v23 }
 0x25b   : > { %v3108_v2 = vadd.f32 %v6467_v26, %v2973_v22  ;;  %v4807_v45 = vpop.f32.mrb[68].mxu1  ;;  %v6482_v25 = vpop.f32.mrb[92].mxu0  ;;  %v3364_v22 = vmul.f32 %v6484_v20, %v3235_v27 }
 0x25c   : > { %7678 = vst [vmem:[#allocation137_spill] sm:$0xff] %v6482_v25  ;;  %v3238_v47 = vmax.f32 %v3109_v21, 0.0  ;;  %v2976_v28 = vadd.f32 %v4807_v45, %v6373_v52  ;;  %v2552_v40 = vpop.f32.mrb[69].mxu1  ;;  %v6487_v48 = vpop.f32.mrb[93].mxu0 }
 0x25d   : > { %7679 = vst [vmem:[#allocation138_spill] sm:$0xff] %v6487_v48  ;;  %v3237_v36 = vmax.f32 %v3108_v2, 0.0  ;;  %v2975_v44 = vadd.f32 %v2552_v40, %v6379_v50 }
 0x25e   : > { %v3111_v24 = vadd.f32 %v6467_v26, %v2976_v28  ;;  %v3367_v21 = vmul.f32 %v6484_v20, %v3238_v47  ;;  %v6508_v47 = vadd.f32 %v3364_v22, %v5722_v38 }
 0x25f   : > { %v3110_v49 = vadd.f32 %v6467_v26, %v2975_v44  ;;  %v4810_v42 = vpop.f32.mrb[70].mxu1  ;;  %v6494_v25 = vpop.f32.mrb[94].mxu0  ;;  %v3366_v50 = vmul.f32 %v6484_v20, %v3237_v36  ;;  %v6505_v44 = vadd.f32 %v3365_v59, %v5733_v53 }
 0x260   : > { %v3240_v52 = vmax.f32 %v3111_v24, 0.0  ;;  %v2978_v45 = vadd.f32 %v4810_v42, %v6389_v46  ;;  %v2562_v48 = vpop.f32.mrb[71].mxu1  ;;  %v6498_v2 = vpop.f32.mrb[95].mxu0  ;;  %v6513_v36 = vadd.f32 %v3367_v21, %v5747_v58 }
 0x261   : > { %7680 = vst [vmem:[#allocation139_spill] sm:$0xff] %v6498_v2  ;;  %v3239_v28 = vmax.f32 %v3110_v49, 0.0  ;;  %v2977_v23 = vadd.f32 %v2562_v48, %v6393_v51  ;;  %v6518_v59 = vadd.f32 %v3366_v50, %v5736_v55 }
 0x262   : > { %v3369_v27 = vmul.f32 %v6484_v20, %v3240_v52  ;;  %v3113_v40 = vadd.f32 %v6467_v26, %v2978_v45 }
 0x263   : > { %v3368_v46 = vmul.f32 %v6484_v20, %v3239_v28  ;;  %v3112_v24 = vadd.f32 %v6467_v26, %v2977_v23  ;;  %v4726_v42 = vpop.f32.mrb[96].mxu0  ;;  %v4813_v2 = vpop.f32.mrb[72].mxu1 }
 0x264   : > { %v3242_v51 = vmax.f32 %v3113_v40, 0.0  ;;  %v2922_v48 = vadd.f32 %v4726_v42, %v6086_v43  ;;  %v2980_v49 = vadd.f32 %v4813_v2, %v6400_v37  ;;  %v2282_v52 = vpop.f32.mrb[97].mxu0  ;;  %v2572_v53 = vpop.f32.mrb[73].mxu1  ;;  %v6523_v28 = vadd.f32 %v3369_v27, %v5761_v63 }
 0x265   : > { %v3241_v38 = vmax.f32 %v3112_v24, 0.0  ;;  %v2921_v22 = vadd.f32 %v2282_v52, %v6092_v61  ;;  %v2979_v45 = vadd.f32 %v2572_v53, %v6404_v33  ;;  %v6529_v37 = vadd.f32 %v3368_v46, %v5750_v60 }
 0x266   : > { %v3371_v58 = vmul.f32 %v6484_v20, %v3242_v51  ;;  %v3057_v21 = vadd.f32 %v6467_v26, %v2922_v48  ;;  %v3115_v43 = vadd.f32 %v6467_v26, %v2980_v49 }
 0x267   : > { %v3370_v55 = vmul.f32 %v6484_v20, %v3241_v38  ;;  %v3056_v2 = vadd.f32 %v6467_v26, %v2921_v22  ;;  %v3114_v61 = vadd.f32 %v6467_v26, %v2979_v45  ;;  %v4729_v50 = vpop.f32.mrb[98].mxu0  ;;  %v4816_v33 = vpop.f32.mrb[74].mxu1 }
 0x268   : > { %v6535_v63 = vadd.f32 %v3371_v58, %v5775_v3  ;;  %v3186_v23 = vmax.f32 %v3057_v21, 0.0  ;;  %v3244_v27 = vmax.f32 %v3115_v43, 0.0  ;;  %v2924_v40 = vadd.f32 %v4729_v50, %v6110_v54  ;;  %v2292_v24 = vpop.f32.mrb[99].mxu0  ;;  %v2582_v42 = vpop.f32.mrb[75].mxu1 }
 0x269   : > { %v6539_v60 = vadd.f32 %v3370_v55, %v5764_v1  ;;  %v3185_v46 = vmax.f32 %v3056_v2, 0.0  ;;  %v3243_v51 = vmax.f32 %v3114_v61, 0.0  ;;  %v2982_v48 = vadd.f32 %v4816_v33, %v6406_v29 }
 0x26a   : > { %v3315_v49 = vmul.f32 %v6484_v20, %v3186_v23  ;;  %v3373_v52 = vmul.f32 %v6484_v20, %v3244_v27  ;;  %v3059_v3 = vadd.f32 %v6467_v26, %v2924_v40  ;;  %v2923_v53 = vadd.f32 %v2292_v24, %v6116_v39 }
 0x26b   : > { %v3314_v1 = vmul.f32 %v6484_v20, %v3185_v46  ;;  %v3372_v54 = vmul.f32 %v6484_v20, %v3243_v51  ;;  %v3117_v29 = vadd.f32 %v6467_v26, %v2982_v48  ;;  %v2981_v38 = vadd.f32 %v2582_v42, %v6408_v30  ;;  %v4732_v22 = vpop.f32.mrb[100].mxu0  ;;  %v4819_v45 = vpop.f32.mrb[76].mxu1 }
 0x26c   : > { %v3443_v39 = vadd.f32 %v3315_v49, %v5792_v6  ;;  %v6559_v58 = vadd.f32 %v3373_v52, %v5795_v7  ;;  %v3188_v21 = vmax.f32 %v3059_v3, 0.0  ;;  %v3058_v43 = vadd.f32 %v6467_v26, %v2923_v53  ;;  %v2302_v55 = vpop.f32.mrb[101].mxu0  ;;  %v2592_v2 = vpop.f32.mrb[77].mxu1 }
 0x26d   : > { %v3442_v61 = vadd.f32 %v3314_v1, %v5778_v4  ;;  %v6564_v50 = vadd.f32 %v3372_v54, %v5781_v5  ;;  %v3246_v33 = vmax.f32 %v3117_v29, 0.0  ;;  %v3116_v30 = vadd.f32 %v6467_v26, %v2981_v38 }
 0x26e   : > { %3571 = vst.msk [vmem:[%s6551_s9 + $0x8] sm:$0xff] %vm477_vm0, %v3443_v39  ;;  %v3317_v6 = vmul.f32 %v6484_v20, %v3188_v21  ;;  %v3187_v23 = vmax.f32 %v3058_v43, 0.0  ;;  %v2926_v7 = vadd.f32 %v4732_v22, %v6134_v41  ;;  %v2984_v27 = vadd.f32 %v4819_v45, %v6410_v31 }
 0x26f   : > { %3570 = vst.msk [vmem:[%s6551_s9] sm:$0xff] %vm477_vm0, %v3442_v61  ;;  %v3375_v40 = vmul.f32 %v6484_v20, %v3246_v33  ;;  %v3245_v4 = vmax.f32 %v3116_v30, 0.0  ;;  %v2925_v5 = vadd.f32 %v2302_v55, %v6140_v0  ;;  %v2983_v24 = vadd.f32 %v2592_v2, %v6412_v35  ;;  %v4735_v42 = vpop.f32.mrb[102].mxu0  ;;  %v4822_v46 = vpop.f32.mrb[32].mxu1 }
 0x270   : > { %v3445_v51 = vadd.f32 %v3317_v6, %v5812_v10  ;;  %v3316_v48 = vmul.f32 %v6484_v20, %v3187_v23  ;;  %v3061_v41 = vadd.f32 %v6467_v26, %v2926_v7  ;;  %v3119_v31 = vadd.f32 %v6467_v26, %v2984_v27  ;;  %v2312_v49 = vpop.f32.mrb[103].mxu0  ;;  %v2602_v52 = vpop.f32.mrb[33].mxu1 }
 0x271   : > { %v6582_v3 = vadd.f32 %v3375_v40, %v5815_v11  ;;  %v3374_v0 = vmul.f32 %v6484_v20, %v3245_v4  ;;  %v3060_v35 = vadd.f32 %v6467_v26, %v2925_v5  ;;  %v3118_v53 = vadd.f32 %v6467_v26, %v2983_v24 }
 0x272   : > { %3573 = vst.msk [vmem:[%s6551_s9 + $0x18] sm:$0xff] %vm477_vm0, %v3445_v51  ;;  %v3444_v10 = vadd.f32 %v3316_v48, %v5798_v8  ;;  %v3190_v1 = vmax.f32 %v3061_v41, 0.0  ;;  %v3248_v54 = vmax.f32 %v3119_v31, 0.0  ;;  %v2928_v29 = vadd.f32 %v4735_v42, %v6158_v32 }
 0x273   : > { %v6592_v38 = vadd.f32 %v3374_v0, %v5801_v9  ;;  %v3189_v22 = vmax.f32 %v3060_v35, 0.0  ;;  %v3247_v11 = vmax.f32 %v3118_v53, 0.0  ;;  %v3121_v45 = vadd.f32 %v4822_v46, %v6467_v26  ;;  %v4738_v39 = vpop.f32.mrb[104].mxu0  ;;  %v4825_v21 = vpop.f32.mrb[34].mxu1 }
 0x274   : > { %3572 = vst.msk [vmem:[%s6551_s9 + $0x10] sm:$0xff] %vm477_vm0, %v3444_v10  ;;  %v3319_v43 = vmul.f32 %v6484_v20, %v3190_v1  ;;  %v3377_v55 = vmul.f32 %v6484_v20, %v3248_v54  ;;  %v3063_v8 = vadd.f32 %v6467_v26, %v2928_v29  ;;  %v2927_v2 = vadd.f32 %v2312_v49, %v6164_v57  ;;  %v2322_v32 = vpop.f32.mrb[105].mxu0  ;;  %v2612_v9 = vpop.f32.mrb[35].mxu1 }
 0x275   : > { %v3318_v61 = vmul.f32 %v6484_v20, %v3189_v22  ;;  %v3376_v33 = vmul.f32 %v6484_v20, %v3247_v11  ;;  %v3250_v30 = vmax.f32 %v3121_v45, 0.0  ;;  %v3120_v6 = vadd.f32 %v6467_v26, %v2602_v52 }
 0x276   : > { %v3447_v23 = vadd.f32 %v3319_v43, %v5832_v14  ;;  %v6606_v7 = vadd.f32 %v3377_v55, %v5835_v15  ;;  %v3192_v27 = vmax.f32 %v3063_v8, 0.0  ;;  %v3062_v40 = vadd.f32 %v6467_v26, %v2927_v2  ;;  %v7681_v8 = vld [vmem:[#allocation62_spill] sm:$0xff] }
 0x277   : > { %v3446_v57 = vadd.f32 %v3318_v61, %v5818_v12  ;;  %v6611_v4 = vadd.f32 %v3376_v33, %v5821_v13  ;;  %v3379_v5 = vmul.f32 %v6484_v20, %v3250_v30  ;;  %v3249_v24 = vmax.f32 %v3120_v6, 0.0  ;;  %v4741_v42 = vpop.f32.mrb[106].mxu0  ;;  %v4828_v46 = vpop.f32.mrb[36].mxu1  ;;  %v7683_v30 = vld [vmem:[#allocation4_spill] sm:$0xff] }
 0x278   : > { %3575 = vst.msk [vmem:[%s6551_s9 + $0x28] sm:$0xff] %vm477_vm0, %v3447_v23  ;;  %v3321_v14 = vmul.f32 %v6484_v20, %v3192_v27  ;;  %v3191_v15 = vmax.f32 %v3062_v40, 0.0  ;;  %v2930_v51 = vadd.f32 %v4738_v39, %v6182_v62  ;;  %v3123_v48 = vadd.f32 %v4825_v21, %v6467_v26  ;;  %v2332_v41 = vpop.f32.mrb[107].mxu0  ;;  %v2622_v31 = vpop.f32.mrb[37].mxu1 }
 0x279   : > { %3574 = vst.msk [vmem:[%s6551_s9 + $0x20] sm:$0xff] %vm477_vm0, %v3446_v57  ;;  %v6622_v12 = vadd.f32 %v3379_v5, %v5855_v19  ;;  %v3378_v13 = vmul.f32 %v6484_v20, %v3249_v24  ;;  %v2929_v49 = vadd.f32 %v2322_v32, %v6188_v34  ;;  %v3122_v52 = vadd.f32 %v6467_v26, %v2612_v9  ;;  %v7682_v32 = vld [vmem:[#allocation6_spill] sm:$0xff]  ;;  %v7684_v5 = vld [vmem:[#allocation5_spill] sm:$0xff] }
 0x27a   : > { %v3449_v0 = vadd.f32 %v3321_v14, %v5852_v18  ;;  %v3320_v62 = vmul.f32 %v6484_v20, %v3191_v15  ;;  %v3065_v35 = vadd.f32 %v6467_v26, %v2930_v51  ;;  %v3252_v53 = vmax.f32 %v3123_v48, 0.0  ;;  %v7685_v14 = vld [vmem:[#allocation67_spill] sm:$0xff] }
 0x27b   : > { %v6631_v10 = vadd.f32 %v3378_v13, %v5841_v17  ;;  %v3064_v1 = vadd.f32 %v6467_v26, %v2929_v49  ;;  %v3251_v19 = vmax.f32 %v3122_v52, 0.0  ;;  %v2932_v54 = vadd.f32 %v4741_v42, %v6206_v56  ;;  %v4744_v29 = vpop.f32.mrb[108].mxu0  ;;  %v4831_v34 = vpop.f32.mrb[38].mxu1 }
 0x27c   : > { %3577 = vst.msk [vmem:[%s6551_s9 + $0x38] sm:$0xff] %vm477_vm0, %v3449_v0  ;;  %v3448_v18 = vadd.f32 %v3320_v62, %v5838_v16  ;;  %v3194_v22 = vmax.f32 %v3065_v35, 0.0  ;;  %v3381_v11 = vmul.f32 %v6484_v20, %v3252_v53  ;;  %v3125_v45 = vadd.f32 %v4828_v46, %v6467_v26  ;;  %v2342_v39 = vpop.f32.mrb[109].mxu0  ;;  %v2632_v17 = vpop.f32.mrb[39].mxu1  ;;  %v7687_v0 = vld [vmem:[#allocation10_spill] sm:$0xff] }
 0x27d   : > { %v3193_v21 = vmax.f32 %v3064_v1, 0.0  ;;  %v3380_v43 = vmul.f32 %v6484_v20, %v3251_v19  ;;  %v3067_v55 = vadd.f32 %v6467_v26, %v2932_v54  ;;  %v2931_v56 = vadd.f32 %v2332_v41, %v7681_v8  ;;  %v7686_v41 = vld [vmem:[#allocation3_spill] sm:$0xff]  ;;  %v7688_v1 = vld [vmem:[#allocation68_spill] sm:$0xff]  ;;  %v7689_v54 = vld [vmem:[#allocation9_spill] sm:$0xff] }
 0x27e   : > { %3576 = vst.msk [vmem:[%s6551_s9 + $0x30] sm:$0xff] %vm477_vm0, %v3448_v18  ;;  %v3323_v2 = vmul.f32 %v6484_v20, %v3194_v22  ;;  %v6647_v16 = vadd.f32 %v3381_v11, %v7682_v32  ;;  %v3254_v9 = vmax.f32 %v3125_v45, 0.0  ;;  %v3124_v61 = vadd.f32 %v6467_v26, %v2622_v31 }
 0x27f   : > { %v3322_v33 = vmul.f32 %v6484_v20, %v3193_v21  ;;  %v6652_v6 = vadd.f32 %v3380_v43, %v7683_v30  ;;  %v3196_v23 = vmax.f32 %v3067_v55, 0.0  ;;  %v3066_v27 = vadd.f32 %v6467_v26, %v2931_v56  ;;  %v4747_v40 = vpop.f32.mrb[110].mxu0  ;;  %v4834_v57 = vpop.f32.mrb[40].mxu1  ;;  %v7690_v21 = vld [vmem:[#allocation8_spill] sm:$0xff] }
 0x280   : > { %v3451_v24 = vadd.f32 %v3323_v2, %v7684_v5  ;;  %v3383_v42 = vmul.f32 %v6484_v20, %v3254_v9  ;;  %v3253_v46 = vmax.f32 %v3124_v61, 0.0  ;;  %v2934_v15 = vadd.f32 %v4744_v29, %v7685_v14  ;;  %v2352_v51 = vpop.f32.mrb[111].mxu0  ;;  %v2642_v48 = vpop.f32.mrb[41].mxu1  ;;  %v7691_v56 = vld [vmem:[#allocation72_spill] sm:$0xff]  ;;  %v7692_v9 = vld [vmem:[#allocation7_spill] sm:$0xff] }
 0x281   : > { %v3450_v31 = vadd.f32 %v3322_v33, %v7686_v41  ;;  %v3325_v13 = vmul.f32 %v6484_v20, %v3196_v23  ;;  %v3195_v49 = vmax.f32 %v3066_v27, 0.0  ;;  %v3127_v52 = vadd.f32 %v4831_v34, %v6467_v26 }
 0x282   : > { %3579 = vst.msk [vmem:[%s6551_s9 + $0x48] sm:$0xff] %vm477_vm0, %v3451_v24  ;;  %v6664_v62 = vadd.f32 %v3383_v42, %v7687_v0  ;;  %v3382_v35 = vmul.f32 %v6484_v20, %v3253_v46  ;;  %v3069_v53 = vadd.f32 %v6467_v26, %v2934_v15  ;;  %v2933_v19 = vadd.f32 %v2342_v39, %v7688_v1  ;;  %v7693_v24 = vld [vmem:[#allocation73_spill] sm:$0xff]  ;;  %v7696_v1 = vld [vmem:[#allocation11_spill] sm:$0xff] }
 0x283   : > { %3578 = vst.msk [vmem:[%s6551_s9 + $0x40] sm:$0xff] %vm477_vm0, %v3450_v31  ;;  %v3453_v29 = vadd.f32 %v3325_v13, %v7689_v54  ;;  %v3324_v18 = vmul.f32 %v6484_v20, %v3195_v49  ;;  %v3256_v22 = vmax.f32 %v3127_v52, 0.0  ;;  %v3126_v34 = vadd.f32 %v6467_v26, %v2632_v17  ;;  %v4750_v11 = vpop.f32.mrb[112].mxu0  ;;  %v4837_v45 = vpop.f32.mrb[42].mxu1  ;;  %v7695_v13 = vld [vmem:[#allocation12_spill] sm:$0xff] }
 0x284   : > { %v6675_v43 = vadd.f32 %v3382_v35, %v7690_v21  ;;  %v3198_v55 = vmax.f32 %v3069_v53, 0.0  ;;  %v3068_v8 = vadd.f32 %v6467_v26, %v2933_v19  ;;  %v2936_v39 = vadd.f32 %v4747_v40, %v7691_v56  ;;  %v2362_v2 = vpop.f32.mrb[113].mxu0  ;;  %v2652_v32 = vpop.f32.mrb[43].mxu1  ;;  %v7694_v40 = vld [vmem:[#allocation13_spill] sm:$0xff]  ;;  %v7698_v56 = vld [vmem:[#allocation15_spill] sm:$0xff] }
 0x285   : > { %3581 = vst.msk [vmem:[%s6551_s9 + $0x58] sm:$0xff] %vm477_vm0, %v3453_v29  ;;  %v3452_v61 = vadd.f32 %v3324_v18, %v7692_v9  ;;  %v3385_v33 = vmul.f32 %v6484_v20, %v3256_v22  ;;  %v3255_v17 = vmax.f32 %v3126_v34, 0.0  ;;  %v3129_v30 = vadd.f32 %v4834_v57, %v6467_v26 }
 0x286   : > { %v3327_v23 = vmul.f32 %v6484_v20, %v3198_v55  ;;  %v3197_v27 = vmax.f32 %v3068_v8, 0.0  ;;  %v3071_v5 = vadd.f32 %v6467_v26, %v2936_v39  ;;  %v2935_v42 = vadd.f32 %v2352_v51, %v7693_v24 }
 0x287   : > { %3580 = vst.msk [vmem:[%s6551_s9 + $0x50] sm:$0xff] %vm477_vm0, %v3452_v61  ;;  %v6690_v46 = vadd.f32 %v3385_v33, %v7694_v40  ;;  %v3384_v14 = vmul.f32 %v6484_v20, %v3255_v17  ;;  %v3258_v15 = vmax.f32 %v3129_v30, 0.0  ;;  %v3128_v41 = vadd.f32 %v6467_v26, %v2642_v48  ;;  %v4753_v57 = vpop.f32.mrb[114].mxu0  ;;  %v4840_v31 = vpop.f32.mrb[44].mxu1  ;;  %v7697_v48 = vld [vmem:[#allocation76_spill] sm:$0xff]  ;;  %v7699_v33 = vld [vmem:[#allocation77_spill] sm:$0xff] }
 0x288   : > { %v3455_v49 = vadd.f32 %v3327_v23, %v7695_v13  ;;  %v3326_v52 = vmul.f32 %v6484_v20, %v3197_v27  ;;  %v3200_v0 = vmax.f32 %v3071_v5, 0.0  ;;  %v3070_v51 = vadd.f32 %v6467_v26, %v2935_v42  ;;  %v2372_v35 = vpop.f32.mrb[115].mxu0  ;;  %v2662_v53 = vpop.f32.mrb[45].mxu1  ;;  %v7701_v13 = vld [vmem:[#allocation80_spill] sm:$0xff] }
 0x289   : > { %v6698_v19 = vadd.f32 %v3384_v14, %v7696_v1  ;;  %v3387_v54 = vmul.f32 %v6484_v20, %v3258_v15  ;;  %v3257_v29 = vmax.f32 %v3128_v41, 0.0  ;;  %v2938_v18 = vadd.f32 %v4750_v11, %v7697_v48  ;;  %v7700_v14 = vld [vmem:[#allocation14_spill] sm:$0xff] }
 0x28a   : > { %3583 = vst.msk [vmem:[%s6551_s9 + $0x68] sm:$0xff] %vm477_vm0, %v3455_v49  ;;  %v3329_v21 = vmul.f32 %v6484_v20, %v3200_v0  ;;  %v3199_v55 = vmax.f32 %v3070_v51, 0.0  ;;  %v3131_v8 = vadd.f32 %v4837_v45, %v6467_v26  ;;  %v2937_v17 = vadd.f32 %v2362_v2, %v7699_v33 }
 0x28b   : > { %v6708_v39 = vadd.f32 %v3387_v54, %v7698_v56  ;;  %v3386_v9 = vmul.f32 %v6484_v20, %v3257_v29  ;;  %v3073_v61 = vadd.f32 %v6467_v26, %v2938_v18  ;;  %v4756_v11 = vpop.f32.mrb[116].mxu0  ;;  %v4843_v30 = vpop.f32.mrb[46].mxu1  ;;  %v3130_v24 = vadd.f32 %v6467_v26, %v2652_v32  ;;  %v7702_v18 = vld [vmem:[#allocation81_spill] sm:$0xff] }
 0x28c   : > { %v3328_v5 = vmul.f32 %v6484_v20, %v3199_v55  ;;  %v3260_v45 = vmax.f32 %v3131_v8, 0.0  ;;  %v2382_v42 = vpop.f32.mrb[117].mxu0  ;;  %v2672_v40 = vpop.f32.mrb[47].mxu1  ;;  %v3072_v2 = vadd.f32 %v6467_v26, %v2937_v17  ;;  %v2940_v49 = vadd.f32 %v4753_v57, %v7701_v13  ;;  %v7703_v57 = vld [vmem:[#allocation17_spill] sm:$0xff] }
 0x28d   : > { %v6719_v15 = vadd.f32 %v3386_v9, %v7700_v14  ;;  %v3202_v41 = vmax.f32 %v3073_v61, 0.0  ;;  %v3259_v1 = vmax.f32 %v3130_v24, 0.0  ;;  %v3133_v32 = vadd.f32 %v4840_v31, %v6467_v26 }
 0x28e   : > { %v3389_v51 = vmul.f32 %v6484_v20, %v3260_v45  ;;  %v3201_v29 = vmax.f32 %v3072_v2, 0.0  ;;  %v3075_v48 = vadd.f32 %v6467_v26, %v2940_v49  ;;  %v3132_v31 = vadd.f32 %v6467_v26, %v2662_v53 }
 0x28f   : > { %v3331_v54 = vmul.f32 %v6484_v20, %v3202_v41  ;;  %v3388_v8 = vmul.f32 %v6484_v20, %v3259_v1  ;;  %v3262_v56 = vmax.f32 %v3133_v32, 0.0  ;;  %v7705_v41 = vld [vmem:[#allocation84_spill] sm:$0xff]  ;;  %v7706_v32 = vld [vmem:[#allocation19_spill] sm:$0xff] }
 0x290   : > { %v6734_v55 = vadd.f32 %v3389_v51, %v7703_v57  ;;  %v3261_v14 = vmax.f32 %v3132_v31, 0.0  ;;  %v2942_v2 = vadd.f32 %v4756_v11, %v7705_v41 }
 0x291   : > { %v5136_v22 = vld [vmem:[%s5711_s27 + $0x60] sm:$0xff]  ;;  %v3391_v24 = vmul.f32 %v6484_v20, %v3262_v56 }
 0x292   : > { %v3454_v34 = vadd.f32 %v5136_v22, %v3326_v52  ;;  %v2939_v22 = vadd.f32 %v2372_v35, %v7702_v18  ;;  %v3330_v35 = vmul.f32 %v6484_v20, %v3201_v29  ;;  %v3390_v29 = vmul.f32 %v6484_v20, %v3261_v14 }
 0x293   : > { %v3077_v11 = vadd.f32 %v6467_v26, %v2942_v2 }
 0x294   : > { %3582 = vst.msk [vmem:[%s6551_s9 + $0x60] sm:$0xff] %vm477_vm0, %v3454_v34  ;;  %v4759_v34 = vpop.f32.mrb[118].mxu0 }
 0x295   : > { %v2392_v9 = vpop.f32.mrb[119].mxu0 }
 0x296   : > { %v4762_v51 = vpop.f32.mrb[120].mxu0 }
 0x29b   : > { %v5137_v23 = vld [vmem:[%s5711_s27 + $0x78] sm:$0xff] }
 0x29c   : > { %v3457_v27 = vadd.f32 %v5137_v23, %v3329_v21  ;;  %v4846_v21 = vpop.f32.mrb[48].mxu1  ;;  %v3204_v23 = vmax.f32 %v3075_v48, 0.0  ;;  %v7707_v48 = vld [vmem:[#allocation85_spill] sm:$0xff] }
 0x29d   : > { %v2682_v61 = vpop.f32.mrb[49].mxu1  ;;  %v2941_v18 = vadd.f32 %v2382_v42, %v7707_v48  ;;  %v7711_v48 = vld [vmem:[#allocation21_spill] sm:$0xff] }
 0x29e   : > { %3585 = vst.msk [vmem:[%s6551_s9 + $0x78] sm:$0xff] %vm477_vm0, %v3457_v27  ;;  %v3074_v27 = vadd.f32 %v6467_v26, %v2939_v22  ;;  %v3333_v49 = vmul.f32 %v6484_v20, %v3204_v23  ;;  %v4849_v1 = vpop.f32.mrb[50].mxu1  ;;  %v2402_v22 = vpop.f32.mrb[121].mxu0  ;;  %v3206_v23 = vmax.f32 %v3077_v11, 0.0 }
 0x29f   : > { %v2692_v57 = vpop.f32.mrb[51].mxu1 }
 0x2a5   : > { %v5138_v52 = vld [vmem:[%s5711_s27 + $0x70] sm:$0xff] }
 0x2a6   : > { %v3456_v0 = vadd.f32 %v5138_v52, %v3328_v5  ;;  %v7704_v5 = vld [vmem:[#allocation16_spill] sm:$0xff]  ;;  %v3203_v52 = vmax.f32 %v3074_v27, 0.0  ;;  %v3076_v27 = vadd.f32 %v6467_v26, %v2941_v18 }
 0x2a7   : > { %v6742_v45 = vadd.f32 %v3388_v8, %v7704_v5  ;;  %v7709_v5 = vld [vmem:[#allocation88_spill] sm:$0xff] }
 0x2a8   : > { %3584 = vst.msk [vmem:[%s6551_s9 + $0x70] sm:$0xff] %vm477_vm0, %v3456_v0  ;;  %v3135_v0 = vadd.f32 %v4843_v30, %v6467_v26  ;;  %v3332_v30 = vmul.f32 %v6484_v20, %v3203_v52  ;;  %v2944_v42 = vadd.f32 %v4759_v34, %v7709_v5  ;;  %v3205_v34 = vmax.f32 %v3076_v27, 0.0 }
 0x2aa   : > { %v3264_v31 = vmax.f32 %v3135_v0, 0.0  ;;  %v3079_v52 = vadd.f32 %v6467_v26, %v2944_v42  ;;  %v7710_v0 = vld [vmem:[#allocation89_spill] sm:$0xff]  ;;  %v7713_v42 = vld [vmem:[#allocation92_spill] sm:$0xff] }
 0x2ac   : > { %v3393_v41 = vmul.f32 %v6484_v20, %v3264_v31  ;;  %v3208_v31 = vmax.f32 %v3079_v52, 0.0 }
 0x2ae   : > { %v6781_v18 = vadd.f32 %v3393_v41, %v7711_v48 }
 0x2af   : > { %v5139_v33 = vld [vmem:[%s5711_s27 + $0x88] sm:$0xff] }
 0x2b0   : > { %v3459_v17 = vadd.f32 %v5139_v33, %v3331_v54  ;;  %v6752_v54 = vadd.f32 %v3391_v24, %v7706_v32  ;;  %v3134_v33 = vadd.f32 %v6467_v26, %v2672_v40  ;;  %v4765_v40 = vpop.f32.mrb[122].mxu0  ;;  %v2943_v32 = vadd.f32 %v2392_v9, %v7710_v0 }
 0x2b1   : > { %v3334_v9 = vmul.f32 %v6484_v20, %v3205_v34 }
 0x2b2   : > { %3587 = vst.msk [vmem:[%s6551_s9 + $0x88] sm:$0xff] %vm477_vm0, %v3459_v17  ;;  %v7708_v17 = vld [vmem:[#allocation18_spill] sm:$0xff]  ;;  %v3263_v2 = vmax.f32 %v3134_v33, 0.0  ;;  %v3078_v33 = vadd.f32 %v6467_v26, %v2943_v32 }
 0x2b9   : > { %v5140_v53 = vld [vmem:[%s5711_s27 + $0x80] sm:$0xff] }
 0x2ba   : > { %v3458_v13 = vadd.f32 %v5140_v53, %v3330_v35  ;;  %v6763_v35 = vadd.f32 %v3390_v29, %v7708_v17  ;;  %v3137_v53 = vadd.f32 %v4846_v21, %v6467_v26  ;;  %v2412_v29 = vpop.f32.mrb[123].mxu0  ;;  %v3392_v21 = vmul.f32 %v6484_v20, %v3263_v2  ;;  %v7712_v17 = vld [vmem:[#allocation20_spill] sm:$0xff] }
 0x2bb   : > { %v3337_v2 = vmul.f32 %v6484_v20, %v3208_v31 }
 0x2bc   : > { %3586 = vst.msk [vmem:[%s6551_s9 + $0x80] sm:$0xff] %vm477_vm0, %v3458_v13  ;;  %v4852_v13 = vpop.f32.mrb[52].mxu1 }
 0x2bd   : > { %v2702_v11 = vpop.f32.mrb[53].mxu1 }
 0x2c3   : > { %v5141_v8 = vld [vmem:[%s5711_s27 + $0x98] sm:$0xff] }
 0x2c4   : > { %v3461_v56 = vadd.f32 %v5141_v8, %v3333_v49  ;;  %v3335_v49 = vmul.f32 %v6484_v20, %v3206_v23  ;;  %v3266_v8 = vmax.f32 %v3137_v53, 0.0  ;;  %v6792_v23 = vadd.f32 %v3392_v21, %v7712_v17  ;;  %v7715_v21 = vld [vmem:[#allocation93_spill] sm:$0xff] }
 0x2c5   : > { %v3207_v53 = vmax.f32 %v3078_v33, 0.0 }
 0x2c6   : > { %3589 = vst.msk [vmem:[%s6551_s9 + $0x98] sm:$0xff] %vm477_vm0, %v3461_v56  ;;  %v3395_v27 = vmul.f32 %v6484_v20, %v3266_v8  ;;  %v2945_v8 = vadd.f32 %v2402_v22, %v7715_v21  ;;  %v7717_v22 = vld [vmem:[#allocation96_spill] sm:$0xff]  ;;  %v7719_v21 = vld [vmem:[#allocation25_spill] sm:$0xff] }
 0x2c8   : > { %v3080_v17 = vadd.f32 %v6467_v26, %v2945_v8 }
 0x2cd   : > { %v5142_v24 = vld [vmem:[%s5711_s27 + $0x90] sm:$0xff] }
 0x2ce   : > { %v3460_v14 = vadd.f32 %v5142_v24, %v3332_v30  ;;  %3621 = vst.msk [vmem:[%s6551_s9 + $0x198] sm:$0xff] %vm477_vm0, %v6505_v44  ;;  %v3136_v44 = vadd.f32 %v6467_v26, %v2682_v61  ;;  %3620 = vst.msk [vmem:[%s6551_s9 + $0x190] sm:$0xff] %vm477_vm0, %v6508_v47  ;;  %v2946_v24 = vadd.f32 %v4762_v51, %v7713_v42  ;;  %v4768_v61 = vpop.f32.mrb[124].mxu0  ;;  %v6796_v47 = vpop.f32.mrb[54].mxu1  ;;  %v7714_v51 = vld [vmem:[#allocation23_spill] sm:$0xff] }
 0x2cf   : > { %v6803_v34 = vpop.f32.mrb[125].mxu0  ;;  %v6805_v52 = vpop.f32.mrb[55].mxu1  ;;  %v6811_v0 = vadd.f32 %v3395_v27, %v7714_v51  ;;  %v2948_v27 = vadd.f32 %v4765_v40, %v7717_v22 }
 0x2d0   : > { %3588 = vst.msk [vmem:[%s6551_s9 + $0x90] sm:$0xff] %vm477_vm0, %v3460_v14  ;;  %v3265_v5 = vmax.f32 %v3136_v44, 0.0  ;;  %v3081_v48 = vadd.f32 %v6467_v26, %v2946_v24  ;;  %v6829_v42 = vpop.f32.mrb[56].mxu1 }
 0x2d1   : > { %v3083_v51 = vadd.f32 %v6467_v26, %v2948_v27  ;;  %v7721_v27 = vld [vmem:[#allocation100_spill] sm:$0xff] }
 0x2d2   : > { %v3394_v32 = vmul.f32 %v6484_v20, %v3265_v5  ;;  %v3210_v33 = vmax.f32 %v3081_v48, 0.0  ;;  %v4771_v5 = vpop.f32.mrb[126].mxu0 }
 0x2d4   : > { %v3339_v40 = vmul.f32 %v6484_v20, %v3210_v33 }
 0x2d7   : > { %v5143_v56 = vld [vmem:[%s5711_s27 + $0xa8] sm:$0xff] }
 0x2d8   : > { %v3463_v30 = vadd.f32 %v5143_v56, %v3335_v49  ;;  %v3139_v49 = vadd.f32 %v4849_v1, %v6467_v26  ;;  %v3336_v56 = vmul.f32 %v6484_v20, %v3207_v53  ;;  %v6838_v53 = vpop.f32.mrb[57].mxu1 }
 0x2d9   : > { %v6859_v33 = vpop.f32.mrb[58].mxu1 }
 0x2da   : > { %3591 = vst.msk [vmem:[%s6551_s9 + $0xa8] sm:$0xff] %vm477_vm0, %v3463_v30  ;;  %v3268_v30 = vmax.f32 %v3139_v49, 0.0  ;;  %v3209_v49 = vmax.f32 %v3080_v17, 0.0 }
 0x2e1   : > { %v5144_v14 = vld [vmem:[%s5711_s27 + $0xa0] sm:$0xff] }
 0x2e2   : > { %v3462_v41 = vadd.f32 %v5144_v14, %v3334_v9  ;;  %3623 = vst.msk [vmem:[%s6551_s9 + $0x1a8] sm:$0xff] %vm477_vm0, %v6513_v36  ;;  %v3138_v36 = vadd.f32 %v6467_v26, %v2692_v57  ;;  %v7716_v9 = vld [vmem:[#allocation22_spill] sm:$0xff]  ;;  %v3397_v14 = vmul.f32 %v6484_v20, %v3268_v30  ;;  %v3338_v30 = vmul.f32 %v6484_v20, %v3209_v49 }
 0x2e3   : > { %v6825_v31 = vadd.f32 %v3394_v32, %v7716_v9  ;;  %v7718_v32 = vld [vmem:[#allocation97_spill] sm:$0xff] }
 0x2e4   : > { %3590 = vst.msk [vmem:[%s6551_s9 + $0xa0] sm:$0xff] %vm477_vm0, %v3462_v41  ;;  %v3141_v41 = vadd.f32 %v4852_v13, %v6467_v26  ;;  %v2947_v48 = vadd.f32 %v2412_v29, %v7718_v32  ;;  %v3525_v8 = vadd.f32 %v3397_v14, %v7719_v21  ;;  %v6868_v14 = vpop.f32.mrb[59].mxu1 }
 0x2e6   : > { %v3082_v29 = vadd.f32 %v6467_v26, %v2947_v48 }
 0x2e8   : > { %v3211_v49 = vmax.f32 %v3082_v29, 0.0 }
 0x2eb   : > { %v5145_v1 = vld [vmem:[%s5711_s27 + $0xb8] sm:$0xff] }
 0x2ec   : > { %v3465_v44 = vadd.f32 %v5145_v1, %v3337_v2  ;;  %3622 = vst.msk [vmem:[%s6551_s9 + $0x1a0] sm:$0xff] %vm477_vm0, %v6518_v59  ;;  %v3267_v59 = vmax.f32 %v3138_v36, 0.0  ;;  %v6836_v2 = vpop.f32.mrb[127].mxu0  ;;  %v3270_v1 = vmax.f32 %v3141_v41, 0.0  ;;  %v3212_v36 = vmax.f32 %v3083_v51, 0.0 }
 0x2ed   : > { %v6857_v9 = vpop.f32.mrb[32].mxu0  ;;  %v3143_v51 = vadd.f32 %v6796_v47, %v6467_v26 }
 0x2ee   : > { %3593 = vst.msk [vmem:[%s6551_s9 + $0xb8] sm:$0xff] %vm477_vm0, %v3465_v44  ;;  %v3396_v13 = vmul.f32 %v6484_v20, %v3267_v59  ;;  %v3140_v44 = vadd.f32 %v6467_v26, %v2702_v11  ;;  %v7720_v11 = vld [vmem:[#allocation24_spill] sm:$0xff] }
 0x2f0   : > { %v3524_v17 = vadd.f32 %v3396_v13, %v7720_v11  ;;  %v3269_v22 = vmax.f32 %v3140_v44, 0.0  ;;  %v3340_v44 = vmul.f32 %v6484_v20, %v3211_v49 }
 0x2f2   : > { %v3398_v48 = vmul.f32 %v6484_v20, %v3269_v22 }
 0x2f5   : > { %v5146_v24 = vld [vmem:[%s5711_s27 + $0xb0] sm:$0xff] }
 0x2f6   : > { %v3464_v57 = vadd.f32 %v5146_v24, %v3336_v56  ;;  %3625 = vst.msk [vmem:[%s6551_s9 + $0x1b8] sm:$0xff] %vm477_vm0, %v6523_v28  ;;  %3624 = vst.msk [vmem:[%s6551_s9 + $0x1b0] sm:$0xff] %vm477_vm0, %v6529_v37  ;;  %v3399_v37 = vmul.f32 %v6484_v20, %v3270_v1  ;;  %v2950_v24 = vadd.f32 %v4768_v61, %v7721_v27  ;;  %v7722_v61 = vld [vmem:[#allocation27_spill] sm:$0xff] }
 0x2f8   : > { %3592 = vst.msk [vmem:[%s6551_s9 + $0xb0] sm:$0xff] %vm477_vm0, %v3464_v57  ;;  %v6866_v57 = vpop.f32.mrb[33].mxu0  ;;  %v3527_v32 = vadd.f32 %v3399_v37, %v7722_v61  ;;  %v3085_v21 = vadd.f32 %v6467_v26, %v2950_v24 }
 0x2fa   : > { %v3214_v29 = vmax.f32 %v3085_v21, 0.0 }
 0x2ff   : > { %v5147_v28 = vld [vmem:[%s5711_s27 + $0xc8] sm:$0xff] }
 0x300   : > { %v3467_v56 = vadd.f32 %v5147_v28, %v3339_v40  ;;  %3653 = vst.msk [vmem:[%s6551_s9 + $0x298] sm:$0xff] %vm477_vm0, %v3525_v8  ;;  %v3341_v40 = vmul.f32 %v6484_v20, %v3212_v36  ;;  %v7723_v8 = vld [vmem:[#allocation101_spill] sm:$0xff]  ;;  %v3142_v28 = vadd.f32 %v6467_v26, %v6805_v52 }
 0x301   : > { %v2949_v13 = vadd.f32 %v6803_v34, %v7723_v8  ;;  %v7724_v34 = vld [vmem:[#allocation26_spill] sm:$0xff] }
 0x302   : > { %3595 = vst.msk [vmem:[%s6551_s9 + $0xc8] sm:$0xff] %vm477_vm0, %v3467_v56  ;;  %v6892_v56 = vpop.f32.mrb[34].mxu0  ;;  %v3526_v36 = vadd.f32 %v3398_v48, %v7724_v34  ;;  %v7728_v34 = vld [vmem:[#allocation28_spill] sm:$0xff] }
 0x303   : > { %v3084_v11 = vadd.f32 %v6467_v26, %v2949_v13  ;;  %v6904_v52 = vpop.f32.mrb[35].mxu0 }
 0x304   : > { %v6929_v8 = vpop.f32.mrb[36].mxu0 }
 0x309   : > { %v5148_v59 = vld [vmem:[%s5711_s27 + $0xc0] sm:$0xff] }
 0x30a   : > { %v3466_v41 = vadd.f32 %v5148_v59, %v3338_v30  ;;  %3627 = vst.msk [vmem:[%s6551_s9 + $0x1c8] sm:$0xff] %vm477_vm0, %v6535_v63  ;;  %3652 = vst.msk [vmem:[%s6551_s9 + $0x290] sm:$0xff] %vm477_vm0, %v3524_v17  ;;  %v3272_v63 = vmax.f32 %v3143_v51, 0.0  ;;  %v6894_v30 = vpop.f32.mrb[60].mxu1  ;;  %v7725_v17 = vld [vmem:[#allocation104_spill] sm:$0xff]  ;;  %v3271_v59 = vmax.f32 %v3142_v28, 0.0 }
 0x30b   : > { %v2952_v37 = vadd.f32 %v4771_v5, %v7725_v17  ;;  %v6906_v22 = vpop.f32.mrb[61].mxu1  ;;  %v3343_v5 = vmul.f32 %v6484_v20, %v3214_v29  ;;  %v7726_v51 = vld [vmem:[#allocation105_spill] sm:$0xff]  ;;  %v6939_v28 = vpop.f32.mrb[37].mxu0 }
 0x30c   : > { %3594 = vst.msk [vmem:[%s6551_s9 + $0xc0] sm:$0xff] %vm477_vm0, %v3466_v41  ;;  %v3145_v41 = vadd.f32 %v6829_v42, %v6467_v26  ;;  %v2951_v61 = vadd.f32 %v6836_v2, %v7726_v51  ;;  %v3400_v42 = vmul.f32 %v6484_v20, %v3271_v59  ;;  %v6931_v13 = vpop.f32.mrb[62].mxu1  ;;  %v7729_v59 = vld [vmem:[#allocation31_spill] sm:$0xff] }
 0x30d   : > { %v3087_v49 = vadd.f32 %v6467_v26, %v2952_v37 }
 0x30e   : > { %v3274_v21 = vmax.f32 %v3145_v41, 0.0 }
 0x310   : > { %v3403_v29 = vmul.f32 %v6484_v20, %v3274_v21  ;;  %v7730_v21 = vld [vmem:[#allocation30_spill] sm:$0xff] }
 0x313   : > { %v5149_v1 = vld [vmem:[%s5711_s27 + $0xd8] sm:$0xff] }
 0x314   : > { %v3469_v47 = vadd.f32 %v5149_v1, %v3341_v40  ;;  %3626 = vst.msk [vmem:[%s6551_s9 + $0x1c0] sm:$0xff] %vm477_vm0, %v6539_v60  ;;  %3655 = vst.msk [vmem:[%s6551_s9 + $0x2a8] sm:$0xff] %vm477_vm0, %v3527_v32  ;;  %v3401_v60 = vmul.f32 %v6484_v20, %v3272_v63  ;;  %v3213_v40 = vmax.f32 %v3084_v11, 0.0  ;;  %v7727_v32 = vld [vmem:[#allocation29_spill] sm:$0xff]  ;;  %v3086_v63 = vadd.f32 %v6467_v26, %v2951_v61 }
 0x315   : > { %v3089_v11 = vadd.f32 %v6857_v9, %v6467_v26  ;;  %v3531_v9 = vadd.f32 %v3403_v29, %v7729_v59 }
 0x316   : > { %3597 = vst.msk [vmem:[%s6551_s9 + $0xd8] sm:$0xff] %vm477_vm0, %v3469_v47  ;;  %v3529_v48 = vadd.f32 %v3401_v60, %v7727_v32  ;;  %v3342_v47 = vmul.f32 %v6484_v20, %v3213_v40  ;;  %v3147_v60 = vadd.f32 %v6859_v33, %v6467_v26  ;;  %v3088_v40 = vadd.f32 %v6467_v26, %v6866_v57 }
 0x318   : > { %v3276_v32 = vmax.f32 %v3147_v60, 0.0  ;;  %v3148_v60 = vadd.f32 %v6467_v26, %v6906_v22 }
 0x31d   : > { %v5150_v27 = vld [vmem:[%s5711_s27 + $0xd0] sm:$0xff] }
 0x31e   : > { %v3468_v24 = vadd.f32 %v5150_v27, %v3340_v44  ;;  %3629 = vst.msk [vmem:[%s6551_s9 + $0x1d8] sm:$0xff] %vm477_vm0, %v6559_v58  ;;  %3654 = vst.msk [vmem:[%s6551_s9 + $0x2a0] sm:$0xff] %vm477_vm0, %v3526_v36  ;;  %v3144_v58 = vadd.f32 %v6467_v26, %v6838_v53  ;;  %v3216_v44 = vmax.f32 %v3087_v49, 0.0  ;;  %v6941_v53 = vpop.f32.mrb[63].mxu1  ;;  %v3528_v36 = vadd.f32 %v3400_v42, %v7728_v34  ;;  %v6964_v49 = vpop.f32.mrb[38].mxu0 }
 0x31f   : > { %3628 = vst.msk [vmem:[%s6551_s9 + $0x1d0] sm:$0xff] %vm477_vm0, %v6564_v50  ;;  %v6966_v51 = vpop.f32.mrb[78].mxu1  ;;  %v6974_v42 = vpop.f32.mrb[39].mxu0 }
 0x320   : > { %3596 = vst.msk [vmem:[%s6551_s9 + $0xd0] sm:$0xff] %vm477_vm0, %v3468_v24  ;;  %v3273_v50 = vmax.f32 %v3144_v58, 0.0  ;;  %v3345_v27 = vmul.f32 %v6484_v20, %v3216_v44  ;;  %v3215_v24 = vmax.f32 %v3086_v63, 0.0  ;;  %v6976_v57 = vpop.f32.mrb[79].mxu1  ;;  %v3405_v63 = vmul.f32 %v6484_v20, %v3276_v32 }
 0x322   : > { %v3402_v41 = vmul.f32 %v6484_v20, %v3273_v50  ;;  %v3344_v61 = vmul.f32 %v6484_v20, %v3215_v24 }
 0x324   : > { %v3530_v58 = vadd.f32 %v3402_v41, %v7730_v21 }
 0x327   : > { %v5151_v2 = vld [vmem:[%s5711_s27 + $0xe8] sm:$0xff] }
 0x328   : > { %v3471_v1 = vadd.f32 %v5151_v2, %v3343_v5  ;;  %3657 = vst.msk [vmem:[%s6551_s9 + $0x2b8] sm:$0xff] %vm477_vm0, %v3529_v48  ;;  %v3218_v5 = vmax.f32 %v3089_v11, 0.0  ;;  %v3146_v48 = vadd.f32 %v6467_v26, %v6868_v14  ;;  %v3090_v11 = vadd.f32 %v6467_v26, %v6904_v52 }
 0x32a   : > { %3599 = vst.msk [vmem:[%s6551_s9 + $0xe8] sm:$0xff] %vm477_vm0, %v3471_v1  ;;  %v3347_v2 = vmul.f32 %v6484_v20, %v3218_v5  ;;  %v3217_v1 = vmax.f32 %v3088_v40, 0.0  ;;  %v3275_v34 = vmax.f32 %v3146_v48, 0.0  ;;  %v3219_v40 = vmax.f32 %v3090_v11, 0.0  ;;  %v7735_v48 = vld [vmem:[#allocation38_spill] sm:$0xff] }
 0x331   : > { %v5152_v17 = vld [vmem:[%s5711_s27 + $0xe0] sm:$0xff] }
 0x332   : > { %v3470_v37 = vadd.f32 %v5152_v17, %v3342_v47  ;;  %3631 = vst.msk [vmem:[%s6551_s9 + $0x1e8] sm:$0xff] %vm477_vm0, %v6582_v3  ;;  %3656 = vst.msk [vmem:[%s6551_s9 + $0x2b0] sm:$0xff] %vm477_vm0, %v3528_v36  ;;  %v3091_v47 = vadd.f32 %v6892_v56, %v6467_v26  ;;  %v7731_v36 = vld [vmem:[#allocation34_spill] sm:$0xff]  ;;  %v3346_v56 = vmul.f32 %v6484_v20, %v3217_v1  ;;  %v7002_v17 = vpop.f32.mrb[40].mxu0 }
 0x333   : > { %v3475_v29 = vadd.f32 %v3347_v2, %v7731_v36  ;;  %v7012_v59 = vpop.f32.mrb[41].mxu0 }
 0x334   : > { %3598 = vst.msk [vmem:[%s6551_s9 + $0xe0] sm:$0xff] %vm477_vm0, %v3470_v37  ;;  %v3220_v50 = vmax.f32 %v3091_v47, 0.0  ;;  %v7004_v37 = vpop.f32.mrb[80].mxu1  ;;  %v7045_v2 = vpop.f32.mrb[42].mxu0 }
 0x335   : > { %v7014_v52 = vpop.f32.mrb[81].mxu1 }
 0x336   : > { %v3349_v5 = vmul.f32 %v6484_v20, %v3220_v50  ;;  %v7047_v1 = vpop.f32.mrb[82].mxu1 }
 0x338   : > { %v3477_v21 = vadd.f32 %v3349_v5, %v7735_v48 }
 0x33b   : > { %v5153_v3 = vld [vmem:[%s5711_s27 + $0xf8] sm:$0xff] }
 0x33c   : > { %v3473_v33 = vadd.f32 %v5153_v3, %v3345_v27  ;;  %3630 = vst.msk [vmem:[%s6551_s9 + $0x1e0] sm:$0xff] %vm477_vm0, %v6592_v38  ;;  %3659 = vst.msk [vmem:[%s6551_s9 + $0x2c8] sm:$0xff] %vm477_vm0, %v3531_v9  ;;  %v3149_v38 = vadd.f32 %v6894_v30, %v6467_v26  ;;  %v3404_v27 = vmul.f32 %v6484_v20, %v3275_v34  ;;  %v7733_v9 = vld [vmem:[#allocation32_spill] sm:$0xff]  ;;  %v7026_v26 = vld [vmem:[%s7456_s5] ss:$0 sm:$0xff]  ;;  %v7060_v34 = vpop.f32.mrb[83].mxu1 }
 0x33d   : > { %v3474_v41 = vadd.f32 %v3346_v56, %v7733_v9  ;;  %v3093_v22 = vadd.f32 %v7026_v26, %v6929_v8  ;;  %v3151_v32 = vadd.f32 %v7026_v26, %v6931_v13  ;;  %v3348_v8 = vmul.f32 %v6484_v20, %v3219_v40  ;;  %v7736_v13 = vld [vmem:[#allocation39_spill] sm:$0xff]  ;;  %v7085_v5 = vpop.f32.mrb[84].mxu1 }
 0x33e   : > { %3601 = vst.msk [vmem:[%s6551_s9 + $0xf8] sm:$0xff] %vm477_vm0, %v3473_v33  ;;  %v3278_v24 = vmax.f32 %v3149_v38, 0.0  ;;  %v7737_v38 = vld [vmem:[#allocation36_spill] sm:$0xff]  ;;  %v3095_v56 = vadd.f32 %v7026_v26, %v6964_v49 }
 0x33f   : > { %v3476_v36 = vadd.f32 %v3348_v8, %v7737_v38  ;;  %v3097_v8 = vadd.f32 %v7026_v26, %v7002_v17 }
 0x340   : > { %v3407_v33 = vmul.f32 %v6484_v20, %v3278_v24  ;;  %v7740_v24 = vld [vmem:[#allocation42_spill] sm:$0xff]  ;;  %v3224_v9 = vmax.f32 %v3095_v56, 0.0 }
 0x341   : > { %v3226_v38 = vmax.f32 %v3097_v8, 0.0 }
 0x342   : > { %v3535_v47 = vadd.f32 %v3407_v33, %v7736_v13  ;;  %v3353_v48 = vmul.f32 %v6484_v20, %v3224_v9 }
 0x345   : > { %v5154_v14 = vld [vmem:[%s5711_s27 + $0xf0] sm:$0xff] }
 0x346   : > { %v3472_v44 = vadd.f32 %v5154_v14, %v3344_v61  ;;  %3633 = vst.msk [vmem:[%s6551_s9 + $0x1f8] sm:$0xff] %vm477_vm0, %v6606_v7  ;;  %3658 = vst.msk [vmem:[%s6551_s9 + $0x2c0] sm:$0xff] %vm477_vm0, %v3530_v58  ;;  %v7732_v7 = vld [vmem:[#allocation35_spill] sm:$0xff]  ;;  %v3277_v61 = vmax.f32 %v3148_v60, 0.0  ;;  %v3222_v58 = vmax.f32 %v3093_v22, 0.0 }
 0x347   : > { %v3533_v30 = vadd.f32 %v3405_v63, %v7732_v7  ;;  %3632 = vst.msk [vmem:[%s6551_s9 + $0x1f0] sm:$0xff] %vm477_vm0, %v6611_v4  ;;  %3603 = vst.msk [vmem:[%s6551_s9 + $0x108] sm:$0xff] %vm477_vm0, %v3475_v29  ;;  %v7734_v4 = vld [vmem:[#allocation33_spill] sm:$0xff]  ;;  %v7058_v63 = vpop.f32.mrb[43].mxu0 }
 0x348   : > { %3600 = vst.msk [vmem:[%s6551_s9 + $0xf0] sm:$0xff] %vm477_vm0, %v3472_v44  ;;  %3635 = vst.msk [vmem:[%s6551_s9 + $0x208] sm:$0xff] %vm477_vm0, %v6622_v12  ;;  %v3532_v3 = vadd.f32 %v3404_v27, %v7734_v4  ;;  %v3092_v12 = vadd.f32 %v7026_v26, %v6939_v28  ;;  %v3406_v14 = vmul.f32 %v6484_v20, %v3277_v61  ;;  %v3280_v44 = vmax.f32 %v3151_v32, 0.0  ;;  %v7099_v61 = vpop.f32.mrb[85].mxu1  ;;  %v7743_v32 = vld [vmem:[#allocation40_spill] sm:$0xff] }
 0x349   : > { %3661 = vst.msk [vmem:[%s6551_s9 + $0x2d8] sm:$0xff] %vm477_vm0, %v3533_v30  ;;  %3602 = vst.msk [vmem:[%s6551_s9 + $0x100] sm:$0xff] %vm477_vm0, %v3474_v41  ;;  %v3150_v28 = vadd.f32 %v7026_v26, %v6941_v53  ;;  %v7738_v53 = vld [vmem:[#allocation37_spill] sm:$0xff]  ;;  %v7083_v41 = vpop.f32.mrb[44].mxu0 }
 0x34a   : > { %3634 = vst.msk [vmem:[%s6551_s9 + $0x200] sm:$0xff] %vm477_vm0, %v6631_v10  ;;  %3660 = vst.msk [vmem:[%s6551_s9 + $0x2d0] sm:$0xff] %vm477_vm0, %v3532_v3  ;;  %v3351_v10 = vmul.f32 %v6484_v20, %v3222_v58  ;;  %v3221_v29 = vmax.f32 %v3092_v12, 0.0  ;;  %v3534_v50 = vadd.f32 %v3406_v14, %v7738_v53  ;;  %v3409_v11 = vmul.f32 %v6484_v20, %v3280_v44  ;;  %v7739_v30 = vld [vmem:[#allocation109_spill] sm:$0xff]  ;;  %v7742_v3 = vld [vmem:[#allocation110_spill] sm:$0xff]  ;;  %v7097_v33 = vpop.f32.mrb[45].mxu0 }
 0x34b   : > { %3605 = vst.msk [vmem:[%s6551_s9 + $0x118] sm:$0xff] %vm477_vm0, %v3477_v21  ;;  %3637 = vst.msk [vmem:[%s6551_s9 + $0x218] sm:$0xff] %vm477_vm0, %v6647_v16  ;;  %v3279_v7 = vmax.f32 %v3150_v28, 0.0  ;;  %v3018_v27 = vadd.f32 %v6966_v51, %v7739_v30  ;;  %v3094_v16 = vadd.f32 %v7026_v26, %v6974_v42  ;;  %v7741_v51 = vld [vmem:[#allocation43_spill] sm:$0xff]  ;;  %v3017_v42 = vadd.f32 %v6976_v57, %v7742_v3  ;;  %v7744_v57 = vld [vmem:[#allocation41_spill] sm:$0xff] }
 0x34c   : > { %3663 = vst.msk [vmem:[%s6551_s9 + $0x2e8] sm:$0xff] %vm477_vm0, %v3535_v47  ;;  %3604 = vst.msk [vmem:[%s6551_s9 + $0x110] sm:$0xff] %vm477_vm0, %v3476_v36  ;;  %v3479_v60 = vadd.f32 %v3351_v10, %v7740_v24  ;;  %v3350_v49 = vmul.f32 %v6484_v20, %v3221_v29  ;;  %v3537_v40 = vadd.f32 %v3409_v11, %v7741_v51  ;;  %v7745_v47 = vld [vmem:[#allocation111_spill] sm:$0xff]  ;;  %v7746_v44 = vld [vmem:[#allocation46_spill] sm:$0xff]  ;;  %v7122_v36 = vpop.f32.mrb[46].mxu0  ;;  %v7124_v10 = vpop.f32.mrb[86].mxu1 }
 0x34d   : > { %3636 = vst.msk [vmem:[%s6551_s9 + $0x210] sm:$0xff] %vm477_vm0, %v6652_v6  ;;  %3662 = vst.msk [vmem:[%s6551_s9 + $0x2e0] sm:$0xff] %vm477_vm0, %v3534_v50  ;;  %v3408_v22 = vmul.f32 %v6484_v20, %v3279_v7  ;;  %v3153_v4 = vadd.f32 %v7026_v26, %v3018_v27  ;;  %v3223_v21 = vmax.f32 %v3094_v16, 0.0  ;;  %v3152_v13 = vadd.f32 %v7026_v26, %v3017_v42  ;;  %v7747_v53 = vld [vmem:[#allocation112_spill] sm:$0xff]  ;;  %v7137_v11 = vpop.f32.mrb[87].mxu1  ;;  %v7750_v51 = vld [vmem:[#allocation50_spill] sm:$0xff] }
 0x34e   : > { %3607 = vst.msk [vmem:[%s6551_s9 + $0x128] sm:$0xff] %vm477_vm0, %v3479_v60  ;;  %v3478_v6 = vadd.f32 %v3350_v49, %v7743_v32  ;;  %3639 = vst.msk [vmem:[%s6551_s9 + $0x228] sm:$0xff] %vm477_vm0, %v6664_v62  ;;  %v3020_v14 = vadd.f32 %v7004_v37, %v7745_v47  ;;  %v3481_v28 = vadd.f32 %v3353_v48, %v7746_v44  ;;  %v7748_v7 = vld [vmem:[#allocation44_spill] sm:$0xff]  ;;  %v7751_v3 = vld [vmem:[#allocation113_spill] sm:$0xff]  ;;  %v7159_v42 = vpop.f32.mrb[88].mxu1 }
 0x34f   : > { %3665 = vst.msk [vmem:[%s6551_s9 + $0x2f8] sm:$0xff] %vm477_vm0, %v3537_v40  ;;  %v3536_v58 = vadd.f32 %v3408_v22, %v7744_v57  ;;  %v3282_v12 = vmax.f32 %v3153_v4, 0.0  ;;  %v3352_v17 = vmul.f32 %v6484_v20, %v3223_v21  ;;  %v3096_v62 = vadd.f32 %v7026_v26, %v7012_v59  ;;  %3638 = vst.msk [vmem:[%s6551_s9 + $0x220] sm:$0xff] %vm477_vm0, %v6675_v43  ;;  %v7135_v59 = vpop.f32.mrb[47].mxu0  ;;  %v7752_v32 = vld [vmem:[#allocation45_spill] sm:$0xff]  ;;  %v7172_v57 = vpop.f32.mrb[89].mxu1 }
 0x350   : > { %3606 = vst.msk [vmem:[%s6551_s9 + $0x120] sm:$0xff] %vm477_vm0, %v3478_v6  ;;  %v3281_v29 = vmax.f32 %v3152_v13, 0.0  ;;  %v3155_v56 = vadd.f32 %v7026_v26, %v3020_v14  ;;  %v3019_v50 = vadd.f32 %v7014_v52, %v7747_v53  ;;  %3609 = vst.msk [vmem:[%s6551_s9 + $0x138] sm:$0xff] %vm477_vm0, %v3481_v28  ;;  %v3355_v43 = vmul.f32 %v6484_v20, %v3226_v38  ;;  %v7749_v52 = vld [vmem:[#allocation47_spill] sm:$0xff]  ;;  %v7754_v47 = vld [vmem:[#allocation114_spill] sm:$0xff]  ;;  %v7196_v53 = vpop.f32.mrb[90].mxu1 }
 0x351   : > { %3664 = vst.msk [vmem:[%s6551_s9 + $0x2f0] sm:$0xff] %vm477_vm0, %v3536_v58  ;;  %v3411_v37 = vmul.f32 %v6484_v20, %v3282_v12  ;;  %v3480_v30 = vadd.f32 %v3352_v17, %v7748_v7  ;;  %v3225_v27 = vmax.f32 %v3096_v62, 0.0  ;;  %v3099_v24 = vadd.f32 %v7026_v26, %v7045_v2  ;;  %3641 = vst.msk [vmem:[%s6551_s9 + $0x238] sm:$0xff] %vm477_vm0, %v6690_v46  ;;  %v7157_v46 = vpop.f32.mrb[48].mxu0  ;;  %v7753_v58 = vld [vmem:[#allocation48_spill] sm:$0xff]  ;;  %v7756_v62 = vld [vmem:[#allocation54_spill] sm:$0xff] }
 0x352   : > { %v3410_v49 = vmul.f32 %v6484_v20, %v3281_v29  ;;  %v3284_v9 = vmax.f32 %v3155_v56, 0.0  ;;  %v3154_v16 = vadd.f32 %v7026_v26, %v3019_v50  ;;  %v3483_v40 = vadd.f32 %v3355_v43, %v7750_v51  ;;  %3640 = vst.msk [vmem:[%s6551_s9 + $0x230] sm:$0xff] %vm477_vm0, %v6698_v19  ;;  %v7170_v8 = vpop.f32.mrb[49].mxu0  ;;  %3643 = vst.msk [vmem:[%s6551_s9 + $0x248] sm:$0xff] %vm477_vm0, %v6708_v39  ;;  %v7757_v56 = vld [vmem:[#allocation115_spill] sm:$0xff] }
 0x353   : > { %v3539_v60 = vadd.f32 %v3411_v37, %v7749_v52  ;;  %3608 = vst.msk [vmem:[%s6551_s9 + $0x130] sm:$0xff] %vm477_vm0, %v3480_v30  ;;  %v3354_v22 = vmul.f32 %v6484_v20, %v3225_v27  ;;  %v3228_v4 = vmax.f32 %v3099_v24, 0.0  ;;  %v3022_v2 = vadd.f32 %v7047_v1, %v7751_v3  ;;  %3642 = vst.msk [vmem:[%s6551_s9 + $0x240] sm:$0xff] %vm477_vm0, %v6719_v15  ;;  %v7207_v27 = vpop.f32.mrb[91].mxu1 }
 0x354   : > { %v3538_v6 = vadd.f32 %v3410_v49, %v7752_v32  ;;  %v3413_v48 = vmul.f32 %v6484_v20, %v3284_v9  ;;  %v3283_v21 = vmax.f32 %v3154_v16, 0.0  ;;  %v3098_v1 = vadd.f32 %v7026_v26, %v7058_v63  ;;  %3611 = vst.msk [vmem:[%s6551_s9 + $0x148] sm:$0xff] %vm477_vm0, %v3483_v40  ;;  %v7755_v63 = vld [vmem:[#allocation51_spill] sm:$0xff]  ;;  %3645 = vst.msk [vmem:[%s6551_s9 + $0x258] sm:$0xff] %vm477_vm0, %v6734_v55  ;;  %v7760_v49 = vld [vmem:[#allocation52_spill] sm:$0xff] }
 0x355   : > { %3667 = vst.msk [vmem:[%s6551_s9 + $0x308] sm:$0xff] %vm477_vm0, %v3539_v60  ;;  %v3482_v12 = vadd.f32 %v3354_v22, %v7753_v58  ;;  %v3357_v19 = vmul.f32 %v6484_v20, %v3228_v4  ;;  %v3157_v13 = vadd.f32 %v7026_v26, %v3022_v2  ;;  %v3021_v14 = vadd.f32 %v7060_v34, %v7754_v47  ;;  %v7759_v60 = vld [vmem:[#allocation116_spill] sm:$0xff]  ;;  %v7761_v40 = vld [vmem:[#allocation55_spill] sm:$0xff]  ;;  %v7227_v2 = vpop.f32.mrb[92].mxu1  ;;  %v7762_v55 = vld [vmem:[#allocation58_spill] sm:$0xff] }
 0x356   : > { %3666 = vst.msk [vmem:[%s6551_s9 + $0x300] sm:$0xff] %vm477_vm0, %v3538_v6  ;;  %v3541_v44 = vadd.f32 %v3413_v48, %v7755_v63  ;;  %v3412_v28 = vmul.f32 %v6484_v20, %v3283_v21  ;;  %v3227_v17 = vmax.f32 %v3098_v1, 0.0  ;;  %v3101_v38 = vadd.f32 %v7026_v26, %v7083_v41  ;;  %v7758_v41 = vld [vmem:[#allocation49_spill] sm:$0xff]  ;;  %v7235_v1 = vpop.f32.mrb[93].mxu1  ;;  %3644 = vst.msk [vmem:[%s6551_s9 + $0x250] sm:$0xff] %vm477_vm0, %v6742_v45 }
 0x357   : > { %3610 = vst.msk [vmem:[%s6551_s9 + $0x140] sm:$0xff] %vm477_vm0, %v3482_v12  ;;  %v3485_v37 = vadd.f32 %v3357_v19, %v7756_v62  ;;  %v3286_v29 = vmax.f32 %v3157_v13, 0.0  ;;  %v3156_v34 = vadd.f32 %v7026_v26, %v3021_v14  ;;  %v3024_v39 = vadd.f32 %v7085_v5, %v7757_v56  ;;  %v7764_v58 = vld [vmem:[#allocation53_spill] sm:$0xff]  ;;  %v7765_v14 = vld [vmem:[#allocation56_spill] sm:$0xff]  ;;  %3647 = vst.msk [vmem:[%s6551_s9 + $0x268] sm:$0xff] %vm477_vm0, %v6752_v54 }
 0x358   : > { %3669 = vst.msk [vmem:[%s6551_s9 + $0x318] sm:$0xff] %vm477_vm0, %v3541_v44  ;;  %v3540_v50 = vadd.f32 %v3412_v28, %v7758_v41  ;;  %v3356_v7 = vmul.f32 %v6484_v20, %v3227_v17  ;;  %v3230_v30 = vmax.f32 %v3101_v38, 0.0  ;;  %v3100_v43 = vadd.f32 %v7026_v26, %v7097_v33  ;;  %v7766_v28 = vld [vmem:[#allocation118_spill] sm:$0xff]  ;;  %v7767_v17 = vld [vmem:[#allocation59_spill] sm:$0xff]  ;;  %3646 = vst.msk [vmem:[%s6551_s9 + $0x260] sm:$0xff] %vm477_vm0, %v6763_v35 }
 0x359   : > { %3613 = vst.msk [vmem:[%s6551_s9 + $0x158] sm:$0xff] %vm477_vm0, %v3485_v37  ;;  %v3415_v5 = vmul.f32 %v6484_v20, %v3286_v29  ;;  %v3285_v24 = vmax.f32 %v3156_v34, 0.0  ;;  %v3159_v52 = vadd.f32 %v7026_v26, %v3024_v39  ;;  %v3023_v15 = vadd.f32 %v7099_v61, %v7759_v60  ;;  %v4894_v29 = vpop.f32.mrb[94].mxu1  ;;  %v7768_v34 = vld [vmem:[#allocation63_spill] sm:$0xff]  ;;  %v7771_v60 = vld [vmem:[#allocation120_spill] sm:$0xff]  ;;  %3649 = vst.msk [vmem:[%s6551_s9 + $0x278] sm:$0xff] %vm477_vm0, %v6781_v18 }
 0x35a   : > { %3668 = vst.msk [vmem:[%s6551_s9 + $0x310] sm:$0xff] %vm477_vm0, %v3540_v50  ;;  %v3484_v33 = vadd.f32 %v3356_v7, %v7760_v49  ;;  %v3359_v9 = vmul.f32 %v6484_v20, %v3230_v30  ;;  %v3229_v16 = vmax.f32 %v3100_v43, 0.0  ;;  %v3103_v51 = vadd.f32 %v7026_v26, %v7122_v36  ;;  %v7763_v36 = vld [vmem:[#allocation117_spill] sm:$0xff]  ;;  %v7769_v54 = vld [vmem:[#allocation119_spill] sm:$0xff]  ;;  %v2842_v50 = vpop.f32.mrb[95].mxu1  ;;  %v7772_v35 = vld [vmem:[#allocation60_spill] sm:$0xff] }
 0x35b   : > { %v3543_v22 = vadd.f32 %v3415_v5, %v7761_v40  ;;  %v3414_v4 = vmul.f32 %v6484_v20, %v3285_v24  ;;  %v3288_v61 = vmax.f32 %v3159_v52, 0.0  ;;  %v3158_v3 = vadd.f32 %v7026_v26, %v3023_v15  ;;  %v7774_v40 = vld [vmem:[#allocation64_spill] sm:$0xff]  ;;  %3648 = vst.msk [vmem:[%s6551_s9 + $0x270] sm:$0xff] %vm477_vm0, %v6792_v23  ;;  %3651 = vst.msk [vmem:[%s6551_s9 + $0x288] sm:$0xff] %vm477_vm0, %v6811_v0  ;;  %v7784_v0 = vld [vmem:[#allocation66_spill] sm:$0xff] }
 0x35c   : > { %3612 = vst.msk [vmem:[%s6551_s9 + $0x150] sm:$0xff] %vm477_vm0, %v3484_v33  ;;  %v3487_v32 = vadd.f32 %v3359_v9, %v7762_v55  ;;  %v3358_v6 = vmul.f32 %v6484_v20, %v3229_v16  ;;  %v3232_v48 = vmax.f32 %v3103_v51, 0.0  ;;  %v3026_v21 = vadd.f32 %v7124_v10, %v7763_v36  ;;  %v7773_v9 = vld [vmem:[#allocation121_spill] sm:$0xff]  ;;  %v4897_v51 = vpop.f32.mrb[96].mxu1  ;;  %3650 = vst.msk [vmem:[%s6551_s9 + $0x280] sm:$0xff] %vm477_vm0, %v6825_v31 }
 0x35d   : > { %3671 = vst.msk [vmem:[%s6551_s9 + $0x328] sm:$0xff] %vm477_vm0, %v3543_v22  ;;  %v3542_v12 = vadd.f32 %v3414_v4, %v7764_v58  ;;  %v3417_v19 = vmul.f32 %v6484_v20, %v3288_v61  ;;  %v3287_v13 = vmax.f32 %v3158_v3, 0.0  ;;  %v3102_v47 = vadd.f32 %v7026_v26, %v7135_v59  ;;  %v2852_v18 = vpop.f32.mrb[97].mxu1  ;;  %v7775_v3 = vld [vmem:[#allocation69_spill] sm:$0xff] }
 0x35e   : > { %3615 = vst.msk [vmem:[%s6551_s9 + $0x168] sm:$0xff] %vm477_vm0, %v3487_v32  ;;  %v3486_v10 = vadd.f32 %v3358_v6, %v7765_v14  ;;  %v3361_v63 = vmul.f32 %v6484_v20, %v3232_v48  ;;  %v3161_v44 = vadd.f32 %v7026_v26, %v3026_v21  ;;  %v3025_v45 = vadd.f32 %v7137_v11, %v7766_v28  ;;  %v7776_v6 = vld [vmem:[#allocation122_spill] sm:$0xff]  ;;  %v7777_v36 = vld [vmem:[#allocation61_spill] sm:$0xff] }
 0x35f   : > { %3670 = vst.msk [vmem:[%s6551_s9 + $0x320] sm:$0xff] %vm477_vm0, %v3542_v12  ;;  %v3545_v59 = vadd.f32 %v3417_v19, %v7767_v17  ;;  %v3416_v38 = vmul.f32 %v6484_v20, %v3287_v13  ;;  %v3231_v62 = vmax.f32 %v3102_v47, 0.0  ;;  %v3105_v37 = vadd.f32 %v7026_v26, %v7157_v46  ;;  %v7770_v46 = vld [vmem:[#allocation57_spill] sm:$0xff]  ;;  %v7778_v19 = vld [vmem:[#allocation123_spill] sm:$0xff]  ;;  %v7781_v28 = vld [vmem:[#allocation70_spill] sm:$0xff] }
 0x360   : > { %3614 = vst.msk [vmem:[%s6551_s9 + $0x160] sm:$0xff] %vm477_vm0, %v3486_v10  ;;  %v3489_v56 = vadd.f32 %v3361_v63, %v7768_v34  ;;  %v3290_v11 = vmax.f32 %v3161_v44, 0.0  ;;  %v3160_v39 = vadd.f32 %v7026_v26, %v3025_v45  ;;  %v3028_v41 = vadd.f32 %v7159_v42, %v7769_v54  ;;  %v7779_v47 = vld [vmem:[#allocation65_spill] sm:$0xff]  ;;  %v7780_v63 = vld [vmem:[#allocation124_spill] sm:$0xff]  ;;  %v4900_v44 = vpop.f32.mrb[98].mxu1 }
 0x361   : > { %3673 = vst.msk [vmem:[%s6551_s9 + $0x338] sm:$0xff] %vm477_vm0, %v3545_v59  ;;  %v3544_v7 = vadd.f32 %v3416_v38, %v7770_v46  ;;  %v3360_v30 = vmul.f32 %v6484_v20, %v3231_v62  ;;  %v3234_v43 = vmax.f32 %v3105_v37, 0.0  ;;  %v3104_v5 = vadd.f32 %v7026_v26, %v7170_v8  ;;  %v7782_v59 = vld [vmem:[#allocation125_spill] sm:$0xff]  ;;  %v2862_v62 = vpop.f32.mrb[99].mxu1 }
 0x362   : > { %3617 = vst.msk [vmem:[%s6551_s9 + $0x178] sm:$0xff] %vm477_vm0, %v3489_v56  ;;  %v3419_v24 = vmul.f32 %v6484_v20, %v3290_v11  ;;  %v3289_v42 = vmax.f32 %v3160_v39, 0.0  ;;  %v3163_v52 = vadd.f32 %v7026_v26, %v3028_v41  ;;  %v3027_v15 = vadd.f32 %v7172_v57, %v7771_v60  ;;  %v7783_v56 = vld [vmem:[#allocation126_spill] sm:$0xff]  ;;  %v7785_v41 = vld [vmem:[#allocation127_spill] sm:$0xff]  ;;  %v7787_v60 = vld [vmem:[#allocation128_spill] sm:$0xff] }
 0x363   : > { %3672 = vst.msk [vmem:[%s6551_s9 + $0x330] sm:$0xff] %vm477_vm0, %v3544_v7  ;;  %v3488_v49 = vadd.f32 %v3360_v30, %v7772_v35  ;;  %v3363_v8 = vmul.f32 %v6484_v20, %v3234_v43  ;;  %v3233_v33 = vmax.f32 %v3104_v5, 0.0  ;;  %v3030_v16 = vadd.f32 %v7196_v53, %v7773_v9  ;;  %v7786_v7 = vld [vmem:[#allocation74_spill] sm:$0xff] }
 0x364   : > { %v3547_v22 = vadd.f32 %v3419_v24, %v7774_v40  ;;  %v3418_v57 = vmul.f32 %v6484_v20, %v3289_v42  ;;  %v3292_v4 = vmax.f32 %v3163_v52, 0.0  ;;  %v3162_v61 = vadd.f32 %v7026_v26, %v3027_v15  ;;  %v4903_v24 = vpop.f32.mrb[100].mxu1  ;;  %v7790_v40 = vld [vmem:[#allocation78_spill] sm:$0xff] }
 0x365   : > { %3616 = vst.msk [vmem:[%s6551_s9 + $0x170] sm:$0xff] %vm477_vm0, %v3488_v49  ;;  %v3491_v55 = vadd.f32 %v3363_v8, %v7775_v3  ;;  %v3362_v32 = vmul.f32 %v6484_v20, %v3233_v33  ;;  %v3165_v53 = vadd.f32 %v7026_v26, %v3030_v16  ;;  %v3029_v48 = vadd.f32 %v7207_v27, %v7776_v6  ;;  %v2872_v35 = vpop.f32.mrb[101].mxu1  ;;  %v7788_v49 = vld [vmem:[#allocation71_spill] sm:$0xff]  ;;  %v7789_v16 = vld [vmem:[#allocation129_spill] sm:$0xff] }
 0x366   : > { %3675 = vst.msk [vmem:[%s6551_s9 + $0x348] sm:$0xff] %vm477_vm0, %v3547_v22  ;;  %v3546_v21 = vadd.f32 %v3418_v57, %v7777_v36  ;;  %v3421_v58 = vmul.f32 %v6484_v20, %v3292_v4  ;;  %v3291_v12 = vmax.f32 %v3162_v61, 0.0  ;;  %v3032_v13 = vadd.f32 %v7227_v2, %v7778_v19  ;;  %v7793_v36 = vld [vmem:[#allocation82_spill] sm:$0xff]  ;;  %v7794_v19 = vld [vmem:[#allocation131_spill] sm:$0xff] }
 0x367   : > { %3619 = vst.msk [vmem:[%s6551_s9 + $0x188] sm:$0xff] %vm477_vm0, %v3491_v55  ;;  %v3490_v14 = vadd.f32 %v3362_v32, %v7779_v47  ;;  %v3294_v10 = vmax.f32 %v3165_v53, 0.0  ;;  %v3164_v27 = vadd.f32 %v7026_v26, %v3029_v48  ;;  %v3031_v23 = vadd.f32 %v7235_v1, %v7780_v63  ;;  %v7792_v53 = vld [vmem:[#allocation130_spill] sm:$0xff]  ;;  %v4906_v48 = vpop.f32.mrb[102].mxu1 }
 0x368   : > { %3674 = vst.msk [vmem:[%s6551_s9 + $0x340] sm:$0xff] %vm477_vm0, %v3546_v21  ;;  %v3549_v2 = vadd.f32 %v3421_v58, %v7781_v28  ;;  %v3420_v45 = vmul.f32 %v6484_v20, %v3291_v12  ;;  %v3167_v17 = vadd.f32 %v7026_v26, %v3032_v13  ;;  %v3034_v38 = vadd.f32 %v4894_v29, %v7782_v59  ;;  %v2882_v47 = vpop.f32.mrb[103].mxu1  ;;  %v7797_v28 = vld [vmem:[#allocation86_spill] sm:$0xff]  ;;  %v7798_v59 = vld [vmem:[#allocation133_spill] sm:$0xff] }
 0x369   : > { %3618 = vst.msk [vmem:[%s6551_s9 + $0x180] sm:$0xff] %vm477_vm0, %v3490_v14  ;;  %v3423_v1 = vmul.f32 %v6484_v20, %v3294_v10  ;;  %v3293_v37 = vmax.f32 %v3164_v27, 0.0  ;;  %v3166_v34 = vadd.f32 %v7026_v26, %v3031_v23  ;;  %v3033_v11 = vadd.f32 %v2842_v50, %v7783_v56  ;;  %v7795_v14 = vld [vmem:[#allocation79_spill] sm:$0xff]  ;;  %v7796_v23 = vld [vmem:[#allocation132_spill] sm:$0xff] }
 0x36a   : > { %3677 = vst.msk [vmem:[%s6551_s9 + $0x358] sm:$0xff] %vm477_vm0, %v3549_v2  ;;  %v3548_v39 = vadd.f32 %v3420_v45, %v7784_v0  ;;  %v3296_v29 = vmax.f32 %v3167_v17, 0.0  ;;  %v3169_v54 = vadd.f32 %v7026_v26, %v3034_v38  ;;  %v3036_v46 = vadd.f32 %v4897_v51, %v7785_v41  ;;  %v7800_v0 = vld [vmem:[#allocation83_spill] sm:$0xff] }
 0x36b   : > { %v3551_v30 = vadd.f32 %v3423_v1, %v7786_v7  ;;  %v3422_v43 = vmul.f32 %v6484_v20, %v3293_v37  ;;  %v3295_v5 = vmax.f32 %v3166_v34, 0.0  ;;  %v3168_v50 = vadd.f32 %v7026_v26, %v3033_v11  ;;  %v7799_v34 = vld [vmem:[#allocation134_spill] sm:$0xff]  ;;  %v4909_v11 = vpop.f32.mrb[104].mxu1  ;;  %v7801_v41 = vld [vmem:[#allocation135_spill] sm:$0xff] }
 0x36c   : > { %3676 = vst.msk [vmem:[%s6551_s9 + $0x350] sm:$0xff] %vm477_vm0, %v3548_v39  ;;  %v3425_v31 = vmul.f32 %v6484_v20, %v3296_v29  ;;  %v3298_v42 = vmax.f32 %v3169_v54, 0.0  ;;  %v3171_v52 = vadd.f32 %v7026_v26, %v3036_v46  ;;  %v3035_v15 = vadd.f32 %v2852_v18, %v7787_v60  ;;  %v7791_v18 = vld [vmem:[#allocation75_spill] sm:$0xff]  ;;  %v2892_v7 = vpop.f32.mrb[105].mxu1  ;;  %v7803_v60 = vld [vmem:[#allocation136_spill] sm:$0xff] }
 0x36d   : > { %3679 = vst.msk [vmem:[%s6551_s9 + $0x368] sm:$0xff] %vm477_vm0, %v3551_v30  ;;  %v3550_v8 = vadd.f32 %v3422_v43, %v7788_v49  ;;  %v3424_v33 = vmul.f32 %v6484_v20, %v3295_v5  ;;  %v3297_v9 = vmax.f32 %v3168_v50, 0.0  ;;  %v3038_v51 = vadd.f32 %v4900_v44, %v7789_v16  ;;  %v7802_v30 = vld [vmem:[#allocation90_spill] sm:$0xff] }
 0x36e   : > { %v3553_v22 = vadd.f32 %v3425_v31, %v7790_v40  ;;  %v3427_v57 = vmul.f32 %v6484_v20, %v3298_v42  ;;  %v3300_v4 = vmax.f32 %v3171_v52, 0.0  ;;  %v3170_v61 = vadd.f32 %v7026_v26, %v3035_v15  ;;  %v7805_v16 = vld [vmem:[#allocation94_spill] sm:$0xff] }
 0x36f   : > { %3678 = vst.msk [vmem:[%s6551_s9 + $0x360] sm:$0xff] %vm477_vm0, %v3550_v8  ;;  %v3552_v3 = vadd.f32 %v3424_v33, %v7791_v18  ;;  %v3426_v55 = vmul.f32 %v6484_v20, %v3297_v9  ;;  %v3173_v32 = vadd.f32 %v7026_v26, %v3038_v51  ;;  %v3037_v6 = vadd.f32 %v2862_v62, %v7792_v53  ;;  %v4912_v9 = vpop.f32.mrb[106].mxu1  ;;  %v7808_v53 = vld [vmem:[#allocation138_spill] sm:$0xff] }
 0x370   : > { %3681 = vst.msk [vmem:[%s6551_s9 + $0x378] sm:$0xff] %vm477_vm0, %v3553_v22  ;;  %v3555_v21 = vadd.f32 %v3427_v57, %v7793_v36  ;;  %v3429_v58 = vmul.f32 %v6484_v20, %v3300_v4  ;;  %v3299_v12 = vmax.f32 %v3170_v61, 0.0  ;;  %v3040_v13 = vadd.f32 %v4903_v24, %v7794_v19  ;;  %v2902_v4 = vpop.f32.mrb[107].mxu1  ;;  %v7806_v61 = vld [vmem:[#allocation91_spill] sm:$0xff] }
 0x371   : > { %3680 = vst.msk [vmem:[%s6551_s9 + $0x370] sm:$0xff] %vm477_vm0, %v3552_v3  ;;  %v3554_v10 = vadd.f32 %v3426_v55, %v7795_v14  ;;  %v3302_v27 = vmax.f32 %v3173_v32, 0.0  ;;  %v3172_v63 = vadd.f32 %v7026_v26, %v3037_v6  ;;  %v3039_v44 = vadd.f32 %v2872_v35, %v7796_v23  ;;  %v7804_v35 = vld [vmem:[#allocation87_spill] sm:$0xff]  ;;  %v7807_v55 = vld [vmem:[#allocation137_spill] sm:$0xff]  ;;  %v4915_v14 = vpop.f32.mrb[108].mxu1 }
 0x372   : > { %3683 = vst.msk [vmem:[%s6551_s9 + $0x388] sm:$0xff] %vm477_vm0, %v3555_v21  ;;  %v3557_v2 = vadd.f32 %v3429_v58, %v7797_v28  ;;  %v3428_v45 = vmul.f32 %v6484_v20, %v3299_v12  ;;  %v3175_v17 = vadd.f32 %v7026_v26, %v3040_v13  ;;  %v3042_v38 = vadd.f32 %v4906_v48, %v7798_v59  ;;  %v7809_v48 = vld [vmem:[#allocation98_spill] sm:$0xff]  ;;  %v7810_v12 = vld [vmem:[#allocation95_spill] sm:$0xff] }
 0x373   : > { %3682 = vst.msk [vmem:[%s6551_s9 + $0x380] sm:$0xff] %vm477_vm0, %v3554_v10  ;;  %v3431_v62 = vmul.f32 %v6484_v20, %v3302_v27  ;;  %v3301_v1 = vmax.f32 %v3172_v63, 0.0  ;;  %v3174_v37 = vadd.f32 %v7026_v26, %v3039_v44  ;;  %v3041_v56 = vadd.f32 %v2882_v47, %v7799_v34  ;;  %v7811_v10 = vld [vmem:[#allocation102_spill] sm:$0xff]  ;;  %v2912_v44 = vpop.f32.mrb[109].mxu1  ;;  %v7813_v59 = vld [vmem:[#allocation99_spill] sm:$0xff] }
 0x374   : > { %3685 = vst.msk [vmem:[%s6551_s9 + $0x398] sm:$0xff] %vm477_vm0, %v3557_v2  ;;  %v3556_v39 = vadd.f32 %v3428_v45, %v7800_v0  ;;  %v3304_v29 = vmax.f32 %v3175_v17, 0.0  ;;  %v3177_v54 = vadd.f32 %v7026_v26, %v3042_v38  ;;  %v3044_v46 = vadd.f32 %v4909_v11, %v7801_v41  ;;  %v7812_v45 = vld [vmem:[#allocation139_spill] sm:$0xff] }
 0x375   : > { %v3559_v43 = vadd.f32 %v3431_v62, %v7802_v30  ;;  %v3430_v5 = vmul.f32 %v6484_v20, %v3301_v1  ;;  %v3303_v50 = vmax.f32 %v3174_v37, 0.0  ;;  %v3176_v24 = vadd.f32 %v7026_v26, %v3041_v56  ;;  %v7814_v56 = vld [vmem:[#allocation106_spill] sm:$0xff]  ;;  %v7815_v0 = vld [vmem:[#allocation103_spill] sm:$0xff] }
 0x376   : > { %3684 = vst.msk [vmem:[%s6551_s9 + $0x390] sm:$0xff] %vm477_vm0, %v3556_v39  ;;  %v3433_v31 = vmul.f32 %v6484_v20, %v3304_v29  ;;  %v3306_v42 = vmax.f32 %v3177_v54, 0.0  ;;  %v3179_v52 = vadd.f32 %v7026_v26, %v3044_v46  ;;  %v3043_v15 = vadd.f32 %v2892_v7, %v7803_v60  ;;  %v7816_v46 = vld [vmem:[#allocation108_spill] sm:$0xff]  ;;  %v7817_v30 = vld [vmem:[#allocation107_spill] sm:$0xff] }
 0x377   : > { %3687 = vst.msk [vmem:[%s6551_s9 + $0x3a8] sm:$0xff] %vm477_vm0, %v3559_v43  ;;  %v3558_v49 = vadd.f32 %v3430_v5, %v7804_v35  ;;  %v3432_v8 = vmul.f32 %v6484_v20, %v3303_v50  ;;  %v3305_v33 = vmax.f32 %v3176_v24, 0.0  ;;  %v3046_v32 = vadd.f32 %v4912_v9, %v7807_v55 }
 0x378   : > { %v3561_v51 = vadd.f32 %v3433_v31, %v7805_v16  ;;  %v3435_v40 = vmul.f32 %v6484_v20, %v3306_v42  ;;  %v3308_v22 = vmax.f32 %v3179_v52, 0.0  ;;  %v3178_v57 = vadd.f32 %v7026_v26, %v3043_v15 }
 0x379   : > { %3686 = vst.msk [vmem:[%s6551_s9 + $0x3a0] sm:$0xff] %vm477_vm0, %v3558_v49  ;;  %v3560_v18 = vadd.f32 %v3432_v8, %v7806_v61  ;;  %v3434_v3 = vmul.f32 %v6484_v20, %v3305_v33  ;;  %v3045_v6 = vadd.f32 %v2902_v4, %v7808_v53  ;;  %v3181_v13 = vadd.f32 %v7026_v26, %v3046_v32 }
 0x37a   : > { %3689 = vst.msk [vmem:[%s6551_s9 + $0x3b8] sm:$0xff] %vm477_vm0, %v3561_v51  ;;  %v3563_v36 = vadd.f32 %v3435_v40, %v7809_v48  ;;  %v3437_v21 = vmul.f32 %v6484_v20, %v3308_v22  ;;  %v3307_v58 = vmax.f32 %v3178_v57, 0.0  ;;  %v3048_v23 = vadd.f32 %v4915_v14, %v6494_v25 }
 0x37b   : > { %3688 = vst.msk [vmem:[%s6551_s9 + $0x3b0] sm:$0xff] %vm477_vm0, %v3560_v18  ;;  %v3562_v19 = vadd.f32 %v3434_v3, %v7810_v12  ;;  %v3180_v47 = vadd.f32 %v7026_v26, %v3045_v6  ;;  %v3310_v28 = vmax.f32 %v3181_v13, 0.0  ;;  %v3047_v17 = vadd.f32 %v2912_v44, %v7812_v45 }
 0x37c   : > { %3691 = vst.msk [vmem:[%s6551_s9 + $0x3c8] sm:$0xff] %vm477_vm0, %v3563_v36  ;;  %v3565_v27 = vadd.f32 %v3437_v21, %v7811_v10  ;;  %v3436_v63 = vmul.f32 %v6484_v20, %v3307_v58  ;;  %v3183_v62 = vadd.f32 %v7026_v26, %v3048_v23 }
 0x37d   : > { %3690 = vst.msk [vmem:[%s6551_s9 + $0x3c0] sm:$0xff] %vm477_vm0, %v3562_v19  ;;  %v3309_v2 = vmax.f32 %v3180_v47, 0.0  ;;  %v3439_v1 = vmul.f32 %v6484_v20, %v3310_v28  ;;  %v3182_v37 = vadd.f32 %v7026_v26, %v3047_v17 }
 0x37e   : > { %3693 = vst.msk [vmem:[%s6551_s9 + $0x3d8] sm:$0xff] %vm477_vm0, %v3565_v27  ;;  %v3564_v38 = vadd.f32 %v3436_v63, %v7813_v59  ;;  %v3312_v34 = vmax.f32 %v3183_v62, 0.0 }
 0x37f   : > { %v3438_v25 = vmul.f32 %v6484_v20, %v3309_v2  ;;  %v3567_v11 = vadd.f32 %v3439_v1, %v7814_v56  ;;  %v3311_v29 = vmax.f32 %v3182_v37, 0.0 }
 0x380   : > { %3692 = vst.msk [vmem:[%s6551_s9 + $0x3d0] sm:$0xff] %vm477_vm0, %v3564_v38  ;;  %v3441_v54 = vmul.f32 %v6484_v20, %v3312_v34 }
 0x381   : > { %v3566_v39 = vadd.f32 %v3438_v25, %v7815_v0  ;;  %3695 = vst.msk [vmem:[%s6551_s9 + $0x3e8] sm:$0xff] %vm477_vm0, %v3567_v11  ;;  %v3440_v41 = vmul.f32 %v6484_v20, %v3311_v29 }
 0x382   : > { %v3569_v7 = vadd.f32 %v3441_v54, %v7816_v46 }
 0x383   : > { %3694 = vst.msk [vmem:[%s6551_s9 + $0x3e0] sm:$0xff] %vm477_vm0, %v3566_v39  ;;  %v3568_v26 = vadd.f32 %v3440_v41, %v7817_v30 }
 0x384   : > { %3697 = vst.msk [vmem:[%s6551_s9 + $0x3f8] sm:$0xff] %vm477_vm0, %v3569_v7 }
 0x385   : > { %3696 = vst.msk [vmem:[%s6551_s9 + $0x3f0] sm:$0xff] %vm477_vm0, %v3568_v26 }
 0x386 PF: > { %s18_s26 = sadd.s32 1, %s5162_s26  }
 0x387   : > { %p15_p4 = scmp.ge.s32.totalorder %s18_s26, 4  }
 0x389   :  { %17 = sbr.rel (!%p15_p4) target bundleno = 2 (0x2), region = 81 }

</bundles_post_ra>
